<compile_context>
chip_gen: v5e
topology: v5e:2x2
jax: 0.10.0
libtpu: 0.0.40
codegen_flags: <defaults>
</compile_context>

<pallas_src>
import jax
import jax.numpy as jnp
from jax.experimental import pallas as pl
from jax.experimental.pallas import tpu as pltpu

EPS = 1e-6
NEG_INF = -1e9


# ---------------------------------------------------------------------------
# In-kernel helpers
# ---------------------------------------------------------------------------
def _layer_norm(x, gamma, beta):
    # Matches annotated-transformer LayerNorm: unbiased std, eps added to the std.
    d = x.shape[-1]
    mean = jnp.mean(x, axis=-1, keepdims=True)
    diff = x - mean
    var = jnp.sum(diff * diff, axis=-1, keepdims=True) * (1.0 / (d - 1))
    return gamma * (diff / (jnp.sqrt(var) + EPS)) + beta     # exact divide (review)


def _mha_core(q, k, v, keep_mask, wo_ref, bo_ref, num_heads):
    """Per-head scores/softmax/context + single lane-dense output projection.

    q: (S, D) f32, already scaled by 1/sqrt(d_k);  k, v: (Skv, D) f32.
    keep_mask: bool (S, Skv) or (1, Skv) -- broadcast over query rows.
    wo_ref: (D, D) bf16;  bo_ref: (1, D) f32.
    Head h occupies columns [h*d_k, (h+1)*d_k) of q/k/v (standard concat layout).
    """
    D = q.shape[-1]
    d_k = D // num_heads
    q_bf = q.astype(jnp.bfloat16)
    k_bf = k.astype(jnp.bfloat16)
    v_bf = v.astype(jnp.bfloat16)

    ctx = []
    for h in range(num_heads):                      # static unroll; H is small
        lo, hi = h * d_k, (h + 1) * d_k
        # (S, Skv) scores: q_h @ k_h^T, f32 accumulation.
        s = jnp.einsum("qd,kd->qk", q_bf[:, lo:hi], k_bf[:, lo:hi],
                       preferred_element_type=jnp.float32)
        s = jnp.where(keep_mask, s, NEG_INF)        # same select as the reference
        m = jnp.max(s, axis=-1, keepdims=True)
        e = jnp.exp(s - m)
        p = e * pl.reciprocal(jnp.sum(e, axis=-1, keepdims=True), approx=True)
        ctx.append(jnp.dot(p.astype(jnp.bfloat16), v_bf[:, lo:hi],
                           preferred_element_type=jnp.float32))   # (S, d_k)

    ctx = jnp.concatenate(ctx, axis=-1)             # (S, D) head concat
    # Output projection: one full-depth MXU matmul (absorbs the head concat).
    return jnp.dot(ctx.astype(jnp.bfloat16), wo_ref[...],
                   preferred_element_type=jnp.float32) + bo_ref[...]


# ---------------------------------------------------------------------------
# Fused decoder-layer kernel: one batch element per grid step; the (S, D)
# activation stays resident in VMEM across all three sublayers.
# ---------------------------------------------------------------------------
def _make_kernel(num_heads, tgt_is_causal):
    def kernel(*args):
        if tgt_is_causal:
            (x_ref, mem_ref, src_mask_ref,
             w_qkv0, b_qkv0, wo0, bo0, g0, be0,
             wq1, bq1, w_kv1, b_kv1, wo1, bo1, g1, be1,
             w1, b1, w2, b2, g2, be2,
             o_ref) = args
            tgt_mask_ref = None
        else:
            (x_ref, mem_ref, tgt_mask_ref, src_mask_ref,
             w_qkv0, b_qkv0, wo0, bo0, g0, be0,
             wq1, bq1, w_kv1, b_kv1, wo1, bo1, g1, be1,
             w1, b1, w2, b2, g2, be2,
             o_ref) = args

        x = x_ref[0]                                 # (S, D) f32, VMEM-resident
        mem = mem_ref[0]                             # (Skv, D) bf16 (pre-cast)
        S, D = x.shape
        d_k = D // num_heads
        scale = 1.0 / (d_k ** 0.5)

        if tgt_is_causal:                            # causal mask built in-kernel
            row = jax.lax.broadcasted_iota(jnp.int32, (S, S), 0)
            col = jax.lax.broadcasted_iota(jnp.int32, (S, S), 1)
            tgt_keep = row >= col                    # (S, S) bool
        else:
            tgt_keep = tgt_mask_ref[0] != 0          # (S, S) bool
        src_keep = src_mask_ref[0] != 0              # (1, Skv) bool

        # -- sublayer 0: x += SelfAttn(norm(x), norm(x), norm(x), tgt_mask)
        nx = _layer_norm(x, g0[...], be0[...])
        qkv = jnp.dot(nx.astype(jnp.bfloat16), w_qkv0[...],
                      preferred_element_type=jnp.float32) + b_qkv0[...]  # (S, 3D)
        x = x + _mha_core(qkv[:, :D] * scale, qkv[:, D:2 * D], qkv[:, 2 * D:],
                          tgt_keep, wo0, bo0, num_heads)

        # -- sublayer 1: x += SrcAttn(norm(x), memory, memory, src_mask)
        nx = _layer_norm(x, g1[...], be1[...])
        q = (jnp.dot(nx.astype(jnp.bfloat16), wq1[...],
                     preferred_element_type=jnp.float32) + bq1[...]) * scale
        kv = jnp.dot(mem, w_kv1[...],
                     preferred_element_type=jnp.float32) + b_kv1[...]    # (Skv, 2D)
        x = x + _mha_core(q, kv[:, :D], kv[:, D:], src_keep, wo1, bo1, num_heads)

        # -- sublayer 2: x += FFN(norm(x))
        nx = _layer_norm(x, g2[...], be2[...])
        h = jnp.dot(nx.astype(jnp.bfloat16), w1[...],
                    preferred_element_type=jnp.float32) + b1[...]
        h = jnp.maximum(h, 0.0)
        y = jnp.dot(h.astype(jnp.bfloat16), w2[...],
                    preferred_element_type=jnp.float32) + b2[...]
        o_ref[0] = (x + y).astype(o_ref.dtype)

    return kernel


# ---------------------------------------------------------------------------
# One-time weight packing (hoisted off the per-call path).
# ---------------------------------------------------------------------------
PACKED_FIELDS = (
    "w_qkv0", "b_qkv0", "wo0", "bo0", "g0", "be0",                 # self-attn + LN0
    "wq1", "bq1", "w_kv1", "b_kv1", "wo1", "bo1", "g1", "be1",     # cross-attn + LN1
    "w1", "b1", "w2", "b2", "g2", "be2",                           # FFN + LN2
)


def pack_params(params):
    """Fuse Wq/Wk/Wv -> (D,3D) and Wk/Wv -> (D,2D); bf16 matmul weights, f32 rest.

    Head h of q/k/v lives in columns [h*d_k, (h+1)*d_k) of each D-wide block, so
    column-wise fusion needs no per-head re-layout.  Call ONCE at load time.
    """
    sa, ca, ffn = params["self_attn"], params["src_attn"], params["ffn"]
    bf = lambda a: a.astype(jnp.bfloat16)
    f32 = lambda a: a.astype(jnp.float32)
    return {
        "w_qkv0": bf(jnp.concatenate([sa["wq"], sa["wk"], sa["wv"]], axis=1)),
        "b_qkv0": f32(jnp.concatenate([sa["bq"], sa["bk"], sa["bv"]], axis=1)),
        "wo0": bf(sa["wo"]), "bo0": f32(sa["bo"]),
        "g0": f32(params["ln0"]["gamma"]), "be0": f32(params["ln0"]["beta"]),
        "wq1": bf(ca["wq"]), "bq1": f32(ca["bq"]),
        "w_kv1": bf(jnp.concatenate([ca["wk"], ca["wv"]], axis=1)),
        "b_kv1": f32(jnp.concatenate([ca["bk"], ca["bv"]], axis=1)),
        "wo1": bf(ca["wo"]), "bo1": f32(ca["bo"]),
        "g1": f32(params["ln1"]["gamma"]), "be1": f32(params["ln1"]["beta"]),
        "w1": bf(ffn["w1"]), "b1": f32(ffn["b1"]),
        "w2": bf(ffn["w2"]), "b2": f32(ffn["b2"]),
        "g2": f32(params["ln2"]["gamma"]), "be2": f32(params["ln2"]["beta"]),
    }


def _weight_spec(a):
    zeros = (0,) * a.ndim
    # Grid-invariant block: single-buffered to avoid doubling weight VMEM.
    return pl.BlockSpec(a.shape, lambda b, _z=zeros: _z,
                        pipeline_mode=pl.Buffered(1))


# ---------------------------------------------------------------------------
# Wrapper
# ---------------------------------------------------------------------------
def decoder_layer(x, memory, src_mask, tgt_mask, packed, num_heads,
                  *, tgt_is_causal=False):
    B, S, D = x.shape
    Skv = memory.shape[1]
    assert D % num_heads == 0

    weights = tuple(packed[name] for name in PACKED_FIELDS)
    mem_bf = memory.astype(jnp.bfloat16)            # only ever an MXU input
    src_m = src_mask.astype(jnp.int32)
    src_idx = (lambda b: (0, 0, 0)) if src_m.shape[0] == 1 else (lambda b: (b, 0, 0))

    inputs = [x, mem_bf]
    in_specs = [pl.BlockSpec((1, S, D), lambda b: (b, 0, 0)),
                pl.BlockSpec((1, Skv, D), lambda b: (b, 0, 0))]
    if not tgt_is_causal:                           # generic mask path (module semantics)
        tgt_m = tgt_mask.astype(jnp.int32)
        tgt_idx = (lambda b: (0, 0, 0)) if tgt_m.shape[0] == 1 else (lambda b: (b, 0, 0))
        inputs.append(tgt_m)
        in_specs.append(pl.BlockSpec((1, S, S), tgt_idx))
    inputs.append(src_m)
    in_specs.append(pl.BlockSpec((1, 1, Skv), src_idx))
    inputs.extend(weights)
    in_specs.extend(_weight_spec(w) for w in weights)

    return pl.pallas_call(
        _make_kernel(num_heads, tgt_is_causal),
        out_shape=jax.ShapeDtypeStruct((B, S, D), x.dtype),
        grid=(B,),
        in_specs=in_specs,
        out_specs=pl.BlockSpec((1, S, D), lambda b: (b, 0, 0)),
        compiler_params=pltpu.CompilerParams(
            dimension_semantics=("parallel",),
            # TODO(synk): size per generation (keep headroom under 64 MiB on v7x).
            vmem_limit_bytes=64 * 1024 * 1024),
    )(*inputs)


# ---------------------------------------------------------------------------
# Pure-JAX f32 reference (matches the PyTorch module semantics exactly).
# ---------------------------------------------------------------------------
def _ref_layer_norm(x, ln):
    d = x.shape[-1]
    mean = jnp.mean(x, axis=-1, keepdims=True)
    var = jnp.sum((x - mean) ** 2, axis=-1, keepdims=True) / (d - 1)
    return ln["gamma"] * (x - mean) / (jnp.sqrt(var) + EPS) + ln["beta"]


def _ref_mha(q_in, kv_in, mask, p, num_heads):
    B, S, D = q_in.shape
    Skv = kv_in.shape[1]
    d_k = D // num_heads
    q = q_in @ p["wq"] + p["bq"]
    k = kv_in @ p["wk"] + p["bk"]
    v = kv_in @ p["wv"] + p["bv"]
    q = q.reshape(B, S, num_heads, d_k).transpose(0, 2, 1, 3)
    k = k.reshape(B, Skv, num_heads, d_k).transpose(0, 2, 1, 3)
    v = v.reshape(B, Skv, num_heads, d_k).transpose(0, 2, 1, 3)
    scores = jnp.einsum("bhqd,bhkd->bhqk", q, k) / jnp.sqrt(jnp.float32(d_k))
    scores = jnp.where(mask[:, None] == 0, NEG_INF, scores)
    attn = jax.nn.softmax(scores, axis=-1)
    out = jnp.einsum("bhqk,bhkd->bhqd", attn, v)
    out = out.transpose(0, 2, 1, 3).reshape(B, S, D)
    return out @ p["wo"] + p["bo"]


def _ref_decoder_layer(x, memory, src_mask, tgt_mask, params, num_heads):
    nx = _ref_layer_norm(x, params["ln0"])
    x = x + _ref_mha(nx, nx, tgt_mask, params["self_attn"], num_heads)
    nx = _ref_layer_norm(x, params["ln1"])
    x = x + _ref_mha(nx, memory, src_mask, params["src_attn"], num_heads)
    nx = _ref_layer_norm(x, params["ln2"])
    h = jnp.maximum(nx @ params["ffn"]["w1"] + params["ffn"]["b1"], 0.0)
    return x + (h @ params["ffn"]["w2"] + params["ffn"]["b2"])


# ---------------------------------------------------------------------------
# Deterministic parameter init + demo
# ---------------------------------------------------------------------------
def init_params(key, d_model, d_ff):
    def lin(k, fan_in, fan_out):
        kw, kb = jax.random.split(k)
        w = jax.random.normal(kw, (fan_in, fan_out), jnp.float32) * 0.05
        b = jax.random.normal(kb, (1, fan_out), jnp.float32) * 0.05
        return w, b

    def attn(k):
        kq, kk, kv, ko = jax.random.split(k, 4)
        wq, bq = lin(kq, d_model, d_model)
        wk, bk = lin(kk, d_model, d_model)
        wv, bv = lin(kv, d_model, d_model)
        wo, bo = lin(ko, d_model, d_model)
        return dict(wq=wq, bq=bq, wk=wk, bk=bk, wv=wv, bv=bv, wo=wo, bo=bo)

    def ln(k):
        kg, kb = jax.random.split(k)
        return dict(gamma=1.0 + 0.1 * jax.random.normal(kg, (1, d_model), jnp.float32),
                    beta=0.1 * jax.random.normal(kb, (1, d_model), jnp.float32))

    k1, k2, k3, k4, k5, k6, k7 = jax.random.split(key, 7)
    w1, b1 = lin(k3, d_model, d_ff)
    w2, b2 = lin(k4, d_ff, d_model)
    return dict(self_attn=attn(k1), src_attn=attn(k2),
                ffn=dict(w1=w1, b1=b1, w2=w2, b2=b2),
                ln0=ln(k5), ln1=ln(k6), ln2=ln(k7))


if __name__ == "__main__":
    # Small, lane-dense demo config: d_k = D/H = 128 keeps every slice 128-aligned.
    B, S_TGT, S_SRC, D_MODEL, N_HEADS, D_FF = 2, 8, 16, 256, 2, 512

    key = jax.random.PRNGKey(0)
    kx, km, kp = jax.random.split(key, 3)
    x = jax.random.normal(kx, (B, S_TGT, D_MODEL), jnp.float32)
    memory = jax.random.normal(km, (B, S_SRC, D_MODEL), jnp.float32)

    # tgt_mask: causal (1, S_tgt, S_tgt); src_mask: per-batch padding (B, 1, S_src).
    tgt_mask = jnp.tril(jnp.ones((S_TGT, S_TGT), jnp.int32))[None]
    src_lens = jnp.array([S_SRC, S_SRC - 4])
    src_mask = (jnp.arange(S_SRC)[None, None, :] < src_lens[:, None, None]).astype(jnp.int32)

    params = init_params(kp, D_MODEL, D_FF)
    packed = pack_params(params)                 # one-time packing (off the hot path)

    ref = _ref_decoder_layer(x, memory, src_mask, tgt_mask, params, N_HEADS)

    # 1) Generic mask path (exact module semantics: tgt_mask is an input).
    out = jax.block_until_ready(
        decoder_layer(x, memory, src_mask, tgt_mask, packed, N_HEADS))
    assert out.shape == (B, S_TGT, D_MODEL)
    err = float(jnp.max(jnp.abs(out - ref)))
    assert jnp.allclose(out, ref, atol=3e-2, rtol=3e-2), (
        "generic-mask path mismatch vs JAX reference: max |diff| = %f" % err)

    # 2) Causal-in-kernel path (no (1,S,S) mask DMA) -- same semantics here.
    out_c = jax.block_until_ready(
        decoder_layer(x, memory, src_mask, None, packed, N_HEADS, tgt_is_causal=True))
    err_c = float(jnp.max(jnp.abs(out_c - ref)))
    assert jnp.allclose(out_c, ref, atol=3e-2, rtol=3e-2), (
        "causal-path mismatch vs JAX reference: max |diff| = %f" % err_c)

    print("KERNEL_OK")
</pallas_src>

<mosaic_0001>
module attributes {stable_mosaic.version = 11 : i64} {
  func.func @kernel(%arg0: i32, %arg1: memref<1x8x256xf32, #tpu.memory_space<vmem>>, %arg2: memref<1x16x256xbf16, #tpu.memory_space<vmem>>, %arg3: memref<1x8x8xi32, #tpu.memory_space<vmem>>, %arg4: memref<1x1x16xi32, #tpu.memory_space<vmem>>, %arg5: memref<256x768xbf16, #tpu.memory_space<vmem>>, %arg6: memref<1x768xf32, #tpu.memory_space<vmem>>, %arg7: memref<256x256xbf16, #tpu.memory_space<vmem>>, %arg8: memref<1x256xf32, #tpu.memory_space<vmem>>, %arg9: memref<1x256xf32, #tpu.memory_space<vmem>>, %arg10: memref<1x256xf32, #tpu.memory_space<vmem>>, %arg11: memref<256x256xbf16, #tpu.memory_space<vmem>>, %arg12: memref<1x256xf32, #tpu.memory_space<vmem>>, %arg13: memref<256x512xbf16, #tpu.memory_space<vmem>>, %arg14: memref<1x512xf32, #tpu.memory_space<vmem>>, %arg15: memref<256x256xbf16, #tpu.memory_space<vmem>>, %arg16: memref<1x256xf32, #tpu.memory_space<vmem>>, %arg17: memref<1x256xf32, #tpu.memory_space<vmem>>, %arg18: memref<1x256xf32, #tpu.memory_space<vmem>>, %arg19: memref<256x512xbf16, #tpu.memory_space<vmem>>, %arg20: memref<1x512xf32, #tpu.memory_space<vmem>>, %arg21: memref<512x256xbf16, #tpu.memory_space<vmem>>, %arg22: memref<1x256xf32, #tpu.memory_space<vmem>>, %arg23: memref<1x256xf32, #tpu.memory_space<vmem>>, %arg24: memref<1x256xf32, #tpu.memory_space<vmem>>, %arg25: memref<1x8x256xf32, #tpu.memory_space<vmem>>) attributes {dimension_semantics = [#tpu.dimension_semantics<parallel>], iteration_bounds = array<i64: 2>, scalar_prefetch = 0 : i64, scratch_operands = 0 : i64, tpu.core_type = #tpu.core_type<tc>, window_params = [{transform_indices = @transform_0, window_bounds = array<i64: 1, 8, 256>}, {transform_indices = @transform_1, window_bounds = array<i64: 1, 16, 256>}, {pipeline_mode = #tpu.pipeline_mode<synchronous>, transform_indices = @transform_2, window_bounds = array<i64: 1, 8, 8>}, {transform_indices = @transform_3, window_bounds = array<i64: 1, 1, 16>}, {pipeline_mode = #tpu.pipeline_mode<synchronous>, transform_indices = @transform_4, window_bounds = array<i64: 256, 768>}, {pipeline_mode = #tpu.pipeline_mode<synchronous>, transform_indices = @transform_5, window_bounds = array<i64: 1, 768>}, {pipeline_mode = #tpu.pipeline_mode<synchronous>, transform_indices = @transform_6, window_bounds = array<i64: 256, 256>}, {pipeline_mode = #tpu.pipeline_mode<synchronous>, transform_indices = @transform_7, window_bounds = array<i64: 1, 256>}, {pipeline_mode = #tpu.pipeline_mode<synchronous>, transform_indices = @transform_8, window_bounds = array<i64: 1, 256>}, {pipeline_mode = #tpu.pipeline_mode<synchronous>, transform_indices = @transform_9, window_bounds = array<i64: 1, 256>}, {pipeline_mode = #tpu.pipeline_mode<synchronous>, transform_indices = @transform_10, window_bounds = array<i64: 256, 256>}, {pipeline_mode = #tpu.pipeline_mode<synchronous>, transform_indices = @transform_11, window_bounds = array<i64: 1, 256>}, {pipeline_mode = #tpu.pipeline_mode<synchronous>, transform_indices = @transform_12, window_bounds = array<i64: 256, 512>}, {pipeline_mode = #tpu.pipeline_mode<synchronous>, transform_indices = @transform_13, window_bounds = array<i64: 1, 512>}, {pipeline_mode = #tpu.pipeline_mode<synchronous>, transform_indices = @transform_14, window_bounds = array<i64: 256, 256>}, {pipeline_mode = #tpu.pipeline_mode<synchronous>, transform_indices = @transform_15, window_bounds = array<i64: 1, 256>}, {pipeline_mode = #tpu.pipeline_mode<synchronous>, transform_indices = @transform_16, window_bounds = array<i64: 1, 256>}, {pipeline_mode = #tpu.pipeline_mode<synchronous>, transform_indices = @transform_17, window_bounds = array<i64: 1, 256>}, {pipeline_mode = #tpu.pipeline_mode<synchronous>, transform_indices = @transform_18, window_bounds = array<i64: 256, 512>}, {pipeline_mode = #tpu.pipeline_mode<synchronous>, transform_indices = @transform_19, window_bounds = array<i64: 1, 512>}, {pipeline_mode = #tpu.pipeline_mode<synchronous>, transform_indices = @transform_20, window_bounds = array<i64: 512, 256>}, {pipeline_mode = #tpu.pipeline_mode<synchronous>, transform_indices = @transform_21, window_bounds = array<i64: 1, 256>}, {pipeline_mode = #tpu.pipeline_mode<synchronous>, transform_indices = @transform_22, window_bounds = array<i64: 1, 256>}, {pipeline_mode = #tpu.pipeline_mode<synchronous>, transform_indices = @transform_23, window_bounds = array<i64: 1, 256>}, {transform_indices = @transform_24, window_bounds = array<i64: 1, 8, 256>}]} {
    %c0 = arith.constant 0 : index
    %c0_0 = arith.constant 0 : index
    %c0_1 = arith.constant 0 : index
    %0 = vector.load %arg1[%c0, %c0_0, %c0_1] : memref<1x8x256xf32, #tpu.memory_space<vmem>>, vector<1x8x256xf32>
    %1 = vector.shape_cast %0 : vector<1x8x256xf32> to vector<8x256xf32>
    %c0_2 = arith.constant 0 : index
    %c0_3 = arith.constant 0 : index
    %c0_4 = arith.constant 0 : index
    %2 = vector.load %arg2[%c0_2, %c0_3, %c0_4] : memref<1x16x256xbf16, #tpu.memory_space<vmem>>, vector<1x16x256xbf16>
    %3 = vector.shape_cast %2 : vector<1x16x256xbf16> to vector<16x256xbf16>
    %c0_5 = arith.constant 0 : index
    %c0_6 = arith.constant 0 : index
    %c0_7 = arith.constant 0 : index
    %4 = vector.load %arg3[%c0_5, %c0_6, %c0_7] : memref<1x8x8xi32, #tpu.memory_space<vmem>>, vector<1x8x8xi32>
    %5 = vector.shape_cast %4 : vector<1x8x8xi32> to vector<8x8xi32>
    %c0_i32 = arith.constant 0 : i32
    %6 = vector.broadcast %c0_i32 : i32 to vector<8x8xi32>
    %7 = arith.cmpi ne, %5, %6 : vector<8x8xi32>
    %c0_8 = arith.constant 0 : index
    %c0_9 = arith.constant 0 : index
    %c0_10 = arith.constant 0 : index
    %8 = vector.load %arg4[%c0_8, %c0_9, %c0_10] : memref<1x1x16xi32, #tpu.memory_space<vmem>>, vector<1x1x16xi32>
    %9 = vector.shape_cast %8 : vector<1x1x16xi32> to vector<1x16xi32>
    %c0_i32_11 = arith.constant 0 : i32
    %10 = vector.broadcast %c0_i32_11 : i32 to vector<1x16xi32>
    %11 = arith.cmpi ne, %9, %10 : vector<1x16xi32>
    %c0_12 = arith.constant 0 : index
    %c0_13 = arith.constant 0 : index
    %12 = vector.load %arg9[%c0_12, %c0_13] : memref<1x256xf32, #tpu.memory_space<vmem>>, vector<1x256xf32>
    %c0_14 = arith.constant 0 : index
    %c0_15 = arith.constant 0 : index
    %13 = vector.load %arg10[%c0_14, %c0_15] : memref<1x256xf32, #tpu.memory_space<vmem>>, vector<1x256xf32>
    %cst = arith.constant dense<0.000000e+00> : vector<8xf32>
    %14 = vector.multi_reduction <add>, %1, %cst [1] : vector<8x256xf32> to vector<8xf32>
    %15 = vector.shape_cast %14 : vector<8xf32> to vector<8x1xf32>
    %cst_16 = arith.constant 2.560000e+02 : f32
    %16 = vector.broadcast %cst_16 : f32 to vector<8x1xf32>
    %17 = arith.divf %15, %16 : vector<8x1xf32>
    %18 = vector.broadcast %17 : vector<8x1xf32> to vector<8x256xf32>
    %19 = arith.subf %1, %18 : vector<8x256xf32>
    %20 = arith.mulf %19, %19 : vector<8x256xf32>
    %cst_17 = arith.constant dense<0.000000e+00> : vector<8xf32>
    %21 = vector.multi_reduction <add>, %20, %cst_17 [1] : vector<8x256xf32> to vector<8xf32>
    %22 = vector.shape_cast %21 : vector<8xf32> to vector<8x1xf32>
    %cst_18 = arith.constant 0.00392156886 : f32
    %23 = vector.broadcast %cst_18 : f32 to vector<8x1xf32>
    %24 = arith.mulf %22, %23 : vector<8x1xf32>
    %25 = math.sqrt %24 : vector<8x1xf32>
    %cst_19 = arith.constant 9.99999997E-7 : f32
    %26 = vector.broadcast %cst_19 : f32 to vector<8x1xf32>
    %27 = arith.addf %25, %26 : vector<8x1xf32>
    %28 = vector.broadcast %27 : vector<8x1xf32> to vector<8x256xf32>
    %29 = arith.divf %19, %28 : vector<8x256xf32>
    %30 = vector.broadcast %12 : vector<1x256xf32> to vector<8x256xf32>
    %31 = arith.mulf %30, %29 : vector<8x256xf32>
    %32 = vector.broadcast %13 : vector<1x256xf32> to vector<8x256xf32>
    %33 = arith.addf %31, %32 : vector<8x256xf32>
    %34 = arith.truncf %33 : vector<8x256xf32> to vector<8x256xbf16>
    %c0_20 = arith.constant 0 : index
    %c0_21 = arith.constant 0 : index
    %35 = vector.load %arg5[%c0_20, %c0_21] : memref<256x768xbf16, #tpu.memory_space<vmem>>, vector<256x768xbf16>
    %cst_22 = arith.constant dense<0.000000e+00> : vector<8x768xf32>
    %36 = tpu.matmul %34, %35, %cst_22 {dimension_numbers = #tpu.dot_dimension_numbers<[1], [0], [0], [1], [0, 0, 1, 1], [], []>} : vector<8x256xbf16>, vector<256x768xbf16>, vector<8x768xf32> -> vector<8x768xf32>
    %c0_23 = arith.constant 0 : index
    %c0_24 = arith.constant 0 : index
    %37 = vector.load %arg6[%c0_23, %c0_24] : memref<1x768xf32, #tpu.memory_space<vmem>>, vector<1x768xf32>
    %38 = vector.broadcast %37 : vector<1x768xf32> to vector<8x768xf32>
    %39 = arith.addf %36, %38 : vector<8x768xf32>
    %40 = vector.extract_strided_slice %39 {offsets = [0, 0], sizes = [8, 256], strides = [1, 1]} : vector<8x768xf32> to vector<8x256xf32>
    %cst_25 = arith.constant 0.0883883461 : f32
    %41 = vector.broadcast %cst_25 : f32 to vector<8x256xf32>
    %42 = arith.mulf %40, %41 : vector<8x256xf32>
    %43 = vector.extract_strided_slice %39 {offsets = [0, 256], sizes = [8, 256], strides = [1, 1]} : vector<8x768xf32> to vector<8x256xf32>
    %44 = vector.extract_strided_slice %39 {offsets = [0, 512], sizes = [8, 256], strides = [1, 1]} : vector<8x768xf32> to vector<8x256xf32>
    %45 = arith.truncf %42 : vector<8x256xf32> to vector<8x256xbf16>
    %46 = arith.truncf %43 : vector<8x256xf32> to vector<8x256xbf16>
    %47 = arith.truncf %44 : vector<8x256xf32> to vector<8x256xbf16>
    %48 = vector.extract_strided_slice %45 {offsets = [0, 0], sizes = [8, 128], strides = [1, 1]} : vector<8x256xbf16> to vector<8x128xbf16>
    %49 = vector.extract_strided_slice %46 {offsets = [0, 0], sizes = [8, 128], strides = [1, 1]} : vector<8x256xbf16> to vector<8x128xbf16>
    "tpu.trace_start"() <{level = 10 : i32, message = "qd,kd->qk"}> : () -> ()
    %cst_26 = arith.constant dense<0.000000e+00> : vector<8x8xf32>
    %50 = tpu.matmul %48, %49, %cst_26 {dimension_numbers = #tpu.dot_dimension_numbers<[1], [1], [0], [0], [0, 0, 1, 0], [], []>} : vector<8x128xbf16>, vector<8x128xbf16>, vector<8x8xf32> -> vector<8x8xf32>
    %cst_27 = arith.constant -1.000000e+09 : f32
    "tpu.trace_stop"() : () -> ()
    %51 = vector.broadcast %cst_27 : f32 to vector<8x8xf32>
    %52 = arith.select %7, %50, %51 : vector<8x8xi1>, vector<8x8xf32>
    %cst_28 = arith.constant dense<0xFF800000> : vector<8xf32>
    %53 = vector.multi_reduction <maximumf>, %52, %cst_28 [1] : vector<8x8xf32> to vector<8xf32>
    %54 = vector.shape_cast %53 : vector<8xf32> to vector<8x1xf32>
    %55 = vector.broadcast %54 : vector<8x1xf32> to vector<8x8xf32>
    %56 = arith.subf %52, %55 : vector<8x8xf32>
    %57 = math.exp %56 : vector<8x8xf32>
    %cst_29 = arith.constant dense<0.000000e+00> : vector<8xf32>
    %58 = vector.multi_reduction <add>, %57, %cst_29 [1] : vector<8x8xf32> to vector<8xf32>
    %59 = vector.shape_cast %58 : vector<8xf32> to vector<8x1xf32>
    %60 = tpu.reciprocal %59 {approx = true} : vector<8x1xf32> -> vector<8x1xf32>
    %61 = vector.broadcast %60 : vector<8x1xf32> to vector<8x8xf32>
    %62 = arith.mulf %57, %61 : vector<8x8xf32>
    %63 = arith.truncf %62 : vector<8x8xf32> to vector<8x8xbf16>
    %64 = vector.extract_strided_slice %47 {offsets = [0, 0], sizes = [8, 128], strides = [1, 1]} : vector<8x256xbf16> to vector<8x128xbf16>
    %cst_30 = arith.constant dense<0.000000e+00> : vector<8x128xf32>
    %65 = tpu.matmul %63, %64, %cst_30 {dimension_numbers = #tpu.dot_dimension_numbers<[1], [0], [0], [1], [0, 0, 1, 1], [], []>} : vector<8x8xbf16>, vector<8x128xbf16>, vector<8x128xf32> -> vector<8x128xf32>
    %66 = vector.extract_strided_slice %45 {offsets = [0, 128], sizes = [8, 128], strides = [1, 1]} : vector<8x256xbf16> to vector<8x128xbf16>
    %67 = vector.extract_strided_slice %46 {offsets = [0, 128], sizes = [8, 128], strides = [1, 1]} : vector<8x256xbf16> to vector<8x128xbf16>
    "tpu.trace_start"() <{level = 10 : i32, message = "qd,kd->qk"}> : () -> ()
    %cst_31 = arith.constant dense<0.000000e+00> : vector<8x8xf32>
    %68 = tpu.matmul %66, %67, %cst_31 {dimension_numbers = #tpu.dot_dimension_numbers<[1], [1], [0], [0], [0, 0, 1, 0], [], []>} : vector<8x128xbf16>, vector<8x128xbf16>, vector<8x8xf32> -> vector<8x8xf32>
    %cst_32 = arith.constant -1.000000e+09 : f32
    "tpu.trace_stop"() : () -> ()
    %69 = vector.broadcast %cst_32 : f32 to vector<8x8xf32>
    %70 = arith.select %7, %68, %69 : vector<8x8xi1>, vector<8x8xf32>
    %cst_33 = arith.constant dense<0xFF800000> : vector<8xf32>
    %71 = vector.multi_reduction <maximumf>, %70, %cst_33 [1] : vector<8x8xf32> to vector<8xf32>
    %72 = vector.shape_cast %71 : vector<8xf32> to vector<8x1xf32>
    %73 = vector.broadcast %72 : vector<8x1xf32> to vector<8x8xf32>
    %74 = arith.subf %70, %73 : vector<8x8xf32>
    %75 = math.exp %74 : vector<8x8xf32>
    %cst_34 = arith.constant dense<0.000000e+00> : vector<8xf32>
    %76 = vector.multi_reduction <add>, %75, %cst_34 [1] : vector<8x8xf32> to vector<8xf32>
    %77 = vector.shape_cast %76 : vector<8xf32> to vector<8x1xf32>
    %78 = tpu.reciprocal %77 {approx = true} : vector<8x1xf32> -> vector<8x1xf32>
    %79 = vector.broadcast %78 : vector<8x1xf32> to vector<8x8xf32>
    %80 = arith.mulf %75, %79 : vector<8x8xf32>
    %81 = arith.truncf %80 : vector<8x8xf32> to vector<8x8xbf16>
    %82 = vector.extract_strided_slice %47 {offsets = [0, 128], sizes = [8, 128], strides = [1, 1]} : vector<8x256xbf16> to vector<8x128xbf16>
    %cst_35 = arith.constant dense<0.000000e+00> : vector<8x128xf32>
    %83 = tpu.matmul %81, %82, %cst_35 {dimension_numbers = #tpu.dot_dimension_numbers<[1], [0], [0], [1], [0, 0, 1, 1], [], []>} : vector<8x8xbf16>, vector<8x128xbf16>, vector<8x128xf32> -> vector<8x128xf32>
    %84 = tpu.concatenate %65, %83 in 1 : vector<8x128xf32>, vector<8x128xf32> -> vector<8x256xf32>
    %85 = arith.truncf %84 : vector<8x256xf32> to vector<8x256xbf16>
    %c0_36 = arith.constant 0 : index
    %c0_37 = arith.constant 0 : index
    %86 = vector.load %arg7[%c0_36, %c0_37] : memref<256x256xbf16, #tpu.memory_space<vmem>>, vector<256x256xbf16>
    %cst_38 = arith.constant dense<0.000000e+00> : vector<8x256xf32>
    %87 = tpu.matmul %85, %86, %cst_38 {dimension_numbers = #tpu.dot_dimension_numbers<[1], [0], [0], [1], [0, 0, 1, 1], [], []>} : vector<8x256xbf16>, vector<256x256xbf16>, vector<8x256xf32> -> vector<8x256xf32>
    %c0_39 = arith.constant 0 : index
    %c0_40 = arith.constant 0 : index
    %88 = vector.load %arg8[%c0_39, %c0_40] : memref<1x256xf32, #tpu.memory_space<vmem>>, vector<1x256xf32>
    %89 = vector.broadcast %88 : vector<1x256xf32> to vector<8x256xf32>
    %90 = arith.addf %87, %89 : vector<8x256xf32>
    %91 = arith.addf %1, %90 : vector<8x256xf32>
    %c0_41 = arith.constant 0 : index
    %c0_42 = arith.constant 0 : index
    %92 = vector.load %arg17[%c0_41, %c0_42] : memref<1x256xf32, #tpu.memory_space<vmem>>, vector<1x256xf32>
    %c0_43 = arith.constant 0 : index
    %c0_44 = arith.constant 0 : index
    %93 = vector.load %arg18[%c0_43, %c0_44] : memref<1x256xf32, #tpu.memory_space<vmem>>, vector<1x256xf32>
    %cst_45 = arith.constant dense<0.000000e+00> : vector<8xf32>
    %94 = vector.multi_reduction <add>, %91, %cst_45 [1] : vector<8x256xf32> to vector<8xf32>
    %95 = vector.shape_cast %94 : vector<8xf32> to vector<8x1xf32>
    %cst_46 = arith.constant 2.560000e+02 : f32
    %96 = vector.broadcast %cst_46 : f32 to vector<8x1xf32>
    %97 = arith.divf %95, %96 : vector<8x1xf32>
    %98 = vector.broadcast %97 : vector<8x1xf32> to vector<8x256xf32>
    %99 = arith.subf %91, %98 : vector<8x256xf32>
    %100 = arith.mulf %99, %99 : vector<8x256xf32>
    %cst_47 = arith.constant dense<0.000000e+00> : vector<8xf32>
    %101 = vector.multi_reduction <add>, %100, %cst_47 [1] : vector<8x256xf32> to vector<8xf32>
    %102 = vector.shape_cast %101 : vector<8xf32> to vector<8x1xf32>
    %cst_48 = arith.constant 0.00392156886 : f32
    %103 = vector.broadcast %cst_48 : f32 to vector<8x1xf32>
    %104 = arith.mulf %102, %103 : vector<8x1xf32>
    %105 = math.sqrt %104 : vector<8x1xf32>
    %cst_49 = arith.constant 9.99999997E-7 : f32
    %106 = vector.broadcast %cst_49 : f32 to vector<8x1xf32>
    %107 = arith.addf %105, %106 : vector<8x1xf32>
    %108 = vector.broadcast %107 : vector<8x1xf32> to vector<8x256xf32>
    %109 = arith.divf %99, %108 : vector<8x256xf32>
    %110 = vector.broadcast %92 : vector<1x256xf32> to vector<8x256xf32>
    %111 = arith.mulf %110, %109 : vector<8x256xf32>
    %112 = vector.broadcast %93 : vector<1x256xf32> to vector<8x256xf32>
    %113 = arith.addf %111, %112 : vector<8x256xf32>
    %114 = arith.truncf %113 : vector<8x256xf32> to vector<8x256xbf16>
    %c0_50 = arith.constant 0 : index
    %c0_51 = arith.constant 0 : index
    %115 = vector.load %arg11[%c0_50, %c0_51] : memref<256x256xbf16, #tpu.memory_space<vmem>>, vector<256x256xbf16>
    %cst_52 = arith.constant dense<0.000000e+00> : vector<8x256xf32>
    %116 = tpu.matmul %114, %115, %cst_52 {dimension_numbers = #tpu.dot_dimension_numbers<[1], [0], [0], [1], [0, 0, 1, 1], [], []>} : vector<8x256xbf16>, vector<256x256xbf16>, vector<8x256xf32> -> vector<8x256xf32>
    %c0_53 = arith.constant 0 : index
    %c0_54 = arith.constant 0 : index
    %117 = vector.load %arg12[%c0_53, %c0_54] : memref<1x256xf32, #tpu.memory_space<vmem>>, vector<1x256xf32>
    %118 = vector.broadcast %117 : vector<1x256xf32> to vector<8x256xf32>
    %119 = arith.addf %116, %118 : vector<8x256xf32>
    %cst_55 = arith.constant 0.0883883461 : f32
    %120 = vector.broadcast %cst_55 : f32 to vector<8x256xf32>
    %121 = arith.mulf %119, %120 : vector<8x256xf32>
    %c0_56 = arith.constant 0 : index
    %c0_57 = arith.constant 0 : index
    %122 = vector.load %arg13[%c0_56, %c0_57] : memref<256x512xbf16, #tpu.memory_space<vmem>>, vector<256x512xbf16>
    %cst_58 = arith.constant dense<0.000000e+00> : vector<16x512xf32>
    %123 = tpu.matmul %3, %122, %cst_58 {dimension_numbers = #tpu.dot_dimension_numbers<[1], [0], [0], [1], [0, 0, 1, 1], [], []>} : vector<16x256xbf16>, vector<256x512xbf16>, vector<16x512xf32> -> vector<16x512xf32>
    %c0_59 = arith.constant 0 : index
    %c0_60 = arith.constant 0 : index
    %124 = vector.load %arg14[%c0_59, %c0_60] : memref<1x512xf32, #tpu.memory_space<vmem>>, vector<1x512xf32>
    %125 = vector.broadcast %124 : vector<1x512xf32> to vector<16x512xf32>
    %126 = arith.addf %123, %125 : vector<16x512xf32>
    %127 = vector.extract_strided_slice %126 {offsets = [0, 0], sizes = [16, 256], strides = [1, 1]} : vector<16x512xf32> to vector<16x256xf32>
    %128 = vector.extract_strided_slice %126 {offsets = [0, 256], sizes = [16, 256], strides = [1, 1]} : vector<16x512xf32> to vector<16x256xf32>
    %129 = arith.truncf %121 : vector<8x256xf32> to vector<8x256xbf16>
    %130 = arith.truncf %127 : vector<16x256xf32> to vector<16x256xbf16>
    %131 = arith.truncf %128 : vector<16x256xf32> to vector<16x256xbf16>
    %132 = vector.extract_strided_slice %129 {offsets = [0, 0], sizes = [8, 128], strides = [1, 1]} : vector<8x256xbf16> to vector<8x128xbf16>
    %133 = vector.extract_strided_slice %130 {offsets = [0, 0], sizes = [16, 128], strides = [1, 1]} : vector<16x256xbf16> to vector<16x128xbf16>
    "tpu.trace_start"() <{level = 10 : i32, message = "qd,kd->qk"}> : () -> ()
    %cst_61 = arith.constant dense<0.000000e+00> : vector<8x16xf32>
    %134 = tpu.matmul %132, %133, %cst_61 {dimension_numbers = #tpu.dot_dimension_numbers<[1], [1], [0], [0], [0, 0, 1, 0], [], []>} : vector<8x128xbf16>, vector<16x128xbf16>, vector<8x16xf32> -> vector<8x16xf32>
    %cst_62 = arith.constant -1.000000e+09 : f32
    "tpu.trace_stop"() : () -> ()
    %135 = vector.shape_cast %11 : vector<1x16xi1> to vector<1x16xi1>
    %136 = vector.broadcast %135 : vector<1x16xi1> to vector<8x16xi1>
    %137 = vector.broadcast %cst_62 : f32 to vector<8x16xf32>
    %138 = arith.select %136, %134, %137 : vector<8x16xi1>, vector<8x16xf32>
    %cst_63 = arith.constant dense<0xFF800000> : vector<8xf32>
    %139 = vector.multi_reduction <maximumf>, %138, %cst_63 [1] : vector<8x16xf32> to vector<8xf32>
    %140 = vector.shape_cast %139 : vector<8xf32> to vector<8x1xf32>
    %141 = vector.broadcast %140 : vector<8x1xf32> to vector<8x16xf32>
    %142 = arith.subf %138, %141 : vector<8x16xf32>
    %143 = math.exp %142 : vector<8x16xf32>
    %cst_64 = arith.constant dense<0.000000e+00> : vector<8xf32>
    %144 = vector.multi_reduction <add>, %143, %cst_64 [1] : vector<8x16xf32> to vector<8xf32>
    %145 = vector.shape_cast %144 : vector<8xf32> to vector<8x1xf32>
    %146 = tpu.reciprocal %145 {approx = true} : vector<8x1xf32> -> vector<8x1xf32>
    %147 = vector.broadcast %146 : vector<8x1xf32> to vector<8x16xf32>
    %148 = arith.mulf %143, %147 : vector<8x16xf32>
    %149 = arith.truncf %148 : vector<8x16xf32> to vector<8x16xbf16>
    %150 = vector.extract_strided_slice %131 {offsets = [0, 0], sizes = [16, 128], strides = [1, 1]} : vector<16x256xbf16> to vector<16x128xbf16>
    %cst_65 = arith.constant dense<0.000000e+00> : vector<8x128xf32>
    %151 = tpu.matmul %149, %150, %cst_65 {dimension_numbers = #tpu.dot_dimension_numbers<[1], [0], [0], [1], [0, 0, 1, 1], [], []>} : vector<8x16xbf16>, vector<16x128xbf16>, vector<8x128xf32> -> vector<8x128xf32>
    %152 = vector.extract_strided_slice %129 {offsets = [0, 128], sizes = [8, 128], strides = [1, 1]} : vector<8x256xbf16> to vector<8x128xbf16>
    %153 = vector.extract_strided_slice %130 {offsets = [0, 128], sizes = [16, 128], strides = [1, 1]} : vector<16x256xbf16> to vector<16x128xbf16>
    "tpu.trace_start"() <{level = 10 : i32, message = "qd,kd->qk"}> : () -> ()
    %cst_66 = arith.constant dense<0.000000e+00> : vector<8x16xf32>
    %154 = tpu.matmul %152, %153, %cst_66 {dimension_numbers = #tpu.dot_dimension_numbers<[1], [1], [0], [0], [0, 0, 1, 0], [], []>} : vector<8x128xbf16>, vector<16x128xbf16>, vector<8x16xf32> -> vector<8x16xf32>
    %cst_67 = arith.constant -1.000000e+09 : f32
    "tpu.trace_stop"() : () -> ()
    %155 = vector.shape_cast %11 : vector<1x16xi1> to vector<1x16xi1>
    %156 = vector.broadcast %155 : vector<1x16xi1> to vector<8x16xi1>
    %157 = vector.broadcast %cst_67 : f32 to vector<8x16xf32>
    %158 = arith.select %156, %154, %157 : vector<8x16xi1>, vector<8x16xf32>
    %cst_68 = arith.constant dense<0xFF800000> : vector<8xf32>
    %159 = vector.multi_reduction <maximumf>, %158, %cst_68 [1] : vector<8x16xf32> to vector<8xf32>
    %160 = vector.shape_cast %159 : vector<8xf32> to vector<8x1xf32>
    %161 = vector.broadcast %160 : vector<8x1xf32> to vector<8x16xf32>
    %162 = arith.subf %158, %161 : vector<8x16xf32>
    %163 = math.exp %162 : vector<8x16xf32>
    %cst_69 = arith.constant dense<0.000000e+00> : vector<8xf32>
    %164 = vector.multi_reduction <add>, %163, %cst_69 [1] : vector<8x16xf32> to vector<8xf32>
    %165 = vector.shape_cast %164 : vector<8xf32> to vector<8x1xf32>
    %166 = tpu.reciprocal %165 {approx = true} : vector<8x1xf32> -> vector<8x1xf32>
    %167 = vector.broadcast %166 : vector<8x1xf32> to vector<8x16xf32>
    %168 = arith.mulf %163, %167 : vector<8x16xf32>
    %169 = arith.truncf %168 : vector<8x16xf32> to vector<8x16xbf16>
    %170 = vector.extract_strided_slice %131 {offsets = [0, 128], sizes = [16, 128], strides = [1, 1]} : vector<16x256xbf16> to vector<16x128xbf16>
    %cst_70 = arith.constant dense<0.000000e+00> : vector<8x128xf32>
    %171 = tpu.matmul %169, %170, %cst_70 {dimension_numbers = #tpu.dot_dimension_numbers<[1], [0], [0], [1], [0, 0, 1, 1], [], []>} : vector<8x16xbf16>, vector<16x128xbf16>, vector<8x128xf32> -> vector<8x128xf32>
    %172 = tpu.concatenate %151, %171 in 1 : vector<8x128xf32>, vector<8x128xf32> -> vector<8x256xf32>
    %173 = arith.truncf %172 : vector<8x256xf32> to vector<8x256xbf16>
    %c0_71 = arith.constant 0 : index
    %c0_72 = arith.constant 0 : index
    %174 = vector.load %arg15[%c0_71, %c0_72] : memref<256x256xbf16, #tpu.memory_space<vmem>>, vector<256x256xbf16>
    %cst_73 = arith.constant dense<0.000000e+00> : vector<8x256xf32>
    %175 = tpu.matmul %173, %174, %cst_73 {dimension_numbers = #tpu.dot_dimension_numbers<[1], [0], [0], [1], [0, 0, 1, 1], [], []>} : vector<8x256xbf16>, vector<256x256xbf16>, vector<8x256xf32> -> vector<8x256xf32>
    %c0_74 = arith.constant 0 : index
    %c0_75 = arith.constant 0 : index
    %176 = vector.load %arg16[%c0_74, %c0_75] : memref<1x256xf32, #tpu.memory_space<vmem>>, vector<1x256xf32>
    %177 = vector.broadcast %176 : vector<1x256xf32> to vector<8x256xf32>
    %178 = arith.addf %175, %177 : vector<8x256xf32>
    %179 = arith.addf %91, %178 : vector<8x256xf32>
    %c0_76 = arith.constant 0 : index
    %c0_77 = arith.constant 0 : index
    %180 = vector.load %arg23[%c0_76, %c0_77] : memref<1x256xf32, #tpu.memory_space<vmem>>, vector<1x256xf32>
    %c0_78 = arith.constant 0 : index
    %c0_79 = arith.constant 0 : index
    %181 = vector.load %arg24[%c0_78, %c0_79] : memref<1x256xf32, #tpu.memory_space<vmem>>, vector<1x256xf32>
    %cst_80 = arith.constant dense<0.000000e+00> : vector<8xf32>
    %182 = vector.multi_reduction <add>, %179, %cst_80 [1] : vector<8x256xf32> to vector<8xf32>
    %183 = vector.shape_cast %182 : vector<8xf32> to vector<8x1xf32>
    %cst_81 = arith.constant 2.560000e+02 : f32
    %184 = vector.broadcast %cst_81 : f32 to vector<8x1xf32>
    %185 = arith.divf %183, %184 : vector<8x1xf32>
    %186 = vector.broadcast %185 : vector<8x1xf32> to vector<8x256xf32>
    %187 = arith.subf %179, %186 : vector<8x256xf32>
    %188 = arith.mulf %187, %187 : vector<8x256xf32>
    %cst_82 = arith.constant dense<0.000000e+00> : vector<8xf32>
    %189 = vector.multi_reduction <add>, %188, %cst_82 [1] : vector<8x256xf32> to vector<8xf32>
    %190 = vector.shape_cast %189 : vector<8xf32> to vector<8x1xf32>
    %cst_83 = arith.constant 0.00392156886 : f32
    %191 = vector.broadcast %cst_83 : f32 to vector<8x1xf32>
    %192 = arith.mulf %190, %191 : vector<8x1xf32>
    %193 = math.sqrt %192 : vector<8x1xf32>
    %cst_84 = arith.constant 9.99999997E-7 : f32
    %194 = vector.broadcast %cst_84 : f32 to vector<8x1xf32>
    %195 = arith.addf %193, %194 : vector<8x1xf32>
    %196 = vector.broadcast %195 : vector<8x1xf32> to vector<8x256xf32>
    %197 = arith.divf %187, %196 : vector<8x256xf32>
    %198 = vector.broadcast %180 : vector<1x256xf32> to vector<8x256xf32>
    %199 = arith.mulf %198, %197 : vector<8x256xf32>
    %200 = vector.broadcast %181 : vector<1x256xf32> to vector<8x256xf32>
    %201 = arith.addf %199, %200 : vector<8x256xf32>
    %202 = arith.truncf %201 : vector<8x256xf32> to vector<8x256xbf16>
    %c0_85 = arith.constant 0 : index
    %c0_86 = arith.constant 0 : index
    %203 = vector.load %arg19[%c0_85, %c0_86] : memref<256x512xbf16, #tpu.memory_space<vmem>>, vector<256x512xbf16>
    %cst_87 = arith.constant dense<0.000000e+00> : vector<8x512xf32>
    %204 = tpu.matmul %202, %203, %cst_87 {dimension_numbers = #tpu.dot_dimension_numbers<[1], [0], [0], [1], [0, 0, 1, 1], [], []>} : vector<8x256xbf16>, vector<256x512xbf16>, vector<8x512xf32> -> vector<8x512xf32>
    %c0_88 = arith.constant 0 : index
    %c0_89 = arith.constant 0 : index
    %205 = vector.load %arg20[%c0_88, %c0_89] : memref<1x512xf32, #tpu.memory_space<vmem>>, vector<1x512xf32>
    %206 = vector.broadcast %205 : vector<1x512xf32> to vector<8x512xf32>
    %207 = arith.addf %204, %206 : vector<8x512xf32>
    %cst_90 = arith.constant 0.000000e+00 : f32
    %208 = vector.broadcast %cst_90 : f32 to vector<8x512xf32>
    %209 = arith.maximumf %207, %208 : vector<8x512xf32>
    %210 = arith.truncf %209 : vector<8x512xf32> to vector<8x512xbf16>
    %c0_91 = arith.constant 0 : index
    %c0_92 = arith.constant 0 : index
    %211 = vector.load %arg21[%c0_91, %c0_92] : memref<512x256xbf16, #tpu.memory_space<vmem>>, vector<512x256xbf16>
    %cst_93 = arith.constant dense<0.000000e+00> : vector<8x256xf32>
    %212 = tpu.matmul %210, %211, %cst_93 {dimension_numbers = #tpu.dot_dimension_numbers<[1], [0], [0], [1], [0, 0, 1, 1], [], []>} : vector<8x512xbf16>, vector<512x256xbf16>, vector<8x256xf32> -> vector<8x256xf32>
    %c0_94 = arith.constant 0 : index
    %c0_95 = arith.constant 0 : index
    %213 = vector.load %arg22[%c0_94, %c0_95] : memref<1x256xf32, #tpu.memory_space<vmem>>, vector<1x256xf32>
    %214 = vector.broadcast %213 : vector<1x256xf32> to vector<8x256xf32>
    %215 = arith.addf %212, %214 : vector<8x256xf32>
    %216 = arith.addf %179, %215 : vector<8x256xf32>
    %c0_96 = arith.constant 0 : index
    %c0_97 = arith.constant 0 : index
    %c0_98 = arith.constant 0 : index
    %217 = vector.load %arg25[%c0_96, %c0_97, %c0_98] : memref<1x8x256xf32, #tpu.memory_space<vmem>>, vector<1x8x256xf32>
    %218 = vector.shape_cast %217 : vector<1x8x256xf32> to vector<8x256xf32>
    %219 = vector.shape_cast %216 : vector<8x256xf32> to vector<1x8x256xf32>
    tpu.vector_store %arg25[%c0_96, %c0_97, %c0_98], %219 {strides = array<i32>} : memref<1x8x256xf32, #tpu.memory_space<vmem>>, vector<1x8x256xf32>,
    return
  }
  func.func @transform_0(%arg0: i32) -> (i32, i32, i32) {
    %c0_i32 = arith.constant 0 : i32
    %c0_i32_0 = arith.constant 0 : i32
    %c0_i32_1 = arith.constant 0 : i32
    return %arg0, %c0_i32, %c0_i32_0 : i32, i32, i32
  }
  func.func @transform_1(%arg0: i32) -> (i32, i32, i32) {
    %c0_i32 = arith.constant 0 : i32
    %c0_i32_0 = arith.constant 0 : i32
    %c0_i32_1 = arith.constant 0 : i32
    return %arg0, %c0_i32, %c0_i32_0 : i32, i32, i32
  }
  func.func @transform_2(%arg0: i32) -> (i32, i32, i32) {
    %c0_i32 = arith.constant 0 : i32
    %c0_i32_0 = arith.constant 0 : i32
    %c0_i32_1 = arith.constant 0 : i32
    %c0_i32_2 = arith.constant 0 : i32
    return %c0_i32, %c0_i32_0, %c0_i32_1 : i32, i32, i32
  }
  func.func @transform_3(%arg0: i32) -> (i32, i32, i32) {
    %c0_i32 = arith.constant 0 : i32
    %c0_i32_0 = arith.constant 0 : i32
    %c0_i32_1 = arith.constant 0 : i32
    return %arg0, %c0_i32, %c0_i32_0 : i32, i32, i32
  }
  func.func @transform_4(%arg0: i32) -> (i32, i32) {
    %c0_i32 = arith.constant 0 : i32
    %c0_i32_0 = arith.constant 0 : i32
    %c0_i32_1 = arith.constant 0 : i32
    return %c0_i32, %c0_i32_0 : i32, i32
  }
  func.func @transform_5(%arg0: i32) -> (i32, i32) {
    %c0_i32 = arith.constant 0 : i32
    %c0_i32_0 = arith.constant 0 : i32
    %c0_i32_1 = arith.constant 0 : i32
    return %c0_i32, %c0_i32_0 : i32, i32
  }
  func.func @transform_6(%arg0: i32) -> (i32, i32) {
    %c0_i32 = arith.constant 0 : i32
    %c0_i32_0 = arith.constant 0 : i32
    %c0_i32_1 = arith.constant 0 : i32
    return %c0_i32, %c0_i32_0 : i32, i32
  }
  func.func @transform_7(%arg0: i32) -> (i32, i32) {
    %c0_i32 = arith.constant 0 : i32
    %c0_i32_0 = arith.constant 0 : i32
    %c0_i32_1 = arith.constant 0 : i32
    return %c0_i32, %c0_i32_0 : i32, i32
  }
  func.func @transform_8(%arg0: i32) -> (i32, i32) {
    %c0_i32 = arith.constant 0 : i32
    %c0_i32_0 = arith.constant 0 : i32
    %c0_i32_1 = arith.constant 0 : i32
    return %c0_i32, %c0_i32_0 : i32, i32
  }
  func.func @transform_9(%arg0: i32) -> (i32, i32) {
    %c0_i32 = arith.constant 0 : i32
    %c0_i32_0 = arith.constant 0 : i32
    %c0_i32_1 = arith.constant 0 : i32
    return %c0_i32, %c0_i32_0 : i32, i32
  }
  func.func @transform_10(%arg0: i32) -> (i32, i32) {
    %c0_i32 = arith.constant 0 : i32
    %c0_i32_0 = arith.constant 0 : i32
    %c0_i32_1 = arith.constant 0 : i32
    return %c0_i32, %c0_i32_0 : i32, i32
  }
  func.func @transform_11(%arg0: i32) -> (i32, i32) {
    %c0_i32 = arith.constant 0 : i32
    %c0_i32_0 = arith.constant 0 : i32
    %c0_i32_1 = arith.constant 0 : i32
    return %c0_i32, %c0_i32_0 : i32, i32
  }
  func.func @transform_12(%arg0: i32) -> (i32, i32) {
    %c0_i32 = arith.constant 0 : i32
    %c0_i32_0 = arith.constant 0 : i32
    %c0_i32_1 = arith.constant 0 : i32
    return %c0_i32, %c0_i32_0 : i32, i32
  }
  func.func @transform_13(%arg0: i32) -> (i32, i32) {
    %c0_i32 = arith.constant 0 : i32
    %c0_i32_0 = arith.constant 0 : i32
    %c0_i32_1 = arith.constant 0 : i32
    return %c0_i32, %c0_i32_0 : i32, i32
  }
  func.func @transform_14(%arg0: i32) -> (i32, i32) {
    %c0_i32 = arith.constant 0 : i32
    %c0_i32_0 = arith.constant 0 : i32
    %c0_i32_1 = arith.constant 0 : i32
    return %c0_i32, %c0_i32_0 : i32, i32
  }
  func.func @transform_15(%arg0: i32) -> (i32, i32) {
    %c0_i32 = arith.constant 0 : i32
    %c0_i32_0 = arith.constant 0 : i32
    %c0_i32_1 = arith.constant 0 : i32
    return %c0_i32, %c0_i32_0 : i32, i32
  }
  func.func @transform_16(%arg0: i32) -> (i32, i32) {
    %c0_i32 = arith.constant 0 : i32
    %c0_i32_0 = arith.constant 0 : i32
    %c0_i32_1 = arith.constant 0 : i32
    return %c0_i32, %c0_i32_0 : i32, i32
  }
  func.func @transform_17(%arg0: i32) -> (i32, i32) {
    %c0_i32 = arith.constant 0 : i32
    %c0_i32_0 = arith.constant 0 : i32
    %c0_i32_1 = arith.constant 0 : i32
    return %c0_i32, %c0_i32_0 : i32, i32
  }
  func.func @transform_18(%arg0: i32) -> (i32, i32) {
    %c0_i32 = arith.constant 0 : i32
    %c0_i32_0 = arith.constant 0 : i32
    %c0_i32_1 = arith.constant 0 : i32
    return %c0_i32, %c0_i32_0 : i32, i32
  }
  func.func @transform_19(%arg0: i32) -> (i32, i32) {
    %c0_i32 = arith.constant 0 : i32
    %c0_i32_0 = arith.constant 0 : i32
    %c0_i32_1 = arith.constant 0 : i32
    return %c0_i32, %c0_i32_0 : i32, i32
  }
  func.func @transform_20(%arg0: i32) -> (i32, i32) {
    %c0_i32 = arith.constant 0 : i32
    %c0_i32_0 = arith.constant 0 : i32
    %c0_i32_1 = arith.constant 0 : i32
    return %c0_i32, %c0_i32_0 : i32, i32
  }
  func.func @transform_21(%arg0: i32) -> (i32, i32) {
    %c0_i32 = arith.constant 0 : i32
    %c0_i32_0 = arith.constant 0 : i32
    %c0_i32_1 = arith.constant 0 : i32
    return %c0_i32, %c0_i32_0 : i32, i32
  }
  func.func @transform_22(%arg0: i32) -> (i32, i32) {
    %c0_i32 = arith.constant 0 : i32
    %c0_i32_0 = arith.constant 0 : i32
    %c0_i32_1 = arith.constant 0 : i32
    return %c0_i32, %c0_i32_0 : i32, i32
  }
  func.func @transform_23(%arg0: i32) -> (i32, i32) {
    %c0_i32 = arith.constant 0 : i32
    %c0_i32_0 = arith.constant 0 : i32
    %c0_i32_1 = arith.constant 0 : i32
    return %c0_i32, %c0_i32_0 : i32, i32
  }
  func.func @transform_24(%arg0: i32) -> (i32, i32, i32) {
    %c0_i32 = arith.constant 0 : i32
    %c0_i32_0 = arith.constant 0 : i32
    %c0_i32_1 = arith.constant 0 : i32
    return %arg0, %c0_i32, %c0_i32_0 : i32, i32, i32
  }
}

</mosaic_0001>

<bundles_post_ra>
// kernel: tpu_custom_call.1
= control target key start
LH: loop header
LB: loop body
LE: loop exit
PB: predicated region body
PF: predicated region fallthrough
CT: control target
= control target key end

     0   :  { %s8101_s0 = inlined_call_operand.hbm [shape: f32[2,8,256], index: 0, kind: input, shape index: {}]   ;;  %s8102_s1 = inlined_call_operand.hbm [shape: bf16[2,16,256], index: 1, kind: input, shape index: {}]   ;;  %s8103_s2 = inlined_call_operand.hbm [shape: s32[1,8,8], index: 2, kind: input, shape index: {}]   ;;  %s8104_s3 = inlined_call_operand.hbm [shape: s32[2,1,16], index: 3, kind: input, shape index: {}]   ;;  %s8105_s4 = inlined_call_operand.hbm [shape: bf16[256,768], index: 4, kind: input, shape index: {}]   ;;  %s8106_s5 = inlined_call_operand.hbm [shape: f32[1,768], index: 5, kind: input, shape index: {}]   ;;  %s8107_s6 = inlined_call_operand.hbm [shape: bf16[256,256], index: 6, kind: input, shape index: {}]   ;;  %s8108_s7 = inlined_call_operand.hbm [shape: f32[1,256], index: 7, kind: input, shape index: {}]   ;;  %s8109_s8 = inlined_call_operand.hbm [shape: f32[1,256], index: 8, kind: input, shape index: {}]   ;;  %s8110_s9 = inlined_call_operand.hbm [shape: f32[1,256], index: 9, kind: input, shape index: {}]   ;;  %s8111_s10 = inlined_call_operand.hbm [shape: bf16[256,256], index: 10, kind: input, shape index: {}]   ;;  %s8112_s11 = inlined_call_operand.vmem [shape: f32[1,256], index: 11, kind: input, shape index: {}]   ;;  %s8113_s12 = inlined_call_operand.hbm [shape: bf16[256,512], index: 12, kind: input, shape index: {}]   ;;  %s8114_s13 = inlined_call_operand.vmem [shape: f32[1,512], index: 13, kind: input, shape index: {}]   ;;  %s8115_s14 = inlined_call_operand.hbm [shape: bf16[256,256], index: 14, kind: input, shape index: {}]   ;;  %s8116_s15 = inlined_call_operand.vmem [shape: f32[1,256], index: 15, kind: input, shape index: {}]   ;;  %s8117_s16 = inlined_call_operand.vmem [shape: f32[1,256], index: 16, kind: input, shape index: {}]   ;;  %s8118_s17 = inlined_call_operand.vmem [shape: f32[1,256], index: 17, kind: input, shape index: {}]   ;;  %s8119_s18 = inlined_call_operand.hbm [shape: bf16[256,512], index: 18, kind: input, shape index: {}]   ;;  %s8120_s19 = inlined_call_operand.vmem [shape: f32[1,512], index: 19, kind: input, shape index: {}]   ;;  %s8121_s20 = inlined_call_operand.hbm [shape: bf16[512,256], index: 20, kind: input, shape index: {}]   ;;  %s8122_s21 = inlined_call_operand.vmem [shape: f32[1,256], index: 21, kind: input, shape index: {}]   ;;  %s8123_s22 = inlined_call_operand.vmem [shape: f32[1,256], index: 22, kind: input, shape index: {}]   ;;  %s8124_s23 = inlined_call_operand.vmem [shape: f32[1,256], index: 23, kind: input, shape index: {}]   ;;  %s8125_s24 = inlined_call_operand.hbm [shape: f32[2,8,256], index: 24, kind: output, shape index: {}]  }
   0x1   :  { %8133 = sst [smem:[#allocation39_spill]] %s8101_s0 }
   0x2   :  { %8134 = sst [smem:[#allocation40_spill]] %s8102_s1 }
   0x3   :  { %8135 = sst [smem:[#allocation41_spill]] %s8103_s2 }
   0x4   :  { %8136 = sst [smem:[#allocation42_spill]] %s8104_s3 }
   0x5   :  { %8137 = sst [smem:[#allocation43_spill]] %s8105_s4 }
   0x6   :  { %8138 = sst [smem:[#allocation44_spill]] %s8106_s5 }
   0x7   :  { %8139 = sst [smem:[#allocation45_spill]] %s8107_s6 }
   0x8   :  { %8140 = sst [smem:[#allocation46_spill]] %s8108_s7 }
   0x9   :  { %8141 = sst [smem:[#allocation47_spill]] %s8109_s8 }
   0xa   :  { %8142 = sst [smem:[#allocation48_spill]] %s8110_s9 }
   0xb   :  { %8143 = sst [smem:[#allocation49_spill]] %s8111_s10 }
   0xc   :  { %8144 = sst [smem:[#allocation50_spill]] %s8112_s11 }
   0xd   :  { %8145 = sst [smem:[#allocation51_spill]] %s8113_s12 }
   0xe   :  { %8146 = sst [smem:[#allocation52_spill]] %s8114_s13 }
   0xf   :  { %8147 = sst [smem:[#allocation53_spill]] %s8115_s14 }
  0x10   :  { %8148 = sst [smem:[#allocation54_spill]] %s8116_s15 }
  0x11   :  { %8149 = sst [smem:[#allocation55_spill]] %s8118_s17 }
  0x12   :  { %8150 = sst [smem:[#allocation56_spill]] %s8119_s18 }
  0x13   :  { %8151 = sst [smem:[#allocation57_spill]] %s8120_s19 }
  0x14   :  { %8152 = sst [smem:[#allocation58_spill]] %s8121_s20 }
  0x15   :  { %8153 = sst [smem:[#allocation59_spill]] %s8122_s21 }
  0x16   :  { %8154 = sst [smem:[#allocation60_spill]] %s8123_s22 }
  0x17   :  { %8155 = sst [smem:[#allocation61_spill]] %s8124_s23 }
  0x18   :  { %8156 = sst [smem:[#allocation62_spill]] %s8125_s24 }
  0x19   :  { %29 = vsyncpa [#allocation3], 0 }
  0x1a   :  { %31 = vsyncpa [#allocation3 + $0x1], 0 }
  0x1b   :  { %32 = vsyncpa [#allocation6], 0 }
  0x1c   :  { %34 = vsyncpa [#allocation6 + $0x1], 0 }
  0x1d   :  { %35 = vsyncpa [#allocation9], 0 }
  0x1e   :  { %37 = vsyncpa [#allocation9 + $0x1], 0 }
  0x1f   :  { %38 = vsyncpa [#allocation12], 0 }
  0x20   :  { %39 = vsyncpa [#allocation15], 0 }
  0x21   :  { %40 = vsyncpa [#allocation18], 0 }
  0x22   :  { %41 = vsyncpa [#allocation21], 0 }
  0x23   :  { %42 = vsyncpa [#allocation24], 0 }
  0x24   :  { %43 = vsyncpa [#allocation4], 0 }
  0x25   :  { %45 = vsyncpa [#allocation4 + $0x1], 0  ;;  %s7601_s5 = smov 0   ;;  %s7603_s26 = smov 0  }
  0x26   :  { %s7605_s27 = smov 0   ;;  %s7607_s28 = smov 0  }
  0x27 LB: > { %s8157_s29 = sld [smem:[#allocation41_spill]]  ;;  %s7625_s7 = sadd.s32 4294967295, %s7454_s28   ;;  %s7454_s28 = sphi %s7607_s28, %s8196_s28   ;;  %s7450_s27 = sphi %s7605_s27, %s8195_s27   ;;  %s7446_s26 = sphi %s7603_s26, %s8194_s26   ;;  %s7442_s5 = sphi %s7601_s5, %s8193_s5  }
  0x28   : > { %p4707_p0 = scmp.ge.s32.totalorder %s7454_s28, 1  ;;  %p72_p1 = scmp.eq.s32.totalorder %s7625_s7, 0 }
  0x29   : > { %p601_p2 = scmp.lt.s32.totalorder %s7454_s28, 3  ;;  %s7456_s3 = smov [#allocation7]  }
  0x2a   : > { %s615_s25 = sshll.u32 %s7456_s3, 4  ;;  %s8159_s1 = sld [smem:[#allocation43_spill]]  ;;  %s616_s25 = int_to_ptr.vmem [resolvable:$true] %s615_s25 }
  0x2b   : > { %p7630_p3 = pnand %p4707_p0, %p601_p2  ;;  %s7458_s3 = smov 384  }
  0x2c   : > { %s7459_s21 = smov 24   ;;  %s7460_s23 = smov [#allocation11]  }
  0x2d   : > { %s613_s0 = sshll.u32 %s8157_s29, 4  ;;  %p6741_p5 = pneg %p7630_p3  ;;  %s614_s0 = int_to_ptr.hbm [resolvable:$true] %s613_s0 }
  0x2e   : > { %s7457_s29 = smov [#allocation10]   ;;  %s641_s22 = sshll.u32 %s7460_s23, 4  ;;  %s642_s22 = int_to_ptr.vmem [resolvable:$true] %s641_s22 }
  0x2f   : > { %p7642_p6 = pnand %p6741_p5, %p72_p1  ;;  %s626_s24 = sshll.u32 %s7457_s29, 4  ;;  %s627_s24 = int_to_ptr.vmem [resolvable:$true] %s626_s24 }
  0x30   : > { %s624_s6 = sshll.u32 %s8159_s1, 4  ;;  %s8161_s1 = sld [smem:[#allocation44_spill]]  ;;  %s625_s6 = int_to_ptr.hbm [resolvable:$true] %s624_s6 }
  0x31   : > { %6744 = dma.hbm_to_vmem [thread:$0]  (!%p7642_p6), %s614_s0, 128, %s616_s25, [#allocation6]  }
  0x32   : > { %6747 = dma.hbm_to_vmem [thread:$0]  (!%p7642_p6), %s625_s6, 12288, %s627_s24, [#allocation9], %s7458_s3, %s7458_s3, %s7459_s21  }
  0x33   : > { %s8162_s29 = sld [smem:[#allocation46_spill]]  ;;  %s7461_s0 = smov [#allocation14]  }
  0x34   : > { %s667_s25 = sshll.u32 %s7461_s0, 4  ;;  %s8163_s9 = sld [smem:[#allocation48_spill]]  ;;  %s668_s25 = int_to_ptr.vmem [resolvable:$true] %s667_s25 }
  0x35   : > { %s8164_s12 = sld [smem:[#allocation51_spill]]  ;;  %s7462_s11 = smov [#allocation17]  }
  0x36   : > { %s639_s19 = sshll.u32 %s8161_s1, 4  ;;  %s691_s15 = sshll.u32 %s7462_s11, 4  ;;  %s640_s19 = int_to_ptr.hbm [resolvable:$true] %s639_s19  ;;  %s692_s15 = int_to_ptr.vmem [resolvable:$true] %s691_s15 }
  0x37   : > { %6750 = dma.hbm_to_vmem [thread:$0]  (!%p7642_p6), %s640_s19, 96, %s642_s22, [#allocation12]  }
  0x38   : > { %s7463_s19 = smov [#allocation20]   ;;  %s7464_s17 = smov 256  }
  0x39   : > { %s665_s13 = sshll.u32 %s8162_s29, 4  ;;  %s719_s22 = sshll.u32 %s7463_s19, 4  ;;  %s666_s13 = int_to_ptr.hbm [resolvable:$true] %s665_s13  ;;  %s720_s22 = int_to_ptr.vmem [resolvable:$true] %s719_s22 }
  0x3a   : > { %s689_s24 = sshll.u32 %s8163_s9, 4  ;;  %s7465_s8 = smov 16   ;;  %s690_s24 = int_to_ptr.hbm [resolvable:$true] %s689_s24 }
  0x3b   : > { %6756 = dma.hbm_to_vmem [thread:$0]  (!%p7642_p6), %s666_s13, 32, %s668_s25, [#allocation15]  }
  0x3c   : > { %s717_s3 = sshll.u32 %s8164_s12, 4  ;;  %s8165_s18 = sld [smem:[#allocation56_spill]]  ;;  %s718_s3 = int_to_ptr.hbm [resolvable:$true] %s717_s3 }
  0x3d   : > { %6762 = dma.hbm_to_vmem [thread:$0]  (!%p7642_p6), %s690_s24, 32, %s692_s15, [#allocation18]  }
  0x3e   : > { %6768 = dma.hbm_to_vmem [thread:$0]  (!%p7642_p6), %s718_s3, 8192, %s720_s22, [#allocation21], %s7464_s17, %s7464_s17, %s7465_s8  }
  0x3f   : > { %s7466_s29 = smov [#allocation23]   ;;  %s8166_s23 = sld [smem:[#allocation45_spill]] }
  0x40   : > { %s759_s0 = sshll.u32 %s7466_s29, 4  ;;  %s7467_s6 = smov [#allocation13]   ;;  %s760_s0 = int_to_ptr.vmem [resolvable:$true] %s759_s0 }
  0x41   : > { %s652_s11 = sshll.u32 %s7467_s6, 4  ;;  %s8130_s3 = smov 128   ;;  %s653_s11 = int_to_ptr.vmem [resolvable:$true] %s652_s11 }
  0x42   : > { %s757_s1 = sshll.u32 %s8165_s18, 4  ;;  %s8131_s15 = smov 8   ;;  %s758_s1 = int_to_ptr.hbm [resolvable:$true] %s757_s1 }
  0x43   : > { %6774 = dma.hbm_to_vmem [thread:$0]  (!%p7642_p6), %s758_s1, 8192, %s760_s0, [#allocation24], %s7464_s17, %s7464_s17, %s7465_s8  }
  0x44   : > { %s8167_s13 = sld [smem:[#allocation47_spill]]  ;;  %s7470_s29 = smov [#allocation16]  }
  0x45   : > { %s650_s24 = sshll.u32 %s8166_s23, 4  ;;  %s679_s25 = sshll.u32 %s7470_s29, 4  ;;  %s651_s24 = int_to_ptr.hbm [resolvable:$true] %s650_s24  ;;  %s680_s25 = int_to_ptr.vmem [resolvable:$true] %s679_s25 }
  0x46   : > { %6753 = dma.hbm_to_vmem [thread:$0]  (!%p7642_p6), %s651_s24, 4096, %s653_s11, [#allocation12], %s8130_s3, %s8130_s3, %s8131_s15  }
  0x47   : > { %s8168_s10 = sld [smem:[#allocation49_spill]]  ;;  %s7471_s0 = smov [#allocation19]  }
  0x48   : > { %s702_s21 = sshll.u32 %s7471_s0, 4  ;;  %s8169_s14 = sld [smem:[#allocation53_spill]]  ;;  %s703_s21 = int_to_ptr.vmem [resolvable:$true] %s702_s21 }
  0x49   : > { %s8170_s20 = sld [smem:[#allocation58_spill]]  ;;  %s7473_s29 = smov [#allocation25]  }
  0x4a   : > { %s677_s4 = sshll.u32 %s8167_s13, 4  ;;  %s7472_s13 = smov [#allocation22]   ;;  %s678_s4 = int_to_ptr.hbm [resolvable:$true] %s677_s4 }
  0x4b   : > { %6759 = dma.hbm_to_vmem [thread:$0]  (!%p7642_p6), %s678_s4, 32, %s680_s25, [#allocation15]  }
  0x4c   : > { %s736_s4 = sshll.u32 %s7472_s13, 4  ;;  %s776_s25 = sshll.u32 %s7473_s29, 4  ;;  %s737_s4 = int_to_ptr.vmem [resolvable:$true] %s736_s4  ;;  %s777_s25 = int_to_ptr.vmem [resolvable:$true] %s776_s25 }
  0x4d   : > { %s700_s1 = sshll.u32 %s8168_s10, 4  ;;  %s4706_s17 = sadd.s32 4294967294, %s7454_s28   ;;  %s701_s1 = int_to_ptr.hbm [resolvable:$true] %s700_s1 }
  0x4e   : > { %s734_s6 = sshll.u32 %s8169_s14, 4  ;;  %s7714_s8 = sadd.s32 1, %s7454_s28   ;;  %s735_s6 = int_to_ptr.hbm [resolvable:$true] %s734_s6 }
  0x4f   : > { %6765 = dma.hbm_to_vmem [thread:$0]  (!%p7642_p6), %s701_s1, 4096, %s703_s21, [#allocation18], %s8130_s3, %s8130_s3, %s8131_s15  }
  0x50   : > { %s774_s22 = sshll.u32 %s8170_s20, 4  ;;  %s55_s1 = ssub.s32 %s7454_s28, %s7714_s8  ;;  %s775_s22 = int_to_ptr.hbm [resolvable:$true] %s774_s22 }
  0x51   : > { %6771 = dma.hbm_to_vmem [thread:$0]  (!%p7642_p6), %s735_s6, 4096, %s737_s4, [#allocation21], %s8130_s3, %s8130_s3, %s8131_s15  }
  0x52   : > { %6777 = dma.hbm_to_vmem [thread:$0]  (!%p7642_p6), %s775_s22, 8192, %s777_s25, [#allocation24], %s8130_s3, %s8130_s3, %s8131_s15  }
  0x53   : > { %s58_s0 = sadd.s32 1, %s7450_s27  ;;  %p56_p7 = scmp.eq.s32.totalorder %s55_s1, 0 }
  0x54   : > { %p65_p8 = scmp.ne.s32.totalorder %s7450_s27, %s7446_s26  ;;  %p66_p9 = scmp.eq.s32.totalorder %s7454_s28, 0 }
  0x55   : > { %p71_p10 = scmp.ne.s32.totalorder %s7446_s26, %s7442_s5  ;;  %p588_p13 = scmp.eq.s32.totalorder %s7625_s7, 1 }
  0x56   : > { %s7725_s21 = scalar_select %p56_p7, %s7450_s27, %s58_s0  }
  0x57   : > { %p7727_p11 = por %p66_p9, %p65_p8  ;;  %p7733_p12 = por %p72_p1, %p71_p10 }
  0x58   : > { %8171 = sst [smem:[#allocation38_spill]] %s7725_s21  ;;  %p594_p0 = scmp.eq.s32.totalorder %s4706_s17, 1 }
  0x59   : > { %p6804_p2 = scmp.lt.s32.totalorder %s7454_s28, 2  ;;  %s7740_s24 = sand.u32 1, %s7450_s27  }
  0x5a   : > { %p7742_p5 = por %p588_p13, %p65_p8  ;;  %p7746_p6 = por %p594_p0, %p71_p10 }
  0x5b   : > { %s4721_s19 = sshll.u32 %s7740_s24, 4  ;;  %s6296_s22 = sshll.u32 %s7454_s28, 4 }
  0x5c   : > { %s8176_s29 = sld [smem:[#allocation39_spill]]  ;;  %s803_s17 = scalar_lea.vmem [#allocation2], %s4721_s19 }
  0x5d   : > { %s812_s1 = sshll.u32 %s803_s17, 4  ;;  %p7757_p7 = pnand %p6804_p2, %p7727_p11  ;;  %s813_s1 = int_to_ptr.vmem [resolvable:$true] %s812_s1 }
  0x5e   : > { %s8178_s10 = sld [smem:[#allocation40_spill]]  ;;  %s800_s18 = scalar_lea.sflag [#allocation3], %s7740_s24 }
  0x5f   : > { %p7266_p9 = pneg %p7757_p7 }
  0x62   : > { %s808_s25 = scalar_lea.hbm %s8176_s29, %s6296_s22  ;;  %s7269_s17 = scalar_lea.hbm %s8176_s29, 32 }
  0x63   : > { %s810_s0 = sshll.u32 %s808_s25, 4  ;;  %s811_s0 = int_to_ptr.hbm [resolvable:$true] %s810_s0 }
  0x64   : > { %s828_s12 = scalar_lea.hbm %s8178_s10, %s6296_s22  ;;  %s7262_s13 = sshra.s32 %s811_s0, 4  ;;  %s7263_s13 = int_to_ptr.hbm [resolvable:$true] %s7262_s13 }
  0x65   : > { %s829_s14 = sshll.u32 %s828_s12, 4  ;;  %s7264_s4 = scalar_lea.hbm %s7263_s13, 16  ;;  %s830_s14 = int_to_ptr.hbm [resolvable:$true] %s829_s14 }
  0x66   : > { %p7265_p8 = scmp.ne.s32.totalorder %s7263_s13, %s7264_s4  ;;  %p7270_p13 = scmp.lt.s32.totalorder %s7263_s13, %s8176_s29 }
  0x67   : > { %p7271_p0 = scmp.lt.s32.totalorder %s7269_s17, %s7264_s4 }
  0x68   : > { %p7267_p10 = pnand %p7266_p9, %p7265_p8 }
  0x69   : > { %p7272_p2 = por %p7271_p0, %p7270_p13 }
  0x6a   : > { %p7268_p11 = pneg %p7267_p10 }
  0x6c   : > { %p7273_p4 = pnand %p7272_p2, %p7268_p11 }
  0x6e   : > { %7276 = shalt.err (!%p7273_p4)
}
  0x6f   : > { %6781 = dma.hbm_to_vmem [thread:$0]  (!%p7757_p7), %s811_s0, 256, %s813_s1, %s800_s18  }
  0x70   : > { %s823_s12 = scalar_lea.vmem [#allocation5], %s4721_s19  ;;  %s819_s20 = sand.u32 1, %s7454_s28  }
  0x71   : > { %s831_s22 = sshll.u32 %s823_s12, 4  ;;  %s820_s2 = scalar_lea.sflag [#allocation6], %s819_s20  ;;  %s832_s22 = int_to_ptr.vmem [resolvable:$true] %s831_s22 }
  0x72   : > { %s7292_s25 = sshra.s32 %s830_s14, 4  ;;  %s7299_s17 = scalar_lea.hbm %s8178_s10, 32  ;;  %s7293_s25 = int_to_ptr.hbm [resolvable:$true] %s7292_s25 }
  0x73   : > { %s7294_s21 = scalar_lea.hbm %s7293_s25, 16  ;;  %p7300_p4 = scmp.lt.s32.totalorder %s7293_s25, %s8178_s10 }
  0x74   : > { %p7295_p8 = scmp.ne.s32.totalorder %s7293_s25, %s7294_s21  ;;  %p7301_p13 = scmp.lt.s32.totalorder %s7299_s17, %s7294_s21 }
  0x76   : > { %p7297_p10 = pnand %p7295_p8, %p7266_p9  ;;  %p7302_p0 = por %p7301_p13, %p7300_p4 }
  0x78   : > { %p7298_p11 = pneg %p7297_p10 }
  0x7a   : > { %p7303_p2 = pnand %p7302_p0, %p7298_p11 }
  0x7c   : > { %7306 = shalt.err (!%p7303_p2)
}
  0x7d   : > { %s8179_s19 = smov 8   ;;  %s8180_s1 = smov 128  }
  0x7e   : > { %6784 = dma.hbm_to_vmem [thread:$0]  (!%p7757_p7), %s830_s14, 256, %s832_s22, %s820_s2, %s8180_s1, %s8180_s1, %s8179_s19  }
  0x7f   : > { %s8181_s12 = sld [smem:[#allocation42_spill]]  ;;  %s844_s9 = scalar_lea.vmem [#allocation8], %s7740_s24 }
  0x80   : > { %s851_s25 = sshll.u32 %s844_s9, 4  ;;  %s842_s21 = scalar_lea.sflag [#allocation9], %s819_s20  ;;  %s852_s25 = int_to_ptr.vmem [resolvable:$true] %s851_s25 }
  0x85   : > { %s847_s13 = scalar_lea.hbm %s8181_s12, %s7454_s28  ;;  %s7329_s22 = scalar_lea.hbm %s8181_s12, 2 }
  0x86   : > { %s849_s4 = sshll.u32 %s847_s13, 4  ;;  %s850_s4 = int_to_ptr.hbm [resolvable:$true] %s849_s4 }
  0x87   : > { %s7322_s17 = sshra.s32 %s850_s4, 4  ;;  %s7323_s17 = int_to_ptr.hbm [resolvable:$true] %s7322_s17 }
  0x88   : > { %s7324_s18 = scalar_lea.hbm %s7323_s17, 1  ;;  %p7330_p4 = scmp.lt.s32.totalorder %s7323_s17, %s8181_s12 }
  0x89   : > { %p7325_p8 = scmp.ne.s32.totalorder %s7323_s17, %s7324_s18  ;;  %p7331_p13 = scmp.lt.s32.totalorder %s7329_s22, %s7324_s18 }
  0x8b   : > { %p7327_p10 = pnand %p7325_p8, %p7266_p9  ;;  %p7332_p0 = por %p7331_p13, %p7330_p4 }
  0x8d   : > { %p7328_p11 = pneg %p7327_p10 }
  0x8f   : > { %p7333_p2 = pnand %p7332_p0, %p7328_p11 }
  0x91   : > { %7336 = shalt.err (!%p7333_p2)
}
  0x92   : > { %6787 = dma.hbm_to_vmem [thread:$0]  (!%p7757_p7), %s850_s4, 16, %s852_s25, %s842_s21  }
  0x93   : > { %860 = sbr.rel (%p7630_p3) target bundleno = 3024 (0xbd0), region = 116  ;;  %s7812_s20 = sand.u32 (!%p7630_p3), 1, %s7446_s26  }
  0x94   : > { %s7815_s10 = sshll.u32 (!%p7630_p3), %s7812_s20, 4  ;;  %s863_s24 = scalar_lea.sflag (!%p7630_p3), [#allocation3], %s7812_s20 }
  0x95   : > { %s7819_s1 = scalar_lea.vmem (!%p7630_p3), [#allocation2], %s7815_s10 }
  0x98   : > { %7397 = dma.done.wait (%p7733_p12), %s863_s24, 256  }
  0x99   : > { %7399 = vsyncadd (%p7733_p12), %s863_s24, 4294967040  ;;  %s872_s30 = sand.u32 1, %s7625_s7   ;;  %s7827_s0 = scalar_lea.vmem [#allocation5], %s7815_s10 }
  0x9a   : > { %s873_s3 = scalar_lea.sflag [#allocation6], %s872_s30 }
  0x9b   : > { %7401 = dma.done.wait (%p7733_p12), %s873_s3, 256  }
  0x9c   : > { %7403 = vsyncadd (%p7733_p12), %s873_s3, 4294967040 }
  0x9d   : > { %7405 = dma.done.wait (%p72_p1), [#allocation6], 128  }
  0x9e   : > { %7407 = vsyncadd (%p72_p1), [#allocation6], 4294967168  ;;  %s888_s15 = scalar_lea.sflag [#allocation9], %s872_s30  ;;  %s890_s13 = scalar_lea.vmem [#allocation8], %s7812_s20 }
  0x9f   : > { %7409 = dma.done.wait (%p7733_p12), %s888_s15, 16  }
  0xa0   : > { %7411 = vsyncadd (%p7733_p12), %s888_s15, 4294967280 }
  0xa1   : > { %7413 = dma.done.wait (%p72_p1), [#allocation9], 12288  }
  0xa2   : > { %7415 = vsyncadd (%p72_p1), [#allocation9], 4294955008 }
  0xa3   : > { %7417 = dma.done.wait (%p72_p1), [#allocation12], 4192  }
  0xa4   : > { %7419 = vsyncadd (%p72_p1), [#allocation12], 4294963104 }
  0xa5   : > { %7421 = dma.done.wait (%p72_p1), [#allocation15], 64  }
  0xa6   : > { %7423 = vsyncadd (%p72_p1), [#allocation15], 4294967232 }
  0xa7   : > { %7425 = dma.done.wait (%p72_p1), [#allocation18], 4128  }
  0xa8   : > { %7427 = vsyncadd (%p72_p1), [#allocation18], 4294963168 }
  0xa9   : > { %7429 = dma.done.wait (%p72_p1), [#allocation21], 12288  }
  0xaa   : > { %7431 = vsyncadd (%p72_p1), [#allocation21], 4294955008 }
  0xab   : > { %7433 = dma.done.wait (%p72_p1), [#allocation24], 16384  }
  0xac   : > { %7435 = vsyncadd (%p72_p1), [#allocation24], 4294950912  ;;  %v1021_v0 = vld [vmem:[%s7819_s1] sm:$0xff]  ;;  %v1022_v1 = vld [vmem:[%s7819_s1 + $0x8] sm:$0xff]  ;;  %v7474_v3 = vmov 256.0   ;;  %vm1876_vm7 = vcmask 1043456  }
  0xad   : > { %v1031_v2 = vadd.f32 %v1022_v1, %v1021_v0  ;;  %6870 = vrcp.f32 %v7474_v3  ;;  %v4913_v4 = vld [vmem:[#allocation10 + $0x150] sm:$0xf]  ;;  %v6345_v5 = vld [vmem:[#allocation10 + $0x164] sm:$0xf0]  ;;  %v6342_v9 = vld [vmem:[#allocation10 + $0x154] sm:$0xf] }
  0xae   : > { %v5105_v6 = vld [vmem:[#allocation10 + $0x2d0] sm:$0xf]  ;;  %v4914_v7 = vor.u32 %v6345_v5, %v4913_v4  ;;  %v6393_v8 = vld [vmem:[#allocation10 + $0x2e4] sm:$0xf0]  ;;  %v4915_v10 = vld [vmem:[#allocation10 + $0x168] sm:$0xf0] }
  0xaf   : > { %1032 = vadd.xlane.f32.xlu0 %v1031_v2  ;;  %v5106_v12 = vor.u32 %v6393_v8, %v5105_v6  ;;  %v4918_v13 = vor.u32 %v6342_v9, %v4915_v10  ;;  %v6390_v14 = vld [vmem:[#allocation10 + $0x2d4] sm:$0xf]  ;;  %v5107_v15 = vld [vmem:[#allocation10 + $0x2e8] sm:$0xf0]  ;;  %v4889_v16 = vld [vmem:[#allocation10 + $0x120] sm:$0xf] }
  0xb0   : > { %1685 = vmatpush.bf16.msra.mxu0 %v4914_v7  ;;  %v5110_v17 = vor.u32 %v6390_v14, %v5107_v15  ;;  %v6339_v18 = vld [vmem:[#allocation10 + $0x134] sm:$0xf0]  ;;  %v5081_v19 = vld [vmem:[#allocation10 + $0x2a0] sm:$0xf]  ;;  %v6336_v23 = vld [vmem:[#allocation10 + $0x124] sm:$0xf] }
  0xb1   : > { %v6387_v20 = vld [vmem:[#allocation10 + $0x2b4] sm:$0xf0]  ;;  %1698 = vmatpush.bf16.msra.mxu1 %v5106_v12  ;;  %1711 = vmatpush.bf16.msra.mxu2 %v4918_v13  ;;  %v4890_v21 = vor.u32 %v6339_v18, %v4889_v16  ;;  %v4891_v24 = vld [vmem:[#allocation10 + $0x138] sm:$0xf0]  ;;  %v6384_v25 = vld [vmem:[#allocation10 + $0x2a4] sm:$0xf] }
  0xb2   : > { %v5082_v22 = vor.u32 %v6387_v20, %v5081_v19  ;;  %1724 = vmatpush.bf16.msra.mxu3 %v5110_v17  ;;  %v4894_v27 = vor.u32 %v6336_v23, %v4891_v24  ;;  %v5083_v28 = vld [vmem:[#allocation10 + $0x2b8] sm:$0xf0]  ;;  %v4865_v41 = vld [vmem:[#allocation10 + $0xf0] sm:$0xf]  ;;  %v6333_v42 = vld [vmem:[#allocation10 + $0x104] sm:$0xf0] }
  0xb3   : > { %v6871_v11 = vpop.eup %6870  ;;  %v5086_v29 = vor.u32 %v6384_v25, %v5083_v28  ;;  %v5057_v43 = vld [vmem:[#allocation10 + $0x270] sm:$0xf]  ;;  %v4866_v44 = vor.u32 %v6333_v42, %v4865_v41  ;;  %v6381_v45 = vld [vmem:[#allocation10 + $0x284] sm:$0xf0]  ;;  %v6330_v46 = vld [vmem:[#allocation10 + $0xf4] sm:$0xf] }
  0xb4   : > { %v1035_v26 = vmul.f32 256.0, %v6871_v11  ;;  %1686 = vmatpush.bf16.msra.mxu0 %v4890_v21  ;;  %vm1039_vm0 = vweird.f32 %v6871_v11  ;;  %v4867_v47 = vld [vmem:[#allocation10 + $0x108] sm:$0xf0]  ;;  %v5058_v48 = vor.u32 %v6381_v45, %v5057_v43  ;;  %v6378_v50 = vld [vmem:[#allocation10 + $0x274] sm:$0xf]  ;;  %vm1860_vm9 = vcmask 64512  }
  0xb5   : > { %1699 = vmatpush.bf16.msra.mxu1 %v5082_v22  ;;  %1712 = vmatpush.bf16.msra.mxu2 %v4894_v27  ;;  %v4870_v49 = vor.u32 %v6330_v46, %v4867_v47  ;;  %v5059_v51 = vld [vmem:[#allocation10 + $0x288] sm:$0xf0]  ;;  %v4841_v53 = vld [vmem:[#allocation10 + $0xc0] sm:$0xf]  ;;  %v6327_v54 = vld [vmem:[#allocation10 + $0xd4] sm:$0xf0] }
  0xb6   : > { %v1036_v30 = vsub.f32 1.0, %v1035_v26  ;;  %1725 = vmatpush.bf16.msra.mxu3 %v5086_v29  ;;  %v5062_v52 = vor.u32 %v6378_v50, %v5059_v51  ;;  %v5033_v55 = vld [vmem:[#allocation10 + $0x240] sm:$0xf]  ;;  %v4842_v56 = vor.u32 %v6327_v54, %v4841_v53  ;;  %v6375_v57 = vld [vmem:[#allocation10 + $0x254] sm:$0xf0]  ;;  %s8182_s21 = sld [smem:[#allocation55_spill]] }
  0xb7   : > { %v6324_v58 = vld [vmem:[#allocation10 + $0xc4] sm:$0xf]  ;;  %v4843_v59 = vld [vmem:[#allocation10 + $0xd8] sm:$0xf0]  ;;  %v5034_v60 = vor.u32 %v6375_v57, %v5033_v55  ;;  %v6321_v2 = vld [vmem:[#allocation10 + $0xa4] sm:$0xf0] }
  0xb8   : > { %v1037_v31 = vmul.f32 %v6871_v11, %v1036_v30  ;;  %1687 = vmatpush.bf16.msra.mxu0 %v4866_v44  ;;  %v4846_v61 = vor.u32 %v6324_v58, %v4843_v59  ;;  %v6372_v62 = vld [vmem:[#allocation10 + $0x244] sm:$0xf]  ;;  %v5035_v63 = vld [vmem:[#allocation10 + $0x258] sm:$0xf0]  ;;  %v5009_v3 = vld [vmem:[#allocation10 + $0x210] sm:$0xf] }
  0xb9   : > { %1700 = vmatpush.bf16.msra.mxu1 %v5058_v48  ;;  %1713 = vmatpush.bf16.msra.mxu2 %v4870_v49  ;;  %v6369_v5 = vld [vmem:[#allocation10 + $0x224] sm:$0xf0]  ;;  %v6318_v6 = vld [vmem:[#allocation10 + $0x94] sm:$0xf]  ;;  %v4819_v7 = vld [vmem:[#allocation10 + $0xa8] sm:$0xf0] }
  0xba   : > { %v1038_v32 = vadd.f32 %v6871_v11, %v1037_v31  ;;  %1726 = vmatpush.bf16.msra.mxu3 %v5062_v52  ;;  %v5010_v8 = vor.u32 %v6369_v5, %v5009_v3  ;;  %v4822_v9 = vor.u32 %v6318_v6, %v4819_v7  ;;  %v6366_v10 = vld [vmem:[#allocation10 + $0x214] sm:$0xf]  ;;  %v4793_v13 = vld [vmem:[#allocation10 + $0x60] sm:$0xf]  ;;  %v6315_v14 = vld [vmem:[#allocation10 + $0x74] sm:$0xf0] }
  0xbb   : > { %v4985_v15 = vld [vmem:[#allocation10 + $0x1e0] sm:$0xf]  ;;  %v4794_v16 = vor.u32 %v6315_v14, %v4793_v13  ;;  %v6363_v17 = vld [vmem:[#allocation10 + $0x1f4] sm:$0xf0]  ;;  %v6312_v18 = vld [vmem:[#allocation10 + $0x64] sm:$0xf] }
  0xbc   : > { %v7868_v33 = vsel %vm1039_vm0, %v6871_v11, %v1038_v32  ;;  %1688 = vmatpush.bf16.msra.mxu0 %v4842_v56  ;;  %v5011_v11 = vld [vmem:[#allocation10 + $0x228] sm:$0xf0]  ;;  %v4795_v19 = vld [vmem:[#allocation10 + $0x78] sm:$0xf0]  ;;  %v4986_v20 = vor.u32 %v6363_v17, %v4985_v15  ;;  %v6360_v22 = vld [vmem:[#allocation10 + $0x1e4] sm:$0xf] }
  0xbd   : > { %1701 = vmatpush.bf16.msra.mxu1 %v5034_v60  ;;  %1714 = vmatpush.bf16.msra.mxu2 %v4846_v61  ;;  %v5014_v12 = vor.u32 %v6366_v10, %v5011_v11  ;;  %v4798_v21 = vor.u32 %v6312_v18, %v4795_v19  ;;  %v4987_v23 = vld [vmem:[#allocation10 + $0x1f8] sm:$0xf0]  ;;  %v4769_v25 = vld [vmem:[#allocation10 + $0x30] sm:$0xf]  ;;  %v6309_v26 = vld [vmem:[#allocation10 + $0x44] sm:$0xf0] }
  0xbe   : > { %v4990_v24 = vor.u32 %v6360_v22, %v4987_v23  ;;  %v4961_v27 = vld [vmem:[#allocation10 + $0x1b0] sm:$0xf]  ;;  %v4770_v28 = vor.u32 %v6309_v26, %v4769_v25  ;;  %v6357_v29 = vld [vmem:[#allocation10 + $0x1c4] sm:$0xf0]  ;;  %v6306_v30 = vld [vmem:[#allocation10 + $0x34] sm:$0xf] }
  0xbf   : > { %v4771_v31 = vld [vmem:[#allocation10 + $0x48] sm:$0xf0]  ;;  %v4962_v32 = vor.u32 %v6357_v29, %v4961_v27  ;;  %v6303_v41 = vld [vmem:[#allocation10 + $0x14] sm:$0xf0]  ;;  %v4937_v42 = vld [vmem:[#allocation10 + $0x180] sm:$0xf] }
  0xc0   : > { %v6351_v44 = vld [vmem:[#allocation10 + $0x194] sm:$0xf0]  ;;  %v6300_v45 = vld [vmem:[#allocation10 + $0x4] sm:$0xf]  ;;  %v4747_v46 = vld [vmem:[#allocation10 + $0x18] sm:$0xf0] }
  0xc1   : > { %1702 = vmatpush.bf16.msra.mxu1 %v5010_v8  ;;  %1715 = vmatpush.bf16.msra.mxu2 %v4822_v9  ;;  %v4938_v47 = vor.u32 %v6351_v44, %v4937_v42  ;;  %v4750_v48 = vor.u32 %v6300_v45, %v4747_v46  ;;  %v6348_v49 = vld [vmem:[#allocation10 + $0x184] sm:$0xf]  ;;  %v4939_v50 = vld [vmem:[#allocation10 + $0x198] sm:$0xf0]  ;;  %v4921_v51 = vld [vmem:[#allocation10 + $0x158] sm:$0xf] }
  0xc2   : > { %v4942_v52 = vor.u32 %v6348_v49, %v4939_v50  ;;  %v6346_v53 = vld [vmem:[#allocation10 + $0x16c] sm:$0xf0]  ;;  %v5113_v54 = vld [vmem:[#allocation10 + $0x2d8] sm:$0xf]  ;;  %v6343_v58 = vld [vmem:[#allocation10 + $0x15c] sm:$0xf] }
  0xc3   : > { %v6394_v55 = vld [vmem:[#allocation10 + $0x2ec] sm:$0xf0]  ;;  %v4922_v56 = vor.u32 %v6346_v53, %v4921_v51  ;;  %v4923_v59 = vld [vmem:[#allocation10 + $0x170] sm:$0xf0]  ;;  %v6391_v60 = vld [vmem:[#allocation10 + $0x2dc] sm:$0xf] }
  0xc4   : > { %v5114_v57 = vor.u32 %v6394_v55, %v5113_v54  ;;  %v4926_v61 = vor.u32 %v6343_v58, %v4923_v59  ;;  %v5089_v3 = vld [vmem:[#allocation10 + $0x2a8] sm:$0xf]  ;;  %v6337_v5 = vld [vmem:[#allocation10 + $0x12c] sm:$0xf]  ;;  %v4899_v7 = vld [vmem:[#allocation10 + $0x140] sm:$0xf0] }
  0xc5   : > { %1703 = vmatpush.bf16.msra.mxu1 %v4986_v20  ;;  %1716 = vmatpush.bf16.msra.mxu2 %v4798_v21  ;;  %v6385_v8 = vld [vmem:[#allocation10 + $0x2ac] sm:$0xf]  ;;  %v5091_v9 = vld [vmem:[#allocation10 + $0x2c0] sm:$0xf0]  ;;  %v4902_v10 = vor.u32 %v6337_v5, %v4899_v7  ;;  %v6334_v13 = vld [vmem:[#allocation10 + $0x10c] sm:$0xf0] }
  0xc6   : > { %v5094_v11 = vor.u32 %v6385_v8, %v5091_v9  ;;  %v5065_v14 = vld [vmem:[#allocation10 + $0x278] sm:$0xf]  ;;  %v6382_v15 = vld [vmem:[#allocation10 + $0x28c] sm:$0xf0]  ;;  %v4875_v17 = vld [vmem:[#allocation10 + $0x110] sm:$0xf0] }
  0xc7   : > { %v5066_v19 = vor.u32 %v6382_v15, %v5065_v14  ;;  %v6379_v20 = vld [vmem:[#allocation10 + $0x27c] sm:$0xf]  ;;  %v5067_v21 = vld [vmem:[#allocation10 + $0x290] sm:$0xf0]  ;;  %v4849_v22 = vld [vmem:[#allocation10 + $0xc8] sm:$0xf] }
  0xc8   : > { %v5041_v25 = vld [vmem:[#allocation10 + $0x248] sm:$0xf]  ;;  %v6376_v26 = vld [vmem:[#allocation10 + $0x25c] sm:$0xf0]  ;;  %v5070_v27 = vor.u32 %v6379_v20, %v5067_v21  ;;  %v4851_v29 = vld [vmem:[#allocation10 + $0xe0] sm:$0xf0] }
  0xc9   : > { %1704 = vmatpush.bf16.msra.mxu1 %v4962_v32  ;;  %v5043_v32 = vld [vmem:[#allocation10 + $0x260] sm:$0xf0]  ;;  %v5017_v42 = vld [vmem:[#allocation10 + $0x218] sm:$0xf]  ;;  %v6319_v45 = vld [vmem:[#allocation10 + $0x9c] sm:$0xf] }
  0xca   : > { %v4827_v46 = vld [vmem:[#allocation10 + $0xb0] sm:$0xf0]  ;;  %v4801_v51 = vld [vmem:[#allocation10 + $0x68] sm:$0xf]  ;;  %v6316_v53 = vld [vmem:[#allocation10 + $0x7c] sm:$0xf0] }
  0xcb   : > { %v4993_v54 = vld [vmem:[#allocation10 + $0x1e8] sm:$0xf]  ;;  %v6364_v55 = vld [vmem:[#allocation10 + $0x1fc] sm:$0xf0]  ;;  %v4803_v58 = vld [vmem:[#allocation10 + $0x80] sm:$0xf0] }
  0xcc   : > { %v6361_v59 = vld [vmem:[#allocation10 + $0x1ec] sm:$0xf]  ;;  %v6358_v5 = vld [vmem:[#allocation10 + $0x1cc] sm:$0xf0]  ;;  %v6307_v7 = vld [vmem:[#allocation10 + $0x3c] sm:$0xf] }
  0xcd   : > { %1705 = vmatpush.bf16.msra.mxu1 %v4938_v47  ;;  %v6367_v47 = vld [vmem:[#allocation10 + $0x21c] sm:$0xf]  ;;  %v4779_v8 = vld [vmem:[#allocation10 + $0x50] sm:$0xf0]  ;;  %v4945_v20 = vld [vmem:[#allocation10 + $0x188] sm:$0xf] }
  0xce   : > { %v4782_v15 = vor.u32 %v6307_v7, %v4779_v8  ;;  %v6341_v8 = vld [vmem:[#allocation10 + $0x144] sm:$0xf0]  ;;  %s8183_s14 = sld [smem:[#allocation52_spill]]  ;;  %s1019_s22 = scalar_lea.vmem [#allocation26], %s7815_s10 }
  0xcf   : > { %s8184_s19 = sld [smem:[#allocation50_spill]]  ;;  %s6684_s2 = sshll.u32 %s7625_s7, 4 }
  0xd0   : > { %s8185_s30 = sld [smem:[#allocation54_spill]]  ;;  %s4478_s3 = sshll.u32 %s1019_s22, 4  ;;  %s4479_s3 = int_to_ptr.vmem [resolvable:$true] %s4478_s3 }
  0xd1   : > { %1750 = vmatpush.bf16.msrb.mxu1 %v5114_v57  ;;  %v6313_v57 = vld [vmem:[#allocation10 + $0x6c] sm:$0xf]  ;;  %s8186_s15 = sld [smem:[#allocation60_spill]]  ;;  %s4465_s10 = scalar_lea.sflag [#allocation4], %s7812_s20 }
  0xd2   : > { %s8187_s4 = sld [smem:[#allocation61_spill]] }
 0x122   : > { %v1033_v34 = vpop.xlane.xlu0 %1032 }
 0x123   : > { %v1041_v35 = vmul.f32 %v7868_v33, %v1033_v34  ;;  %v4774_v34 = vor.u32 %v6306_v30, %v4771_v31  ;;  %v6373_v31 = vld [vmem:[#allocation10 + $0x24c] sm:$0xf] }
 0x124   : > { %v5046_v44 = vor.u32 %v6373_v31, %v5043_v32 }
 0x125   : > { %v7871_v36 = vsub.f32 %v1021_v0, %v1041_v35  ;;  %v7873_v37 = vsub.f32 %v1022_v1, %v1041_v35  ;;  %v5038_v0 = vor.u32 %v6372_v62, %v5035_v63  ;;  %v4817_v1 = vld [vmem:[#allocation10 + $0x90] sm:$0xf]  ;;  %v6354_v35 = vld [vmem:[#allocation10 + $0x1b4] sm:$0xf]  ;;  %1717 = vmatpush.bf16.msra.mxu2 %v4774_v34  ;;  %v4897_v63 = vld [vmem:[#allocation10 + $0x128] sm:$0xf] }
 0x126   : > { %v4818_v4 = vor.u32 %v6321_v2, %v4817_v1  ;;  %v5115_v62 = vld [vmem:[#allocation10 + $0x2f0] sm:$0xf0] }
 0x127   : > { %v1044_v38 = vmul.f32 %v7871_v36, %v7871_v36  ;;  %v1045_v39 = vmul.f32 %v7873_v37, %v7873_v37  ;;  %1727 = vmatpush.bf16.msra.mxu3 %v5038_v0  ;;  %v6340_v0 = vld [vmem:[#allocation10 + $0x13c] sm:$0xf0]  ;;  %v5118_v1 = vor.u32 %v6391_v60, %v5115_v62  ;;  %v4995_v60 = vld [vmem:[#allocation10 + $0x200] sm:$0xf0]  ;;  %v4802_v62 = vor.u32 %v6316_v53, %v4801_v51 }
 0x128   : > { %1689 = vmatpush.bf16.msra.mxu0 %v4818_v4  ;;  %v4898_v2 = vor.u32 %v6340_v0, %v4897_v63  ;;  %v6388_v4 = vld [vmem:[#allocation10 + $0x2bc] sm:$0xf0]  ;;  %v4994_v63 = vor.u32 %v6364_v55, %v4993_v54  ;;  %v4777_v0 = vld [vmem:[#allocation10 + $0x38] sm:$0xf] }
 0x129   : > { %v1046_v40 = vadd.f32 %v1045_v39, %v1044_v38  ;;  %v4963_v38 = vld [vmem:[#allocation10 + $0x1c8] sm:$0xf0]  ;;  %1718 = vmatpush.bf16.msra.mxu2 %v4750_v48  ;;  %v5090_v6 = vor.u32 %v6388_v4, %v5089_v3  ;;  %v5019_v48 = vld [vmem:[#allocation10 + $0x230] sm:$0xf0]  ;;  %v6310_v3 = vld [vmem:[#allocation10 + $0x4c] sm:$0xf0] }
 0x12a   : > { %v4966_v39 = vor.u32 %v6354_v35, %v4963_v38  ;;  %v5042_v38 = vor.u32 %v6376_v26, %v5041_v25  ;;  %v4969_v4 = vld [vmem:[#allocation10 + $0x1b8] sm:$0xf]  ;;  %v4755_v25 = vld [vmem:[#allocation10 + $0x20] sm:$0xf0] }
 0x12b   : > { %1047 = vadd.xlane.f32.xlu0 %v1046_v40  ;;  %1728 = vmatpush.bf16.msra.mxu3 %v5014_v12  ;;  %v4745_v40 = vld [vmem:[#allocation10] sm:$0xf]  ;;  %v4873_v12 = vld [vmem:[#allocation10 + $0xf8] sm:$0xf] }
 0x12c   : > { %1690 = vmatpush.bf16.msra.mxu0 %v4794_v16  ;;  %v4746_v43 = vor.u32 %v6303_v41, %v4745_v40  ;;  %v6331_v16 = vld [vmem:[#allocation10 + $0xfc] sm:$0xf]  ;;  %1751 = vmatpush.bf16.msrb.mxu1 %v5090_v6  ;;  %v4874_v18 = vor.u32 %v6334_v13, %v4873_v12  ;;  %v6322_v41 = vld [vmem:[#allocation10 + $0xac] sm:$0xf0]  ;;  %v4998_v6 = vor.u32 %v6361_v59, %v4995_v60  ;;  %v4929_v59 = vld [vmem:[#allocation10 + $0x160] sm:$0xf] }
 0x12d   : > { %1763 = vmatpush.bf16.msrb.mxu2 %v4926_v61  ;;  %v4878_v23 = vor.u32 %v6331_v16, %v4875_v17  ;;  %v4778_v12 = vor.u32 %v6310_v3, %v4777_v0  ;;  %v4970_v13 = vor.u32 %v6358_v5, %v4969_v4  ;;  %v6347_v60 = vld [vmem:[#allocation10 + $0x174] sm:$0xf0]  ;;  %v6392_v3 = vld [vmem:[#allocation10 + $0x2e4] sm:$0xf]  ;;  %v5123_v4 = vld [vmem:[#allocation10 + $0x2f8] sm:$0xf0] }
 0x12f   : > { %1729 = vmatpush.bf16.msra.mxu3 %v4990_v24  ;;  %v6328_v24 = vld [vmem:[#allocation10 + $0xdc] sm:$0xf0] }
 0x130   : > { %1691 = vmatpush.bf16.msra.mxu0 %v4770_v28  ;;  %v6325_v28 = vld [vmem:[#allocation10 + $0xcc] sm:$0xf]  ;;  %1752 = vmatpush.bf16.msrb.mxu1 %v5066_v19  ;;  %v4850_v35 = vor.u32 %v6328_v24, %v4849_v22  ;;  %v6304_v19 = vld [vmem:[#allocation10 + $0x1c] sm:$0xf0] }
 0x131   : > { %1764 = vmatpush.bf16.msrb.mxu2 %v4902_v10  ;;  %v4854_v40 = vor.u32 %v6325_v28, %v4851_v29  ;;  %v6355_v10 = vld [vmem:[#allocation10 + $0x1bc] sm:$0xf]  ;;  %v6301_v24 = vld [vmem:[#allocation10 + $0xc] sm:$0xf]  ;;  %v4947_v29 = vld [vmem:[#allocation10 + $0x1a0] sm:$0xf0] }
 0x132   : > { %v6349_v28 = vld [vmem:[#allocation10 + $0x18c] sm:$0xf] }
 0x133   : > { %1730 = vmatpush.bf16.msra.mxu3 %v4966_v39  ;;  %v4825_v39 = vld [vmem:[#allocation10 + $0x98] sm:$0xf]  ;;  %v4950_v31 = vor.u32 %v6349_v28, %v4947_v29  ;;  %v5075_v28 = vld [vmem:[#allocation10 + $0x298] sm:$0xf0] }
 0x134   : > { %1692 = vmatpush.bf16.msra.mxu0 %v4746_v43  ;;  %v6370_v43 = vld [vmem:[#allocation10 + $0x22c] sm:$0xf0]  ;;  %1753 = vmatpush.bf16.msrb.mxu1 %v5042_v38  ;;  %v4826_v49 = vor.u32 %v6322_v41, %v4825_v39 }
 0x135   : > { %1765 = vmatpush.bf16.msrb.mxu2 %v4878_v23  ;;  %v5018_v50 = vor.u32 %v6370_v43, %v5017_v42  ;;  %v6352_v23 = vld [vmem:[#allocation10 + $0x19c] sm:$0xf0] }
 0x136   : > { %v4946_v26 = vor.u32 %v6352_v23, %v4945_v20  ;;  %v6335_v20 = vld [vmem:[#allocation10 + $0x114] sm:$0xf0]  ;;  %v5073_v23 = vld [vmem:[#allocation10 + $0x280] sm:$0xf] }
 0x137   : > { %1731 = vmatpush.bf16.msra.mxu3 %v4942_v52  ;;  %v4830_v52 = vor.u32 %v6319_v45, %v4827_v46  ;;  %v1029_v46 = vld [vmem:[#allocation16] sm:$0x3] }
 0x138   : > { %1737 = vmatpush.bf16.msrb.mxu0 %v4922_v56  ;;  %v5022_v56 = vor.u32 %v6367_v47, %v5019_v48  ;;  %1754 = vmatpush.bf16.msrb.mxu1 %v5018_v50  ;;  %v1030_v48 = vld [vmem:[#allocation17] sm:$0x3]  ;;  %v1081_v51 = vperm.slane %v1029_v46, 1 }
 0x139   : > { %1766 = vmatpush.bf16.msrb.mxu2 %v4854_v40  ;;  %v1087_v54 = vperm.slane %v1030_v48, 0 }
 0x13b   : > { %1776 = vmatpush.bf16.msrb.mxu3 %v5118_v1 }
 0x13c   : > { %1738 = vmatpush.bf16.msrb.mxu0 %v4898_v2  ;;  %v4806_v2 = vor.u32 %v6313_v57, %v4803_v58  ;;  %1755 = vmatpush.bf16.msrb.mxu1 %v4994_v63  ;;  %v6344_v63 = vld [vmem:[#allocation10 + $0x164] sm:$0xf] }
 0x13d   : > { %1767 = vmatpush.bf16.msrb.mxu2 %v4830_v52 }
 0x13f   : > { %1777 = vmatpush.bf16.msrb.mxu3 %v5094_v11  ;;  %v4971_v11 = vld [vmem:[#allocation10 + $0x1d0] sm:$0xf0] }
 0x140   : > { %1739 = vmatpush.bf16.msrb.mxu0 %v4874_v18  ;;  %v4974_v16 = vor.u32 %v6355_v10, %v4971_v11  ;;  %1756 = vmatpush.bf16.msrb.mxu1 %v4970_v13  ;;  %v4753_v18 = vld [vmem:[#allocation10 + $0x8] sm:$0xf]  ;;  %v5126_v10 = vor.u32 %v6392_v3, %v5123_v4  ;;  %v5097_v11 = vld [vmem:[#allocation10 + $0x2b0] sm:$0xf]  ;;  %v6338_v13 = vld [vmem:[#allocation10 + $0x134] sm:$0xf] }
 0x141   : > { %1768 = vmatpush.bf16.msrb.mxu2 %v4806_v2  ;;  %v4754_v22 = vor.u32 %v6304_v19, %v4753_v18  ;;  %v4931_v2 = vld [vmem:[#allocation10 + $0x178] sm:$0xf0]  ;;  %v4881_v19 = vld [vmem:[#allocation10 + $0x100] sm:$0xf]  ;;  %v5003_v3 = vld [vmem:[#allocation10 + $0x208] sm:$0xf0] }
 0x142   : > { %v4882_v29 = vor.u32 %v6335_v20, %v4881_v19  ;;  %v6305_v19 = vld [vmem:[#allocation10 + $0x24] sm:$0xf0] }
 0x143   : > { %1778 = vmatpush.bf16.msrb.mxu3 %v5070_v27  ;;  %v4758_v27 = vor.u32 %v6301_v24, %v4755_v25  ;;  %v6383_v24 = vld [vmem:[#allocation10 + $0x294] sm:$0xf0]  ;;  %v6332_v25 = vld [vmem:[#allocation10 + $0x104] sm:$0xf] }
 0x144   : > { %1740 = vmatpush.bf16.msrb.mxu0 %v4850_v35  ;;  %1757 = vmatpush.bf16.msrb.mxu1 %v4946_v26  ;;  %v4883_v26 = vld [vmem:[#allocation10 + $0x118] sm:$0xf0] }
 0x145   : > { %1769 = vmatpush.bf16.msrb.mxu2 %v4782_v15  ;;  %v6386_v15 = vld [vmem:[#allocation10 + $0x2b4] sm:$0xf] }
 0x147   : > { %1779 = vmatpush.bf16.msrb.mxu3 %v5046_v44 }
 0x148   : > { %1741 = vmatpush.bf16.msrb.mxu0 %v4826_v49 }
 0x149   : > { %1770 = vmatpush.bf16.msrb.mxu2 %v4758_v27  ;;  %v6380_v27 = vld [vmem:[#allocation10 + $0x284] sm:$0xf] }
 0x14b   : > { %1780 = vmatpush.bf16.msrb.mxu3 %v5022_v56  ;;  %v1088_v56 = vperm.slane %v1030_v48, 1  ;;  %v6323_v48 = vld [vmem:[#allocation10 + $0xb4] sm:$0xf0] }
 0x14c   : > { %1742 = vmatpush.bf16.msrb.mxu0 %v4802_v62  ;;  %v6395_v62 = vld [vmem:[#allocation10 + $0x2f4] sm:$0xf0] }
 0x14f   : > { %1781 = vmatpush.bf16.msrb.mxu3 %v4998_v6 }
 0x150   : > { %1743 = vmatpush.bf16.msrb.mxu0 %v4778_v12  ;;  %v6389_v12 = vld [vmem:[#allocation10 + $0x2c4] sm:$0xf0] }
 0x151   : > { %v5098_v18 = vor.u32 %v6389_v12, %v5097_v11  ;;  %v6359_v11 = vld [vmem:[#allocation10 + $0x1d4] sm:$0xf0]  ;;  %v6308_v12 = vld [vmem:[#allocation10 + $0x44] sm:$0xf] }
 0x153   : > { %1782 = vmatpush.bf16.msrb.mxu3 %v4974_v16  ;;  %v5099_v16 = vld [vmem:[#allocation10 + $0x2c8] sm:$0xf0] }
 0x154   : > { %1744 = vmatpush.bf16.msrb.mxu0 %v4754_v22  ;;  %v5102_v22 = vor.u32 %v6386_v15, %v5099_v16  ;;  %v4979_v15 = vld [vmem:[#allocation10 + $0x1d8] sm:$0xf0] }
 0x157   : > { %1783 = vmatpush.bf16.msrb.mxu3 %v4950_v31  ;;  %v4857_v31 = vld [vmem:[#allocation10 + $0xd0] sm:$0xf] }
 0x19e   : > { %v1048_v30 = vpop.xlane.xlu0 %1047 }
 0x19f   : > { %v7879_v34 = vmul.f32 0.003921569, %v1048_v30 }
 0x1a1   : > { %6872 = vrsqrt.f32 %v7879_v34  ;;  %vm1057_vm1 = vcmp.eq.f32.partialorder %v7879_v34, inf  ;;  %v1060_v32 = vand.u32 2147483648, %v7879_v34  ;;  %vm1059_vm2 = vcmp.eq.f32.partialorder %v7879_v34, 0.0 }
 0x1a7   : > { %v6873_v61 = vpop.eup %6872 }
 0x1a8   : > { %v1051_v1 = vmul.f32 %v6873_v61, %v7879_v34 }
 0x1aa   : > { %v1052_v9 = vmul.f32 %v6873_v61, %v1051_v1 }
 0x1ac   : > { %v1053_v14 = vmul.f32 0.5, %v1052_v9  ;;  %v4934_v9 = vor.u32 %v6344_v63, %v4931_v2  ;;  %v6365_v63 = vld [vmem:[#allocation10 + $0x204] sm:$0xf0]  ;;  %v6362_v2 = vld [vmem:[#allocation10 + $0x1f4] sm:$0xf] }
 0x1ae   : > { %v1054_v17 = vsub.f32 1.5, %v1053_v14  ;;  %v4907_v14 = vld [vmem:[#allocation10 + $0x148] sm:$0xf0] }
 0x1b0   : > { %v1055_v21 = vmul.f32 %v6873_v61, %v1054_v17  ;;  %v5121_v61 = vld [vmem:[#allocation10 + $0x2e0] sm:$0xf] }
 0x1b1   : > { %v5122_v7 = vor.u32 %v6395_v62, %v5121_v61  ;;  %v5001_v62 = vld [vmem:[#allocation10 + $0x1f0] sm:$0xf] }
 0x1b2   : > { %v1056_v30 = vmul.f32 %v1055_v21, %v7879_v34  ;;  %v4910_v21 = vor.u32 %v6338_v13, %v4907_v14  ;;  %v4787_v13 = vld [vmem:[#allocation10 + $0x58] sm:$0xf0]  ;;  %v6356_v14 = vld [vmem:[#allocation10 + $0x1c4] sm:$0xf] }
 0x1b3   : > { %v4790_v20 = vor.u32 %v6308_v12, %v4787_v13 }
 0x1b4   : > { %v1058_v35 = vsel %vm1057_vm1, %v7879_v34, %v1056_v30  ;;  %v1080_v34 = vperm.slane %v1029_v46, 0  ;;  %v5074_v30 = vor.u32 %v6383_v24, %v5073_v23  ;;  %v6353_v23 = vld [vmem:[#allocation10 + $0x1a4] sm:$0xf0]  ;;  %v6302_v24 = vld [vmem:[#allocation10 + $0x14] sm:$0xf] }
 0x1b5   : > { %v1061_v38 = vsel %vm1059_vm2, %v1060_v32, %v1058_v35  ;;  %v6329_v32 = vld [vmem:[#allocation10 + $0xe4] sm:$0xf0]  ;;  %v4886_v35 = vor.u32 %v6332_v25, %v4883_v26  ;;  %v4763_v25 = vld [vmem:[#allocation10 + $0x28] sm:$0xf0]  ;;  %v6350_v26 = vld [vmem:[#allocation10 + $0x194] sm:$0xf] }
 0x1b6   : > { %v1062_v39 = vadd.f32 1e-06, %v1061_v38  ;;  %v5078_v38 = vor.u32 %v6380_v27, %v5075_v28  ;;  %v4955_v27 = vld [vmem:[#allocation10 + $0x1a8] sm:$0xf0]  ;;  %vm3058_vm2 = vcmask 130048  }
 0x1b8   : > { %6874 = vrcp.f32 %v1062_v39  ;;  %v1074_v43 = vand.u32 2147483648, %v1062_v39  ;;  %v1072_v45 = vand.u32 2147483647, %v1062_v39  ;;  %vm1068_vm4 = vweird.f32 %v1062_v39 }
 0x1ba   : > { %v1075_v49 = vor.u32 1.1754944e-38, %v1074_v43  ;;  %vm1073_vm6 = vcmp.eq.f32.partialorder %v1072_v45, 8.507059e+37  ;;  %v6374_v43 = vld [vmem:[#allocation10 + $0x254] sm:$0xf]  ;;  %v4858_v45 = vor.u32 %v6329_v32, %v4857_v31  ;;  %v4958_v31 = vor.u32 %v6350_v26, %v4955_v27 }
 0x1bb   : > { %v1025_v26 = vld [vmem:[#allocation7] sm:$0xff] }
 0x1bc   : > { %vm1026_vm8 = vcmp.ne.s32.totalorder %v1025_v26, 0 }
 0x1be   : > { %v6875_v40 = vpop.eup %6874 }
 0x1bf   : > { %v1064_v41 = vmul.f32 %v6875_v40, %v1062_v39  ;;  %vm1069_vm3 = vweird.f32 %v6875_v40  ;;  %v5049_v39 = vld [vmem:[#allocation10 + $0x250] sm:$0xf] }
 0x1c0   : > { %vm1070_vm5 = vmor %vm1068_vm4, %vm1069_vm3 }
 0x1c1   : > { %v1065_v42 = vsub.f32 1.0, %v1064_v41  ;;  %v6326_v41 = vld [vmem:[#allocation10 + $0xd4] sm:$0xf] }
 0x1c3   : > { %v1066_v44 = vmul.f32 %v6875_v40, %v1065_v42  ;;  %v4859_v42 = vld [vmem:[#allocation10 + $0xe8] sm:$0xf0] }
 0x1c5   : > { %v1067_v47 = vadd.f32 %v6875_v40, %v1066_v44  ;;  %v5051_v44 = vld [vmem:[#allocation10 + $0x268] sm:$0xf0] }
 0x1c7   : > { %v1071_v50 = vsel %vm1070_vm5, %v6875_v40, %v1067_v47  ;;  %v6377_v40 = vld [vmem:[#allocation10 + $0x264] sm:$0xf0]  ;;  %v4833_v47 = vld [vmem:[#allocation10 + $0xa0] sm:$0xf] }
 0x1c8   : > { %v1076_v52 = vsel %vm1073_vm6, %v1075_v49, %v1071_v50  ;;  %v5050_v46 = vor.u32 %v6377_v40, %v5049_v39  ;;  %v4862_v49 = vor.u32 %v6326_v41, %v4859_v42  ;;  %v5054_v50 = vor.u32 %v6374_v43, %v5051_v44  ;;  %v1191_v42 = vld [vmem:[#allocation11] sm:$0x3f] }
 0x1c9   : > { %v1077_v53 = vmul.f32 %v1076_v52, %v7871_v36  ;;  %v1078_v55 = vmul.f32 %v1076_v52, %v7873_v37  ;;  %v4930_v36 = vor.u32 %v6347_v60, %v4929_v59  ;;  %v4905_v37 = vld [vmem:[#allocation10 + $0x130] sm:$0xf]  ;;  %v6320_v52 = vld [vmem:[#allocation10 + $0xa4] sm:$0xf]  ;;  %v6317_v59 = vld [vmem:[#allocation10 + $0x84] sm:$0xf0] }
 0x1ca   : > { %v4906_v17 = vor.u32 %v6341_v8, %v4905_v37  ;;  %v6311_v37 = vld [vmem:[#allocation10 + $0x54] sm:$0xf0]  ;;  %v1194_v43 = vperm.slane %v1191_v42, 1 }
 0x1cb   : > { %v1084_v57 = vmul.f32 %v1080_v34, %v1077_v53  ;;  %v1085_v58 = vmul.f32 %v1081_v51, %v1078_v55  ;;  %v5025_v34 = vld [vmem:[#allocation10 + $0x220] sm:$0xf]  ;;  %v6371_v51 = vld [vmem:[#allocation10 + $0x234] sm:$0xf0]  ;;  %v4835_v53 = vld [vmem:[#allocation10 + $0xb8] sm:$0xf0] }
 0x1cc   : > { %v5027_v55 = vld [vmem:[#allocation10 + $0x238] sm:$0xf0]  ;;  %v4838_v60 = vor.u32 %v6320_v52, %v4835_v53 }
 0x1cd   : > { %v1091_v0 = vadd.f32 %v1087_v54, %v1084_v57  ;;  %v1092_v1 = vadd.f32 %v1088_v56, %v1085_v58  ;;  %v6368_v54 = vld [vmem:[#allocation10 + $0x224] sm:$0xf]  ;;  %v4834_v56 = vor.u32 %v6323_v48, %v4833_v47  ;;  %v5026_v57 = vor.u32 %v6371_v51, %v5025_v34  ;;  %v4809_v58 = vld [vmem:[#allocation10 + $0x70] sm:$0xf] }
 0x1ce   : > { %v5030_v61 = vor.u32 %v6368_v54, %v5027_v55  ;;  %v4810_v4 = vor.u32 %v6317_v59, %v4809_v58  ;;  %v1193_v48 = vperm.slane %v1191_v42, 0  ;;  %v1196_v34 = vperm.slane %v1191_v42, 3 }
 0x1cf   : > { %v7890_v5 = vpack.c.bf16 %v1091_v0, %v1091_v0  ;;  %v7892_v6 = vpack.c.bf16 %v1092_v1, %v1092_v1  ;;  %v6314_v0 = vld [vmem:[#allocation10 + $0x74] sm:$0xf]  ;;  %v4811_v1 = vld [vmem:[#allocation10 + $0x88] sm:$0xf0] }
 0x1d0   : > { %v4814_v8 = vor.u32 %v6314_v0, %v4811_v1 }
 0x1d1   : > { %1693 = vmatmul.bf16.vlgmr.msra.gmra.mxu0 %v7890_v5  ;;  %1706 = vmatmul.bf16.vlgmr.msra.gmra.mxu1 %v7892_v6 }
 0x1d2   : > { %1719 = vmatmul.bf16.vlgmr.msra.gmra.mxu2 %v7890_v5  ;;  %1732 = vmatmul.bf16.vlgmr.msra.gmra.mxu3 %v7892_v6 }
 0x1d3   : > { %1789 = vmatpush.bf16.msra.mxu0 %v4930_v36  ;;  %1802 = vmatpush.bf16.msra.mxu1 %v5122_v7  ;;  %v5002_v36 = vor.u32 %v6365_v63, %v5001_v62  ;;  %v4785_v7 = vld [vmem:[#allocation10 + $0x40] sm:$0xf] }
 0x1d4   : > { %1815 = vmatpush.bf16.msra.mxu2 %v4934_v9  ;;  %1828 = vmatpush.bf16.msra.mxu3 %v5126_v10  ;;  %v5006_v9 = vor.u32 %v6362_v2, %v5003_v3  ;;  %v4977_v10 = vld [vmem:[#allocation10 + $0x1c0] sm:$0xf]  ;;  %v4786_v16 = vor.u32 %v6311_v37, %v4785_v7  ;;  %v1197_v37 = vperm.slane %v1191_v42, 4 }
 0x1d7   : > { %1790 = vmatpush.bf16.msra.mxu0 %v4906_v17  ;;  %1803 = vmatpush.bf16.msra.mxu1 %v5098_v18  ;;  %v4978_v17 = vor.u32 %v6359_v11, %v4977_v10  ;;  %v4761_v18 = vld [vmem:[#allocation10 + $0x10] sm:$0xf] }
 0x1d8   : > { %1816 = vmatpush.bf16.msra.mxu2 %v4910_v21  ;;  %1829 = vmatpush.bf16.msra.mxu3 %v5102_v22  ;;  %v4982_v21 = vor.u32 %v6356_v14, %v4979_v15  ;;  %v4953_v22 = vld [vmem:[#allocation10 + $0x190] sm:$0xf]  ;;  %v4762_v28 = vor.u32 %v6305_v19, %v4761_v18 }
 0x1db   : > { %1791 = vmatpush.bf16.msra.mxu0 %v4882_v29  ;;  %1804 = vmatpush.bf16.msra.mxu1 %v5074_v30  ;;  %v4954_v29 = vor.u32 %v6353_v23, %v4953_v22  ;;  %v4766_v30 = vor.u32 %v6302_v24, %v4763_v25 }
 0x1dc   : > { %1817 = vmatpush.bf16.msra.mxu2 %v4886_v35  ;;  %1830 = vmatpush.bf16.msra.mxu3 %v5078_v38 }
 0x1df   : > { %1792 = vmatpush.bf16.msra.mxu0 %v4858_v45  ;;  %1805 = vmatpush.bf16.msra.mxu1 %v5050_v46 }
 0x1e0   : > { %1818 = vmatpush.bf16.msra.mxu2 %v4862_v49  ;;  %1831 = vmatpush.bf16.msra.mxu3 %v5054_v50  ;;  %v1195_v49 = vperm.slane %v1191_v42, 2 }
 0x1e1   : > { %1745 = vmatmul.bf16.vlgmr.msrb.gmra.mxu0 %v7890_v5  ;;  %1758 = vmatmul.bf16.vlgmr.msrb.gmra.mxu1 %v7892_v6 }
 0x1e2   : > { %1771 = vmatmul.bf16.vlgmr.msrb.gmra.mxu2 %v7890_v5  ;;  %1784 = vmatmul.bf16.vlgmr.msrb.gmra.mxu3 %v7892_v6 }
 0x1e3   : > { %1793 = vmatpush.bf16.msra.mxu0 %v4834_v56  ;;  %1806 = vmatpush.bf16.msra.mxu1 %v5026_v57 }
 0x1e4   : > { %1819 = vmatpush.bf16.msra.mxu2 %v4838_v60  ;;  %1832 = vmatpush.bf16.msra.mxu3 %v5030_v61 }
 0x1e7   : > { %1794 = vmatpush.bf16.msra.mxu0 %v4810_v4  ;;  %1807 = vmatpush.bf16.msra.mxu1 %v5002_v36 }
 0x1e8   : > { %1820 = vmatpush.bf16.msra.mxu2 %v4814_v8  ;;  %1833 = vmatpush.bf16.msra.mxu3 %v5006_v9  ;;  %v1198_v8 = vperm.slane %v1191_v42, 5 }
 0x1eb   : > { %1795 = vmatpush.bf16.msra.mxu0 %v4786_v16  ;;  %1808 = vmatpush.bf16.msra.mxu1 %v4978_v17 }
 0x1ec   : > { %1821 = vmatpush.bf16.msra.mxu2 %v4790_v20  ;;  %1834 = vmatpush.bf16.msra.mxu3 %v4982_v21 }
 0x1ef   : > { %1796 = vmatpush.bf16.msra.mxu0 %v4762_v28  ;;  %1809 = vmatpush.bf16.msra.mxu1 %v4954_v29 }
 0x1f0   : > { %1822 = vmatpush.bf16.msra.mxu2 %v4766_v30  ;;  %1835 = vmatpush.bf16.msra.mxu3 %v4958_v31 }
 0x1f2   : > { %1797 = vmatmul.bf16.vlgmr.msra.gmra.mxu0 %v7890_v5  ;;  %1810 = vmatmul.bf16.vlgmr.msra.gmra.mxu1 %v7892_v6 }
 0x1f3   : > { %1823 = vmatmul.bf16.vlgmr.msra.gmra.mxu2 %v7890_v5  ;;  %1836 = vmatmul.bf16.vlgmr.msra.gmra.mxu3 %v7892_v6 }
 0x24e   : > { %v1694_v32 = vpop.f32.mrf.mxu0  ;;  %v1707_v35 = vpop.f32.mrf.mxu1 }
 0x24f   : > { %v1695_v51 = vadd.f32 %v1694_v32, %v1193_v48  ;;  %v5251_v48 = vld [vmem:[#allocation13 + $0xf0] sm:$0xf] }
 0x251   : > { %v1708_v57 = vadd.f32 %v1707_v35, %v1695_v51  ;;  %v5253_v51 = vld [vmem:[#allocation13 + $0xf8] sm:$0xf0] }
 0x253   : > { %v1841_v62 = vmul.f32 0.088388346, %v1708_v57 }
 0x255   : > { %v1720_v38 = vpop.f32.mrf.mxu2  ;;  %v1733_v39 = vpop.f32.mrf.mxu3 }
 0x256   : > { %v1696_v40 = vpop.f32.mrf.mxu0  ;;  %v1709_v41 = vpop.f32.mrf.mxu1  ;;  %v1721_v50 = vadd.f32 %v1720_v38, %v1194_v43 }
 0x258   : > { %v1734_v52 = vadd.f32 %v1733_v39, %v1721_v50  ;;  %v6426_v50 = vld [vmem:[#allocation13 + $0xf4] sm:$0xf] }
 0x25a   : > { %v1842_v60 = vmul.f32 0.088388346, %v1734_v52  ;;  %v6411_v52 = vld [vmem:[#allocation13 + $0x74] sm:$0xf0] }
 0x25c   : > { %v1843_v0 = vpack.c.bf16 %v1842_v60, %v1841_v62  ;;  %v5245_v60 = vld [vmem:[#allocation13 + $0xe8] sm:$0xf0] }
 0x25d   : > { %v1722_v44 = vpop.f32.mrf.mxu2  ;;  %v1735_v45 = vpop.f32.mrf.mxu3 }
 0x25e   : > { %v1746_v46 = vpop.f32.mrf.mxu0  ;;  %v1759_v47 = vpop.f32.mrf.mxu1  ;;  %v1894_v7 = vunpack.c.h.b16 %v1843_v0 }
 0x25f   : > { %v1747_v5 = vadd.f32 %v1746_v46, %v1195_v49  ;;  %v6427_v49 = vld [vmem:[#allocation13 + $0xf4] sm:$0xf0] }
 0x260   : > { %v1895_v9 = vpack.c.b16 %v1894_v7, %v1894_v7 }
 0x261   : > { %v1760_v58 = vadd.f32 %v1759_v47, %v1747_v5  ;;  %v5187_v5 = vld [vmem:[#allocation13 + $0x70] sm:$0xf] }
 0x265   : > { %v1772_v6 = vpop.f32.mrf.mxu2  ;;  %v1785_v53 = vpop.f32.mrf.mxu3 }
 0x266   : > { %v1773_v54 = vadd.f32 %v1772_v6, %v1196_v34  ;;  %v1748_v55 = vpop.f32.mrf.mxu0  ;;  %v1761_v56 = vpop.f32.mrf.mxu1  ;;  %v5252_v34 = vor.u32 %v6427_v49, %v5251_v48  ;;  %v5256_v6 = vor.u32 %v6426_v50, %v5253_v51  ;;  %v6417_v48 = vld [vmem:[#allocation13 + $0xa4] sm:$0xf0]  ;;  %v6416_v50 = vld [vmem:[#allocation13 + $0xa4] sm:$0xf] }
 0x267   : > { %v5189_v55 = vld [vmem:[#allocation13 + $0x78] sm:$0xf0]  ;;  %v5243_v56 = vld [vmem:[#allocation13 + $0xe0] sm:$0xf]  ;;  %v6401_v51 = vld [vmem:[#allocation13 + $0x24] sm:$0xf0] }
 0x268   : > { %v1786_v59 = vadd.f32 %v1785_v53, %v1773_v54  ;;  %v5188_v53 = vor.u32 %v6411_v52, %v5187_v5  ;;  %v6410_v54 = vld [vmem:[#allocation13 + $0x74] sm:$0xf]  ;;  %v5213_v5 = vld [vmem:[#allocation13 + $0xa8] sm:$0xf0]  ;;  %v6400_v52 = vld [vmem:[#allocation13 + $0x24] sm:$0xf] }
 0x269   : > { %v5192_v57 = vor.u32 %v6410_v54, %v5189_v55 }
 0x26a   : > { %v1844_v61 = vpack.c.bf16 %v1786_v59, %v1760_v58  ;;  %v6425_v58 = vld [vmem:[#allocation13 + $0xe4] sm:$0xf0]  ;;  %v6424_v59 = vld [vmem:[#allocation13 + $0xe4] sm:$0xf] }
 0x26b   : > { %v5248_v62 = vor.u32 %v6424_v59, %v5245_v60  ;;  %v6415_v59 = vld [vmem:[#allocation13 + $0x94] sm:$0xf0]  ;;  %v5216_v60 = vor.u32 %v6416_v50, %v5213_v5 }
 0x26c   : > { %v1898_v63 = vunpack.c.h.b16 %v1844_v61  ;;  %1853 = vmatpush.bf16.xpose.msrb.mxu0 %v1844_v61  ;;  %v5244_v61 = vor.u32 %v6425_v58, %v5243_v56  ;;  %v5203_v58 = vld [vmem:[#allocation13 + $0x90] sm:$0xf] }
 0x26d   : > { %v1774_v1 = vpop.f32.mrf.mxu2  ;;  %v1787_v2 = vpop.f32.mrf.mxu3 }
 0x26e   : > { %v1899_v3 = vpack.c.b16 %v1898_v63, %v1898_v63  ;;  %v5179_v63 = vld [vmem:[#allocation13 + $0x60] sm:$0xf]  ;;  %v6408_v1 = vld [vmem:[#allocation13 + $0x64] sm:$0xf] }
 0x26f   : > { %v1798_v4 = vpop.f32.mrf.mxu0  ;;  %v1811_v36 = vpop.f32.mrf.mxu1 }
 0x270   : > { %1908 = vmatpush.bf16.xpose.msrb.mxu2 %v1899_v3  ;;  %v1799_v10 = vadd.f32 %v1798_v4, %v1197_v37  ;;  %v5181_v3 = vld [vmem:[#allocation13 + $0x68] sm:$0xf0]  ;;  %v5235_v4 = vld [vmem:[#allocation13 + $0xd0] sm:$0xf]  ;;  %v6422_v37 = vld [vmem:[#allocation13 + $0xd4] sm:$0xf] }
 0x271   : > { %v5184_v7 = vor.u32 %v6408_v1, %v5181_v3  ;;  %v6398_v3 = vld [vmem:[#allocation13 + $0x14] sm:$0xf] }
 0x272   : > { %v1812_v16 = vadd.f32 %v1811_v36, %v1799_v10  ;;  %v6423_v36 = vld [vmem:[#allocation13 + $0xd4] sm:$0xf0] }
 0x273   : > { %1854 = vmatmul.bf16.vlgmr.msrb.gmra.mxu0 %v1843_v0  ;;  %v6409_v0 = vld [vmem:[#allocation13 + $0x64] sm:$0xf0]  ;;  %v5236_v10 = vor.u32 %v6423_v36, %v5235_v4  ;;  %v5141_v4 = vld [vmem:[#allocation13 + $0x18] sm:$0xf0]  ;;  %v5204_v36 = vor.u32 %v6415_v59, %v5203_v58  ;;  %v5315_v58 = vld [vmem:[#allocation19 + $0x70] sm:$0xf] }
 0x274   : > { %2149 = vmatpush.bf16.msra.mxu0 %v5188_v53  ;;  %v5180_v2 = vor.u32 %v6409_v0, %v5179_v63  ;;  %v5139_v63 = vld [vmem:[#allocation13 + $0x10] sm:$0xf]  ;;  %v6399_v0 = vld [vmem:[#allocation13 + $0x14] sm:$0xf0]  ;;  %v6443_v59 = vld [vmem:[#allocation19 + $0x74] sm:$0xf0] }
 0x276   : > { %v1824_v11 = vpop.f32.mrf.mxu2  ;;  %v1837_v12 = vpop.f32.mrf.mxu3 }
 0x277   : > { %v1825_v13 = vadd.f32 %v1824_v11, %v1198_v8  ;;  %v1800_v14 = vpop.f32.mrf.mxu0  ;;  %v1813_v15 = vpop.f32.mrf.mxu1  ;;  %1909 = vmatmul.bf16.vlgmr.msrb.gmra.mxu2 %v1895_v9  ;;  %v5237_v8 = vld [vmem:[#allocation13 + $0xd8] sm:$0xf0]  ;;  %v5171_v9 = vld [vmem:[#allocation13 + $0x50] sm:$0xf]  ;;  %v6407_v11 = vld [vmem:[#allocation13 + $0x54] sm:$0xf0] }
 0x278   : > { %2175 = vmatpush.bf16.msra.mxu2 %v5192_v57  ;;  %2150 = vmatpush.bf16.msra.mxu0 %v5180_v2  ;;  %v5240_v14 = vor.u32 %v6422_v37, %v5237_v8  ;;  %v5172_v15 = vor.u32 %v6407_v11, %v5171_v9  ;;  %v5205_v2 = vld [vmem:[#allocation13 + $0x98] sm:$0xf0]  ;;  %v5144_v37 = vor.u32 %v6398_v3, %v5141_v4  ;;  %v5195_v11 = vld [vmem:[#allocation13 + $0x80] sm:$0xf] }
 0x279   : > { %v1838_v17 = vadd.f32 %v1837_v12, %v1825_v13  ;;  %v6406_v12 = vld [vmem:[#allocation13 + $0x54] sm:$0xf]  ;;  %v5173_v13 = vld [vmem:[#allocation13 + $0x58] sm:$0xf0]  ;;  %v5381_v4 = vld [vmem:[#allocation19 + $0xf8] sm:$0xf0] }
 0x27a   : > { %v6458_v3 = vld [vmem:[#allocation19 + $0xf4] sm:$0xf] }
 0x27b   : > { %v1845_v18 = vpack.c.bf16 %v1838_v17, %v1812_v16  ;;  %v5227_v16 = vld [vmem:[#allocation13 + $0xc0] sm:$0xf]  ;;  %v6421_v17 = vld [vmem:[#allocation13 + $0xc4] sm:$0xf0] }
 0x27c   : > { %2176 = vmatpush.bf16.msra.mxu2 %v5184_v7  ;;  %2151 = vmatpush.bf16.msra.mxu0 %v5172_v15  ;;  %v5197_v15 = vld [vmem:[#allocation13 + $0x88] sm:$0xf0] }
 0x27d   : > { %v1928_v19 = vunpack.c.h.b16 %v1845_v18  ;;  %v1878_v20 = vsel %vm1876_vm7, %v1845_v18, 0  ;;  %v6420_v18 = vld [vmem:[#allocation13 + $0xc4] sm:$0xf] }
 0x27e   : > { %v1826_v21 = vpop.f32.mrf.mxu2  ;;  %v1839_v22 = vpop.f32.mrf.mxu3  ;;  %1887 = vmatpush.bf16.msrb.mxu1 %v1878_v20  ;;  %v5229_v20 = vld [vmem:[#allocation13 + $0xc8] sm:$0xf0] }
 0x27f   : > { %v1929_v23 = vpack.c.b16 %v1928_v19, %v1928_v19  ;;  %v5176_v19 = vor.u32 %v6406_v12, %v5173_v13  ;;  %v5163_v21 = vld [vmem:[#allocation13 + $0x40] sm:$0xf]  ;;  %v6405_v22 = vld [vmem:[#allocation13 + $0x44] sm:$0xf0]  ;;  %v6412_v13 = vld [vmem:[#allocation13 + $0x84] sm:$0xf] }
 0x280   : > { %v6413_v12 = vld [vmem:[#allocation13 + $0x84] sm:$0xf0] }
 0x281   : > { %v1934_v24 = vsel %vm1876_vm7, %v1929_v23, 0  ;;  %v6404_v23 = vld [vmem:[#allocation13 + $0x44] sm:$0xf]  ;;  %2177 = vmatpush.bf16.msra.mxu2 %v5176_v19 }
 0x282   : > { %1943 = vmatpush.bf16.msrb.mxu3 %v1934_v24  ;;  %2162 = vmatpush.bf16.msra.mxu1 %v5252_v34  ;;  %v5165_v24 = vld [vmem:[#allocation13 + $0x48] sm:$0xf0]  ;;  %v5147_v34 = vld [vmem:[#allocation13 + $0x20] sm:$0xf]  ;;  %v6396_v19 = vld [vmem:[#allocation13 + $0x4] sm:$0xf] }
 0x283   : > { %v5148_v57 = vor.u32 %v6401_v51, %v5147_v34 }
 0x286   : > { %2188 = vmatpush.bf16.msra.mxu3 %v5256_v6  ;;  %2163 = vmatpush.bf16.msra.mxu1 %v5244_v61  ;;  %v5149_v6 = vld [vmem:[#allocation13 + $0x28] sm:$0xf0] }
 0x287   : > { %v5152_v61 = vor.u32 %v6400_v52, %v5149_v6 }
 0x28a   : > { %2189 = vmatpush.bf16.msra.mxu3 %v5248_v62  ;;  %2164 = vmatpush.bf16.msra.mxu1 %v5236_v10  ;;  %v6414_v62 = vld [vmem:[#allocation13 + $0x94] sm:$0xf] }
 0x28b   : > { %v5208_v7 = vor.u32 %v6414_v62, %v5205_v2  ;;  %v6459_v62 = vld [vmem:[#allocation19 + $0xf4] sm:$0xf0] }
 0x28e   : > { %2190 = vmatpush.bf16.msra.mxu3 %v5240_v14  ;;  %v5196_v14 = vor.u32 %v6413_v12, %v5195_v11  ;;  %v5309_v11 = vld [vmem:[#allocation19 + $0x68] sm:$0xf0] }
 0x2f0   : > { %v1855_v25 = vpop.f32.mrf.mxu0 }
 0x2f1   : > { %v1859_v31 = vsel %vm1026_vm8, %v1855_v25, -1e+09  ;;  %v5228_v25 = vor.u32 %v6421_v17, %v5227_v16  ;;  %v5200_v16 = vor.u32 %v6412_v13, %v5197_v15  ;;  %v5131_v17 = vld [vmem:[#allocation13] sm:$0xf]  ;;  %v5373_v15 = vld [vmem:[#allocation19 + $0xe8] sm:$0xf0] }
 0x2f2   : > { %v1861_v35 = vsel %vm1860_vm9, %v1859_v31, -inf }
 0x2f3   : > { %2165 = vmatpush.bf16.msra.mxu1 %v5228_v25 }
 0x2f8   : > { %v1857_v27 = vpop.f32.mrf.mxu0 }
 0x2f9   : > { %v5232_v27 = vor.u32 %v6420_v18, %v5229_v20  ;;  %v6397_v18 = vld [vmem:[#allocation13 + $0x4] sm:$0xf0] }
 0x2fa   : > { %v1910_v28 = vpop.f32.mrf.mxu2  ;;  %v5132_v20 = vor.u32 %v6397_v18, %v5131_v17  ;;  %v5299_v17 = vld [vmem:[#allocation19 + $0x50] sm:$0xf]  ;;  %v6439_v18 = vld [vmem:[#allocation19 + $0x54] sm:$0xf0] }
 0x2fb   : > { %v1914_v29 = vsel %vm1026_vm8, %v1910_v28, -1e+09  ;;  %v5164_v28 = vor.u32 %v6405_v22, %v5163_v21  ;;  %2191 = vmatpush.bf16.msra.mxu3 %v5232_v27  ;;  %v5133_v21 = vld [vmem:[#allocation13 + $0x8] sm:$0xf0] }
 0x2fc   : > { %v1915_v30 = vsel %vm1860_vm9, %v1914_v29, -inf }
 0x2fd   : > { %1916 = vmax.xlane.f32.xlu1 %v1915_v30  ;;  %v6419_v30 = vld [vmem:[#allocation13 + $0xb4] sm:$0xf0]  ;;  %2152 = vmatpush.bf16.msra.mxu0 %v5164_v28  ;;  %v1983_v28 = vld [vmem:[#allocation14] sm:$0x3] }
 0x302   : > { %v1912_v32 = vpop.f32.mrf.mxu2 }
 0x303   : > { %v5168_v32 = vor.u32 %v6404_v23, %v5165_v24 }
 0x305   : > { %1862 = vmax.xlane.f32.xlu1 %v1861_v35  ;;  %v5221_v35 = vld [vmem:[#allocation13 + $0xb8] sm:$0xf0]  ;;  %2178 = vmatpush.bf16.msra.mxu2 %v5168_v32 }
 0x370   : > { %v1917_v38 = vpop.xlane.xlu1 %1916 }
 0x371   : > { %v1918_v39 = vsub.f32 %v1914_v29, %v1917_v38  ;;  %v5219_v29 = vld [vmem:[#allocation13 + $0xb0] sm:$0xf] }
 0x372   : > { %v5155_v38 = vld [vmem:[#allocation13 + $0x30] sm:$0xf] }
 0x373   : > { %v1919_v40 = vmul.f32 1.442695, %v1918_v39  ;;  %v6403_v39 = vld [vmem:[#allocation13 + $0x34] sm:$0xf0] }
 0x375   : > { %6876 = vpow2.f32 %v1919_v40  ;;  %v6402_v40 = vld [vmem:[#allocation13 + $0x34] sm:$0xf] }
 0x378   : > { %v1863_v41 = vpop.xlane.xlu1 %1862 }
 0x379   : > { %v1864_v42 = vsub.f32 %v1859_v31, %v1863_v41  ;;  %v6418_v31 = vld [vmem:[#allocation13 + $0xb4] sm:$0xf]  ;;  %v5157_v41 = vld [vmem:[#allocation13 + $0x38] sm:$0xf0] }
 0x37a   : > { %v5160_v49 = vor.u32 %v6402_v40, %v5157_v41 }
 0x37b   : > { %v7908_v43 = vpop.eup %6876  ;;  %v1865_v44 = vmul.f32 1.442695, %v1864_v42  ;;  %v5220_v42 = vor.u32 %v6419_v30, %v5219_v29  ;;  %v1985_v30 = vperm.slane %v1983_v28, 0 }
 0x37c   : > { %v1921_v45 = vsel %vm1860_vm9, %v7908_v43, 0.0  ;;  %2179 = vmatpush.bf16.msra.mxu2 %v5160_v49  ;;  %v6901_v49 = vld [vmem:[%s7819_s1 + $0x8] sm:$0xff] }
 0x37d   : > { %6878 = vpow2.f32 %v1865_v44  ;;  %1922 = vadd.xlane.f32.xlu2 %v1921_v45  ;;  %v5224_v44 = vor.u32 %v6418_v31, %v5221_v35  ;;  %v5156_v45 = vor.u32 %v6403_v39, %v5155_v38  ;;  %2166 = vmatpush.bf16.msra.mxu1 %v5220_v42  ;;  %v1986_v35 = vperm.slane %v1983_v28, 1  ;;  %v5291_v28 = vld [vmem:[#allocation19 + $0x40] sm:$0xf] }
 0x37f   : > { %2192 = vmatpush.bf16.msra.mxu3 %v5224_v44  ;;  %2153 = vmatpush.bf16.msra.mxu0 %v5156_v45 }
 0x380   : > { %2180 = vmatpush.bf16.msra.mxu2 %v5152_v61  ;;  %v5316_v61 = vor.u32 %v6443_v59, %v5315_v58  ;;  %v5275_v59 = vld [vmem:[#allocation19 + $0x20] sm:$0xf] }
 0x383   : > { %v7912_v46 = vpop.eup %6878  ;;  %2154 = vmatpush.bf16.msra.mxu0 %v5148_v57  ;;  %2193 = vmatpush.bf16.msra.mxu3 %v5216_v60  ;;  %v5379_v60 = vld [vmem:[#allocation19 + $0xf0] sm:$0xf] }
 0x384   : > { %v1867_v47 = vsel %vm1860_vm9, %v7912_v46, 0.0  ;;  %2181 = vmatpush.bf16.msra.mxu2 %v5144_v37  ;;  %v5371_v37 = vld [vmem:[#allocation19 + $0xe0] sm:$0xf] }
 0x385   : > { %1868 = vadd.xlane.f32.xlu2 %v1867_v47  ;;  %v5211_v47 = vld [vmem:[#allocation13 + $0xa0] sm:$0xf] }
 0x386   : > { %v5212_v54 = vor.u32 %v6417_v48, %v5211_v47  ;;  %v6900_v47 = vld [vmem:[%s7819_s1] sm:$0xff]  ;;  %s8190_s1 = sld [smem:[#allocation62_spill]] }
 0x387   : > { %2194 = vmatpush.bf16.msra.mxu3 %v5208_v7  ;;  %v6441_v7 = vld [vmem:[#allocation19 + $0x64] sm:$0xf0] }
 0x388   : > { %2167 = vmatpush.bf16.msra.mxu1 %v5212_v54 }
 0x38b   : > { %2195 = vmatpush.bf16.msra.mxu3 %v5200_v16 }
 0x38c   : > { %2168 = vmatpush.bf16.msra.mxu1 %v5204_v36  ;;  %v5384_v36 = vor.u32 %v6458_v3, %v5381_v4  ;;  %v6448_v4 = vld [vmem:[#allocation19 + $0xa4] sm:$0xf] }
 0x390   : > { %2169 = vmatpush.bf16.msra.mxu1 %v5196_v14  ;;  %v6456_v14 = vld [vmem:[#allocation19 + $0xe4] sm:$0xf] }
 0x391   : > { %v5376_v16 = vor.u32 %v6456_v14, %v5373_v15  ;;  %v6446_v14 = vld [vmem:[#allocation19 + $0x94] sm:$0xf] }
 0x3f0   : > { %v1923_v26 = vpop.xlane.xlu2 %1922 }
 0x3f1   : > { %6880 = vrcp.f32 %v1923_v26 }
 0x3f7   : > { %v6881_v53 = vpop.eup %6880 }
 0x3f8   : > { %v1925_v55 = vmul.f32 %v6881_v53, %v7908_v43  ;;  %v1869_v56 = vpop.xlane.xlu2 %1868  ;;  %v5140_v43 = vor.u32 %v6399_v0, %v5139_v63  ;;  %v6442_v63 = vld [vmem:[#allocation19 + $0x74] sm:$0xf]  ;;  %v5317_v0 = vld [vmem:[#allocation19 + $0x78] sm:$0xf0] }
 0x3f9   : > { %6882 = vrcp.f32 %v1869_v56  ;;  %v5320_v2 = vor.u32 %v6442_v63, %v5317_v0  ;;  %v6449_v63 = vld [vmem:[#allocation19 + $0xa4] sm:$0xf0]  ;;  %v6432_v0 = vld [vmem:[#allocation19 + $0x24] sm:$0xf] }
 0x3fa   : > { %v1926_v1 = vpack.c.bf16 %v1925_v55, %v1925_v55  ;;  %2155 = vmatpush.bf16.msra.mxu0 %v5140_v43  ;;  %v5307_v43 = vld [vmem:[#allocation19 + $0x60] sm:$0xf] }
 0x3fc   : > { %5128 = vmatmul.msk.bf16.vlgmr.msrb.gmra.mxu3 %vm1860_vm9, %v1926_v1  ;;  %v5380_v1 = vor.u32 %v6459_v62, %v5379_v60  ;;  %v6433_v60 = vld [vmem:[#allocation19 + $0x24] sm:$0xf0] }
 0x3fd   : > { %2499 = vmatpush.bf16.msrb.mxu3 %v5384_v36  ;;  %v5276_v62 = vor.u32 %v6433_v60, %v5275_v59  ;;  %v5341_v36 = vld [vmem:[#allocation19 + $0xa8] sm:$0xf0]  ;;  %v5621_v60 = vld [vmem:[#allocation20 + $0x1d0] sm:$0xf0] }
 0x3fe   : > { %2156 = vmatpush.bf16.msra.mxu0 %v5132_v20  ;;  %v5300_v20 = vor.u32 %v6439_v18, %v5299_v17  ;;  %v5259_v17 = vld [vmem:[#allocation19] sm:$0xf]  ;;  %v6429_v18 = vld [vmem:[#allocation19 + $0x4] sm:$0xf0] }
 0x3ff   : > { %v6883_v8 = vpop.eup %6882 }
 0x400   : > { %v1871_v9 = vmul.f32 %v6883_v8, %v7912_v46  ;;  %v5136_v46 = vor.u32 %v6396_v19, %v5133_v21  ;;  %v5308_v8 = vor.u32 %v6441_v7, %v5307_v43  ;;  %v5363_v19 = vld [vmem:[#allocation19 + $0xd0] sm:$0xf]  ;;  %v6455_v21 = vld [vmem:[#allocation19 + $0xd4] sm:$0xf0]  ;;  %v5344_v7 = vor.u32 %v6448_v4, %v5341_v36  ;;  %v5477_v4 = vld [vmem:[#allocation20 + $0xb0] sm:$0xf0] }
 0x401   : > { %2500 = vmatpush.bf16.msrb.mxu3 %v5376_v16  ;;  %v5267_v43 = vld [vmem:[#allocation19 + $0x10] sm:$0xf]  ;;  %v5333_v16 = vld [vmem:[#allocation19 + $0x98] sm:$0xf0]  ;;  %v6512_v36 = vld [vmem:[#allocation20 + $0x1a4] sm:$0xf] }
 0x402   : > { %v1872_v10 = vpack.c.bf16 %v1871_v9, %v1871_v9  ;;  %2182 = vmatpush.bf16.msra.mxu2 %v5136_v46  ;;  %2460 = vmatpush.bf16.msrb.mxu0 %v5316_v61  ;;  %v6457_v9 = vld [vmem:[#allocation19 + $0xe4] sm:$0xf0]  ;;  %v6438_v46 = vld [vmem:[#allocation19 + $0x54] sm:$0xf]  ;;  %v5339_v61 = vld [vmem:[#allocation19 + $0xa0] sm:$0xf] }
 0x403   : > { %v5372_v12 = vor.u32 %v6457_v9, %v5371_v37  ;;  %v6431_v37 = vld [vmem:[#allocation19 + $0x14] sm:$0xf0] }
 0x404   : > { %5127 = vmatmul.msk.bf16.vlgmr.msrb.gmra.mxu1 %vm1860_vm9, %v1872_v10  ;;  %v6440_v10 = vld [vmem:[#allocation19 + $0x64] sm:$0xf]  ;;  %v6447_v9 = vld [vmem:[#allocation19 + $0x94] sm:$0xf0] }
 0x405   : > { %2473 = vmatpush.bf16.msrb.mxu1 %v5380_v1  ;;  %v5312_v13 = vor.u32 %v6440_v10, %v5309_v11  ;;  %v5277_v1 = vld [vmem:[#allocation19 + $0x28] sm:$0xf0]  ;;  %v5268_v10 = vor.u32 %v6431_v37, %v5267_v43  ;;  %v5605_v43 = vld [vmem:[#allocation20 + $0x1b0] sm:$0xf0] }
 0x406   : > { %2486 = vmatpush.bf16.msrb.mxu2 %v5320_v2  ;;  %2461 = vmatpush.bf16.msrb.mxu0 %v5308_v8  ;;  %v5340_v2 = vor.u32 %v6449_v63, %v5339_v61  ;;  %v5280_v3 = vor.u32 %v6432_v0, %v5277_v1  ;;  %v5331_v8 = vld [vmem:[#allocation19 + $0x90] sm:$0xf]  ;;  %v5475_v61 = vld [vmem:[#allocation20 + $0xa0] sm:$0xf] }
 0x407   : > { %v5332_v11 = vor.u32 %v6447_v9, %v5331_v8  ;;  %v5603_v0 = vld [vmem:[#allocation20 + $0x1a0] sm:$0xf]  ;;  %v6514_v1 = vld [vmem:[#allocation20 + $0x1ac] sm:$0xf0] }
 0x408   : > { %v5604_v8 = vor.u32 %v6514_v1, %v5603_v0  ;;  %v5539_v1 = vld [vmem:[#allocation20 + $0x120] sm:$0xf] }
 0x409   : > { %2474 = vmatpush.bf16.msrb.mxu1 %v5372_v12  ;;  %v6430_v12 = vld [vmem:[#allocation19 + $0x14] sm:$0xf] }
 0x40a   : > { %2487 = vmatpush.bf16.msrb.mxu2 %v5312_v13  ;;  %2462 = vmatpush.bf16.msrb.mxu0 %v5300_v20  ;;  %v5269_v13 = vld [vmem:[#allocation19 + $0x18] sm:$0xf0]  ;;  %v5323_v20 = vld [vmem:[#allocation19 + $0x80] sm:$0xf] }
 0x40b   : > { %v5272_v15 = vor.u32 %v6430_v12, %v5269_v13  ;;  %v5587_v12 = vld [vmem:[#allocation20 + $0x180] sm:$0xf] }
 0x47f   : > { %v1945_v22 = vpop.f32.mrf.mxu3 }
 0x480   : > { %v1950_v23 = vpack.c.bf16 %v1945_v22, %v1945_v22  ;;  %v5301_v22 = vld [vmem:[#allocation19 + $0x58] sm:$0xf0] }
 0x481   : > { %v1889_v24 = vpop.f32.mrf.mxu1 }
 0x482   : > { %v1949_v25 = vpack.c.bf16 %v1889_v24, %v1889_v24  ;;  %2170 = vmatmul.bf16.vlgmr.msra.gmra.mxu1 %v1950_v23  ;;  %2196 = vmatmul.bf16.vlgmr.msra.gmra.mxu3 %v1950_v23  ;;  %v5364_v23 = vor.u32 %v6455_v21, %v5363_v19  ;;  %v5304_v24 = vor.u32 %v6438_v46, %v5301_v22  ;;  %v6445_v21 = vld [vmem:[#allocation19 + $0x84] sm:$0xf0]  ;;  %v6428_v46 = vld [vmem:[#allocation19 + $0x4] sm:$0xf] }
 0x483   : > { %v5336_v19 = vor.u32 %v6446_v14, %v5333_v16  ;;  %v5608_v14 = vor.u32 %v6512_v36, %v5605_v43  ;;  %v6476_v16 = vld [vmem:[#allocation20 + $0x84] sm:$0xf] }
 0x484   : > { %2157 = vmatmul.bf16.vlgmr.msra.gmra.mxu0 %v1949_v25  ;;  %2183 = vmatmul.bf16.vlgmr.msra.gmra.mxu2 %v1949_v25  ;;  %v6454_v25 = vld [vmem:[#allocation19 + $0xd4] sm:$0xf]  ;;  %v6496_v36 = vld [vmem:[#allocation20 + $0x124] sm:$0xf] }
 0x485   : > { %2475 = vmatpush.bf16.msrb.mxu1 %v5364_v23  ;;  %2488 = vmatpush.bf16.msrb.mxu2 %v5304_v24  ;;  %v5260_v23 = vor.u32 %v6429_v18, %v5259_v17  ;;  %v5261_v24 = vld [vmem:[#allocation19 + $0x8] sm:$0xf0]  ;;  %v5461_v17 = vld [vmem:[#allocation20 + $0x90] sm:$0xf0]  ;;  %v6508_v18 = vld [vmem:[#allocation20 + $0x184] sm:$0xf] }
 0x487   : > { %v1947_v26 = vpop.f32.mrf.mxu3 }
 0x488   : > { %v5365_v26 = vld [vmem:[#allocation19 + $0xd8] sm:$0xf0] }
 0x489   : > { %v1891_v27 = vpop.f32.mrf.mxu1 }
 0x48a   : > { %v5368_v27 = vor.u32 %v6454_v25, %v5365_v26  ;;  %v6444_v25 = vld [vmem:[#allocation19 + $0x84] sm:$0xf]  ;;  %v5325_v26 = vld [vmem:[#allocation19 + $0x88] sm:$0xf0] }
 0x48c   : > { %2501 = vmatpush.bf16.msrb.mxu3 %v5368_v27 }
 0x4ff   : > { %v2171_v29 = vpop.f32.mrf.mxu1 }
 0x501   : > { %v2158_v31 = vpop.f32.mrf.mxu0 }
 0x502   : > { %v2159_v32 = vadd.f32 %v2158_v31, %v1985_v30  ;;  %v5355_v30 = vld [vmem:[#allocation19 + $0xc0] sm:$0xf] }
 0x504   : > { %v2172_v41 = vadd.f32 %v2171_v29, %v2159_v32  ;;  %v6437_v29 = vld [vmem:[#allocation19 + $0x44] sm:$0xf0] }
 0x505   : > { %v2197_v38 = vpop.f32.mrf.mxu3  ;;  %v5292_v31 = vor.u32 %v6437_v29, %v5291_v28  ;;  %v6453_v32 = vld [vmem:[#allocation19 + $0xc4] sm:$0xf0]  ;;  %v5324_v28 = vor.u32 %v6445_v21, %v5323_v20  ;;  %v5264_v29 = vor.u32 %v6428_v46, %v5261_v24 }
 0x506   : > { %v7921_v48 = vadd.f32 %v6900_v47, %v2172_v41  ;;  %v6452_v41 = vld [vmem:[#allocation19 + $0xc4] sm:$0xf]  ;;  %v6435_v47 = vld [vmem:[#allocation19 + $0x34] sm:$0xf0] }
 0x507   : > { %v2173_v39 = vpop.f32.mrf.mxu1  ;;  %v2184_v40 = vpop.f32.mrf.mxu2  ;;  %2463 = vmatpush.bf16.msrb.mxu0 %v5292_v31  ;;  %v6490_v31 = vld [vmem:[#allocation20 + $0xec] sm:$0xf0] }
 0x508   : > { %v2185_v42 = vadd.f32 %v2184_v40, %v1986_v35  ;;  %v6436_v35 = vld [vmem:[#allocation19 + $0x44] sm:$0xf]  ;;  %v5356_v39 = vor.u32 %v6453_v32, %v5355_v30  ;;  %v5507_v30 = vld [vmem:[#allocation20 + $0xe0] sm:$0xf]  ;;  %v5328_v32 = vor.u32 %v6444_v25, %v5325_v26 }
 0x509   : > { %v2160_v44 = vpop.f32.mrf.mxu0 }
 0x50a   : > { %v2198_v45 = vadd.f32 %v2197_v38, %v2185_v42  ;;  %v5293_v38 = vld [vmem:[#allocation19 + $0x48] sm:$0xf0]  ;;  %2476 = vmatpush.bf16.msrb.mxu1 %v5356_v39  ;;  %v6522_v39 = vld [vmem:[#allocation20 + $0x1ec] sm:$0xf0] }
 0x50b   : > { %v5296_v40 = vor.u32 %v6436_v35, %v5293_v38  ;;  %v5357_v42 = vld [vmem:[#allocation19 + $0xc8] sm:$0xf0]  ;;  %v5508_v35 = vor.u32 %v6490_v31, %v5507_v30  ;;  %v5635_v38 = vld [vmem:[#allocation20 + $0x1e0] sm:$0xf] }
 0x50c   : > { %v7924_v50 = vadd.f32 %v6901_v49, %v2198_v45  ;;  %v5360_v44 = vor.u32 %v6452_v41, %v5357_v42  ;;  %v5283_v45 = vld [vmem:[#allocation19 + $0x30] sm:$0xf]  ;;  %v5509_v41 = vld [vmem:[#allocation20 + $0xf0] sm:$0xf0]  ;;  %v5636_v42 = vor.u32 %v6522_v39, %v5635_v38  ;;  %v5571_v30 = vld [vmem:[#allocation20 + $0x160] sm:$0xf] }
 0x50d   : > { %v2199_v34 = vpop.f32.mrf.mxu3  ;;  %2489 = vmatpush.bf16.msrb.mxu2 %v5296_v40  ;;  %v5347_v49 = vld [vmem:[#allocation19 + $0xb0] sm:$0xf]  ;;  %v6488_v40 = vld [vmem:[#allocation20 + $0xe4] sm:$0xf]  ;;  %v5445_v38 = vld [vmem:[#allocation20 + $0x70] sm:$0xf0] }
 0x50e   : > { %v2205_v51 = vadd.f32 %v7924_v50, %v7921_v48  ;;  %2502 = vmatpush.bf16.msrb.mxu3 %v5360_v44  ;;  %v5284_v34 = vor.u32 %v6435_v47, %v5283_v45  ;;  %v5512_v44 = vor.u32 %v6488_v40, %v5509_v41  ;;  %v6520_v45 = vld [vmem:[#allocation20 + $0x1e4] sm:$0xf]  ;;  %v5637_v47 = vld [vmem:[#allocation20 + $0x1f0] sm:$0xf0] }
 0x50f   : > { %v2186_v5 = vpop.f32.mrf.mxu2 }
 0x510   : > { %2206 = vadd.xlane.f32.xlu0 %v2205_v51  ;;  %v6451_v51 = vld [vmem:[#allocation19 + $0xb4] sm:$0xf0]  ;;  %v6434_v5 = vld [vmem:[#allocation19 + $0x34] sm:$0xf]  ;;  %2464 = vmatpush.bf16.msrb.mxu0 %v5284_v34  ;;  %v5640_v34 = vor.u32 %v6520_v45, %v5637_v47  ;;  %v5427_v45 = vld [vmem:[#allocation20 + $0x40] sm:$0xf] }
 0x514   : > { %2465 = vmatpush.bf16.msrb.mxu0 %v5276_v62  ;;  %v6482_v62 = vld [vmem:[#allocation20 + $0xac] sm:$0xf0] }
 0x515   : > { %v5476_v37 = vor.u32 %v6482_v62, %v5475_v61  ;;  %v5411_v61 = vld [vmem:[#allocation20 + $0x20] sm:$0xf]  ;;  %v6466_v62 = vld [vmem:[#allocation20 + $0x2c] sm:$0xf0] }
 0x516   : > { %v5412_v43 = vor.u32 %v6466_v62, %v5411_v61  ;;  %v6485_v62 = vld [vmem:[#allocation20 + $0xcc] sm:$0xf] }
 0x518   : > { %2466 = vmatpush.bf16.msrb.mxu0 %v5268_v10  ;;  %v5459_v10 = vld [vmem:[#allocation20 + $0x80] sm:$0xf] }
 0x51c   : > { %2467 = vmatpush.bf16.msrb.mxu0 %v5260_v23 }
 0x520   : > { %2918 = vmatpush.bf16.msra.mxu0 %v5508_v35  ;;  %v6472_v35 = vld [vmem:[#allocation20 + $0x64] sm:$0xf] }
 0x521   : > { %v5448_v41 = vor.u32 %v6472_v35, %v5445_v38 }
 0x583   : > { %v2207_v52 = vpop.xlane.xlu0 %2206 }
 0x584   : > { %v2208_v6 = vmul.f32 %v2207_v52, %v7868_v33  ;;  %v5285_v52 = vld [vmem:[#allocation19 + $0x38] sm:$0xf0] }
 0x586   : > { %v7930_v53 = vsub.f32 %v7921_v48, %v2208_v6  ;;  %v7933_v54 = vsub.f32 %v7924_v50, %v2208_v6  ;;  %v5348_v6 = vor.u32 %v6451_v51, %v5347_v49  ;;  %v5491_v49 = vld [vmem:[#allocation20 + $0xc0] sm:$0xf]  ;;  %v6486_v51 = vld [vmem:[#allocation20 + $0xcc] sm:$0xf0] }
 0x588   : > { %v2211_v55 = vmul.f32 %v7930_v53, %v7930_v53  ;;  %v2212_v56 = vmul.f32 %v7933_v54, %v7933_v54  ;;  %2477 = vmatpush.bf16.msrb.mxu1 %v5348_v6  ;;  %v5492_v6 = vor.u32 %v6486_v51, %v5491_v49  ;;  %v6470_v49 = vld [vmem:[#allocation20 + $0x4c] sm:$0xf0] }
 0x589   : > { %v6502_v51 = vld [vmem:[#allocation20 + $0x14c] sm:$0xf0] }
 0x58a   : > { %v2213_v57 = vadd.f32 %v2212_v56, %v2211_v55  ;;  %v5288_v55 = vor.u32 %v6434_v5, %v5285_v52  ;;  %v6450_v56 = vld [vmem:[#allocation19 + $0xb4] sm:$0xf]  ;;  %v5619_v5 = vld [vmem:[#allocation20 + $0x1c0] sm:$0xf]  ;;  %v6518_v52 = vld [vmem:[#allocation20 + $0x1cc] sm:$0xf0]  ;;  %2919 = vmatpush.bf16.msra.mxu0 %v5492_v6 }
 0x58b   : > { %v6468_v6 = vld [vmem:[#allocation20 + $0x44] sm:$0xf] }
 0x58c   : > { %2214 = vadd.xlane.f32.xlu1 %v2213_v57  ;;  %v5349_v57 = vld [vmem:[#allocation19 + $0xb8] sm:$0xf0]  ;;  %2490 = vmatpush.bf16.msrb.mxu2 %v5288_v55  ;;  %v6484_v55 = vld [vmem:[#allocation20 + $0xc4] sm:$0xf] }
 0x58d   : > { %v5352_v58 = vor.u32 %v6450_v56, %v5349_v57  ;;  %2478 = vmatpush.bf16.msrb.mxu1 %v5340_v2  ;;  %v5493_v56 = vld [vmem:[#allocation20 + $0xd0] sm:$0xf0]  ;;  %v6516_v57 = vld [vmem:[#allocation20 + $0x1c4] sm:$0xf] }
 0x58e   : > { %v5496_v59 = vor.u32 %v6484_v55, %v5493_v56  ;;  %v5624_v63 = vor.u32 %v6516_v57, %v5621_v60  ;;  %v6480_v2 = vld [vmem:[#allocation20 + $0xa4] sm:$0xf]  ;;  %2920 = vmatpush.bf16.msra.mxu0 %v5476_v37  ;;  %v5429_v55 = vld [vmem:[#allocation20 + $0x50] sm:$0xf0] }
 0x58f   : > { %2503 = vmatpush.bf16.msrb.mxu3 %v5352_v58  ;;  %v5620_v58 = vor.u32 %v6518_v52, %v5619_v5  ;;  %v5480_v9 = vor.u32 %v6480_v2, %v5477_v4  ;;  %v5428_v52 = vor.u32 %v6470_v49, %v5427_v45  ;;  %v6500_v56 = vld [vmem:[#allocation20 + $0x144] sm:$0xf]  ;;  %v5557_v60 = vld [vmem:[#allocation20 + $0x150] sm:$0xf0]  ;;  %v6498_v2 = vld [vmem:[#allocation20 + $0x12c] sm:$0xf0] }
 0x590   : > { %2491 = vmatpush.bf16.msrb.mxu2 %v5280_v3  ;;  %v5560_v0 = vor.u32 %v6500_v56, %v5557_v60  ;;  %v5413_v4 = vld [vmem:[#allocation20 + $0x30] sm:$0xf0]  ;;  %v5645_v60 = vld [vmem:[#allocation20 + $0x1f8] sm:$0xf0] }
 0x591   : > { %2479 = vmatpush.bf16.msrb.mxu1 %v5332_v11  ;;  %v6478_v11 = vld [vmem:[#allocation20 + $0x8c] sm:$0xf0] }
 0x592   : > { %v5460_v21 = vor.u32 %v6478_v11, %v5459_v10  ;;  %v5523_v11 = vld [vmem:[#allocation20 + $0x100] sm:$0xf] }
 0x593   : > { %2504 = vmatpush.bf16.msrb.mxu3 %v5344_v7 }
 0x594   : > { %2492 = vmatpush.bf16.msrb.mxu2 %v5272_v15  ;;  %v6510_v15 = vld [vmem:[#allocation20 + $0x18c] sm:$0xf0]  ;;  %2921 = vmatpush.bf16.msra.mxu0 %v5460_v21 }
 0x595   : > { %2480 = vmatpush.bf16.msrb.mxu1 %v5324_v28  ;;  %v5588_v46 = vor.u32 %v6510_v15, %v5587_v12  ;;  %v5443_v28 = vld [vmem:[#allocation20 + $0x60] sm:$0xf]  ;;  %v6494_v12 = vld [vmem:[#allocation20 + $0x10c] sm:$0xf0]  ;;  %v6492_v15 = vld [vmem:[#allocation20 + $0x104] sm:$0xf] }
 0x597   : > { %2505 = vmatpush.bf16.msrb.mxu3 %v5336_v19  ;;  %v5589_v19 = vld [vmem:[#allocation20 + $0x190] sm:$0xf0] }
 0x598   : > { %2493 = vmatpush.bf16.msrb.mxu2 %v5264_v29  ;;  %v5592_v24 = vor.u32 %v6508_v18, %v5589_v19  ;;  %v6474_v29 = vld [vmem:[#allocation20 + $0x6c] sm:$0xf0]  ;;  %v5524_v18 = vor.u32 %v6494_v12, %v5523_v11  ;;  %v6487_v11 = vld [vmem:[#allocation20 + $0xd4] sm:$0xf0] }
 0x599   : > { %2932 = vmatpush.bf16.msra.mxu1 %v5636_v42  ;;  %v5444_v31 = vor.u32 %v6474_v29, %v5443_v28  ;;  %v6504_v42 = vld [vmem:[#allocation20 + $0x164] sm:$0xf]  ;;  %v2204_v29 = vld [vmem:[%s8182_s21] sm:$0x3]  ;;  %s8188_s21 = sld [smem:[#allocation57_spill]] }
 0x59b   : > { %2506 = vmatpush.bf16.msrb.mxu3 %v5328_v32  ;;  %v6506_v32 = vld [vmem:[#allocation20 + $0x16c] sm:$0xf0]  ;;  %2922 = vmatpush.bf16.msra.mxu0 %v5444_v31 }
 0x59c   : > { %2946 = vmatpush.bf16.msra.mxu2 %v5512_v44  ;;  %v5572_v40 = vor.u32 %v6506_v32, %v5571_v30  ;;  %v5573_v44 = vld [vmem:[#allocation20 + $0x170] sm:$0xf0] }
 0x59d   : > { %2933 = vmatpush.bf16.msra.mxu1 %v5620_v58  ;;  %v5576_v47 = vor.u32 %v6504_v42, %v5573_v44  ;;  %v2255_v42 = vperm.slane %v2204_v29, 1 }
 0x59f   : > { %2960 = vmatpush.bf16.msra.mxu3 %v5640_v34  ;;  %v5555_v34 = vld [vmem:[#allocation20 + $0x140] sm:$0xf]  ;;  %2923 = vmatpush.bf16.msra.mxu0 %v5428_v52 }
 0x5a0   : > { %2947 = vmatpush.bf16.msra.mxu2 %v5496_v59  ;;  %v5556_v58 = vor.u32 %v6502_v51, %v5555_v34  ;;  %v5432_v59 = vor.u32 %v6468_v6, %v5429_v55  ;;  %v6299_v52 = vld [vmem:[%s7827_s0 + $0x4] sm:$0xf0]  ;;  %v6298_v6 = vld [vmem:[%s7827_s0 + $0x4] sm:$0xf] }
 0x5a1   : > { %2934 = vmatpush.bf16.msra.mxu1 %v5604_v8  ;;  %v5395_v8 = vld [vmem:[#allocation20] sm:$0xf] }
 0x5a3   : > { %2961 = vmatpush.bf16.msra.mxu3 %v5624_v63  ;;  %2924 = vmatpush.bf16.msra.mxu0 %v5412_v43 }
 0x5a4   : > { %2948 = vmatpush.bf16.msra.mxu2 %v5480_v9  ;;  %v6462_v9 = vld [vmem:[#allocation20 + $0xc] sm:$0xf0] }
 0x5a5   : > { %2935 = vmatpush.bf16.msra.mxu1 %v5588_v46 }
 0x5a7   : > { %2962 = vmatpush.bf16.msra.mxu3 %v5608_v14  ;;  %v5397_v14 = vld [vmem:[#allocation20 + $0x10] sm:$0xf0] }
 0x5a9   : > { %2936 = vmatpush.bf16.msra.mxu1 %v5572_v40  ;;  %v2254_v40 = vperm.slane %v2204_v29, 0  ;;  %v6473_v29 = vld [vmem:[#allocation20 + $0x6c] sm:$0xf] }
 0x5ab   : > { %2963 = vmatpush.bf16.msra.mxu3 %v5592_v24 }
 0x5ad   : > { %2937 = vmatpush.bf16.msra.mxu1 %v5556_v58 }
 0x5af   : > { %2964 = vmatpush.bf16.msra.mxu3 %v5576_v47 }
 0x5b3   : > { %2965 = vmatpush.bf16.msra.mxu3 %v5560_v0 }
 0x5ff   : > { %v2215_v22 = vpop.xlane.xlu1 %2214 }
 0x600   : > { %v7939_v27 = vmul.f32 0.003921569, %v2215_v22  ;;  %v5464_v22 = vor.u32 %v6476_v16, %v5461_v17  ;;  %v5525_v16 = vld [vmem:[#allocation20 + $0x110] sm:$0xf0]  ;;  %v5396_v17 = vor.u32 %v6462_v9, %v5395_v8  ;;  %v6523_v9 = vld [vmem:[#allocation20 + $0x1f4] sm:$0xf0] }
 0x601   : > { %v5528_v21 = vor.u32 %v6492_v15, %v5525_v16  ;;  %v5613_v15 = vld [vmem:[#allocation20 + $0x1b8] sm:$0xf0] }
 0x602   : > { %6884 = vrsqrt.f32 %v7939_v27  ;;  %vm2224_vm10 = vcmp.eq.f32.partialorder %v7939_v27, inf  ;;  %vm2226_vm11 = vcmp.eq.f32.partialorder %v7939_v27, 0.0  ;;  %v2227_v25 = vand.u32 2147483648, %v7939_v27  ;;  %2949 = vmatpush.bf16.msra.mxu2 %v5464_v22  ;;  %2925 = vmatpush.bf16.msra.mxu0 %v5396_v17  ;;  %v6477_v17 = vld [vmem:[#allocation20 + $0x8c] sm:$0xf] }
 0x606   : > { %2950 = vmatpush.bf16.msra.mxu2 %v5448_v41 }
 0x608   : > { %v6885_v3 = vpop.eup %6884 }
 0x609   : > { %v2218_v7 = vmul.f32 %v6885_v3, %v7939_v27 }
 0x60a   : > { %2951 = vmatpush.bf16.msra.mxu2 %v5432_v59  ;;  %v6521_v59 = vld [vmem:[#allocation20 + $0x1ec] sm:$0xf] }
 0x60b   : > { %v2219_v13 = vmul.f32 %v6885_v3, %v2218_v7  ;;  %v5540_v7 = vor.u32 %v6498_v2, %v5539_v1  ;;  %v5648_v61 = vor.u32 %v6521_v59, %v5645_v60  ;;  %v5515_v1 = vld [vmem:[#allocation20 + $0xe8] sm:$0xf]  ;;  %v6491_v2 = vld [vmem:[#allocation20 + $0xf4] sm:$0xf0]  ;;  %v6465_v60 = vld [vmem:[#allocation20 + $0x2c] sm:$0xf] }
 0x60d   : > { %v2220_v20 = vmul.f32 0.5, %v2219_v13  ;;  %v6460_v13 = vld [vmem:[#allocation20 + $0x4] sm:$0xf]  ;;  %2938 = vmatpush.bf16.msra.mxu1 %v5540_v7  ;;  %v5485_v7 = vld [vmem:[#allocation20 + $0xb8] sm:$0xf0] }
 0x60e   : > { %v5400_v19 = vor.u32 %v6460_v13, %v5397_v14  ;;  %v6513_v13 = vld [vmem:[#allocation20 + $0x1ac] sm:$0xf] }
 0x60f   : > { %v2221_v23 = vsub.f32 1.5, %v2220_v20  ;;  %v5616_v16 = vor.u32 %v6513_v13, %v5613_v15 }
 0x611   : > { %v2222_v26 = vmul.f32 %v6885_v3, %v2221_v23  ;;  %v6464_v3 = vld [vmem:[#allocation20 + $0x24] sm:$0xf]  ;;  %2939 = vmatpush.bf16.msra.mxu1 %v5524_v18  ;;  %v5469_v18 = vld [vmem:[#allocation20 + $0x98] sm:$0xf0] }
 0x612   : > { %v5416_v37 = vor.u32 %v6464_v3, %v5413_v4  ;;  %v6517_v3 = vld [vmem:[#allocation20 + $0x1cc] sm:$0xf]  ;;  %v5516_v4 = vor.u32 %v6491_v2, %v5515_v1  ;;  %v5435_v1 = vld [vmem:[#allocation20 + $0x48] sm:$0xf]  ;;  %v6471_v2 = vld [vmem:[#allocation20 + $0x54] sm:$0xf0] }
 0x613   : > { %v2223_v39 = vmul.f32 %v2222_v26, %v7939_v27  ;;  %v2203_v26 = vld [vmem:[%s8117_s16] sm:$0x3] }
 0x614   : > { %2952 = vmatpush.bf16.msra.mxu2 %v5416_v37  ;;  %v2247_v32 = vperm.slane %v2203_v26, 0  ;;  %v2248_v35 = vperm.slane %v2203_v26, 1  ;;  %v5643_v37 = vld [vmem:[#allocation20 + $0x1e8] sm:$0xf]  ;;  %v5597_v26 = vld [vmem:[#allocation20 + $0x198] sm:$0xf0] }
 0x615   : > { %v2225_v5 = vsel %vm2224_vm10, %v7939_v27, %v2223_v39  ;;  %v5541_v27 = vld [vmem:[#allocation20 + $0x130] sm:$0xf0]  ;;  %v5644_v12 = vor.u32 %v6523_v9, %v5643_v37  ;;  %v5405_v37 = vld [vmem:[#allocation20 + $0x18] sm:$0xf0]  ;;  %v5563_v9 = vld [vmem:[#allocation20 + $0x148] sm:$0xf] }
 0x616   : > { %v2228_v57 = vsel %vm2226_vm11, %v2227_v25, %v2225_v5  ;;  %v5544_v10 = vor.u32 %v6496_v36, %v5541_v27  ;;  %v5387_v5 = vld [vmem:[%s7827_s0] sm:$0xf] }
 0x617   : > { %v2229_v63 = vadd.f32 1e-06, %v2228_v57  ;;  %v7964_v55 = vor.u32 %v6299_v52, %v5387_v5  ;;  %v5517_v57 = vld [vmem:[#allocation20 + $0xf8] sm:$0xf0]  ;;  %v6481_v27 = vld [vmem:[#allocation20 + $0xac] sm:$0xf] }
 0x618   : > { %2966 = vmatpush.bf16.msra.mxu3 %v5544_v10  ;;  %2953 = vmatpush.bf16.msra.mxu2 %v5400_v19  ;;  %v5629_v36 = vld [vmem:[#allocation20 + $0x1d8] sm:$0xf0]  ;;  %v5488_v8 = vor.u32 %v6481_v27, %v5485_v7  ;;  %v5499_v10 = vld [vmem:[#allocation20 + $0xc8] sm:$0xf]  ;;  %v6511_v5 = vld [vmem:[#allocation20 + $0x194] sm:$0xf0] }
 0x619   : > { %6886 = vrcp.f32 %v2229_v63  ;;  %v2241_v23 = vand.u32 2147483648, %v2229_v63  ;;  %v2239_v25 = vand.u32 2147483647, %v2229_v63  ;;  %vm2235_vm13 = vweird.f32 %v2229_v63  ;;  %v5627_v19 = vld [vmem:[#allocation20 + $0x1c8] sm:$0xf] }
 0x61a   : > { %v5632_v43 = vor.u32 %v6517_v3, %v5629_v36  ;;  %v5500_v14 = vor.u32 %v6487_v11, %v5499_v10  ;;  %v5451_v52 = vld [vmem:[#allocation20 + $0x68] sm:$0xf]  ;;  %v5436_v36 = vor.u32 %v6471_v2, %v5435_v1  ;;  %v6461_v7 = vld [vmem:[#allocation20 + $0xc] sm:$0xf]  ;;  %v6503_v10 = vld [vmem:[#allocation20 + $0x154] sm:$0xf0] }
 0x61b   : > { %v2242_v30 = vor.u32 1.1754944e-38, %v2241_v23  ;;  %vm2240_vm15 = vcmp.eq.f32.partialorder %v2239_v25, 8.507059e+37  ;;  %v6509_v25 = vld [vmem:[#allocation20 + $0x18c] sm:$0xf]  ;;  %v5419_v11 = vld [vmem:[#allocation20 + $0x28] sm:$0xf]  ;;  %v5564_v13 = vor.u32 %v6503_v10, %v5563_v9 }
 0x61c   : > { %2967 = vmatpush.bf16.msra.mxu3 %v5528_v21  ;;  %v6519_v21 = vld [vmem:[#allocation20 + $0x1d4] sm:$0xf0] }
 0x61d   : > { %v5628_v23 = vor.u32 %v6519_v21, %v5627_v19  ;;  %v6499_v19 = vld [vmem:[#allocation20 + $0x134] sm:$0xf0]  ;;  %v5403_v21 = vld [vmem:[#allocation20 + $0x8] sm:$0xf] }
 0x61f   : > { %v6887_v20 = vpop.eup %6886 }
 0x620   : > { %v2231_v46 = vmul.f32 %v6887_v20, %v2229_v63  ;;  %vm2236_vm12 = vweird.f32 %v6887_v20  ;;  %v5501_v63 = vld [vmem:[#allocation20 + $0xd8] sm:$0xf0] }
 0x621   : > { %vm2237_vm14 = vmor %vm2235_vm13, %vm2236_vm12  ;;  %v5504_v0 = vor.u32 %v6485_v62, %v5501_v63  ;;  %v5579_v62 = vld [vmem:[#allocation20 + $0x168] sm:$0xf] }
 0x622   : > { %v2232_v22 = vsub.f32 1.0, %v2231_v46  ;;  %v5483_v46 = vld [vmem:[#allocation20 + $0xa8] sm:$0xf] }
 0x624   : > { %v2233_v24 = vmul.f32 %v6887_v20, %v2232_v22  ;;  %v6483_v22 = vld [vmem:[#allocation20 + $0xb4] sm:$0xf0] }
 0x626   : > { %v2234_v28 = vadd.f32 %v6887_v20, %v2233_v24  ;;  %v5484_v24 = vor.u32 %v6483_v22, %v5483_v46  ;;  %v6463_v46 = vld [vmem:[#allocation20 + $0x14] sm:$0xf0] }
 0x627   : > { %v5404_v22 = vor.u32 %v6463_v46, %v5403_v21 }
 0x628   : > { %v2238_v31 = vsel %vm2237_vm14, %v6887_v20, %v2234_v28  ;;  %v5472_v20 = vor.u32 %v6477_v17, %v5469_v18  ;;  %v5600_v28 = vor.u32 %v6509_v25, %v5597_v26  ;;  %v5547_v18 = vld [vmem:[#allocation20 + $0x128] sm:$0xf] }
 0x629   : > { %v2243_v38 = vsel %vm2240_vm15, %v2242_v30, %v2238_v31  ;;  %v5453_v30 = vld [vmem:[#allocation20 + $0x78] sm:$0xf0]  ;;  %v5611_v31 = vld [vmem:[#allocation20 + $0x1a8] sm:$0xf] }
 0x62a   : > { %v2244_v39 = vmul.f32 %v2243_v38, %v7930_v53  ;;  %v2245_v41 = vmul.f32 %v2243_v38, %v7933_v54  ;;  %v5389_v53 = vld [vmem:[%s7827_s0 + $0x8] sm:$0xf0]  ;;  %v6489_v54 = vld [vmem:[#allocation20 + $0xec] sm:$0xf] }
 0x62b   : > { %v7966_v56 = vor.u32 %v6298_v6, %v5389_v53  ;;  %v5520_v58 = vor.u32 %v6489_v54, %v5517_v57  ;;  %v5467_v38 = vld [vmem:[#allocation20 + $0x88] sm:$0xf]  ;;  %v6475_v6 = vld [vmem:[#allocation20 + $0x74] sm:$0xf0]  ;;  %v6501_v54 = vld [vmem:[#allocation20 + $0x14c] sm:$0xf] }
 0x62c   : > { %v2251_v44 = vmul.f32 %v2247_v32, %v2244_v39  ;;  %v2252_v45 = vmul.f32 %v2248_v35, %v2245_v41  ;;  %v5456_v32 = vor.u32 %v6473_v29, %v5453_v30  ;;  %v6515_v35 = vld [vmem:[#allocation20 + $0x1b4] sm:$0xf0]  ;;  %v6505_v41 = vld [vmem:[#allocation20 + $0x16c] sm:$0xf]  ;;  %v5452_v57 = vor.u32 %v6475_v6, %v5451_v52 }
 0x62d   : > { %v6479_v39 = vld [vmem:[#allocation20 + $0x94] sm:$0xf0] }
 0x62e   : > { %v2258_v47 = vadd.f32 %v2254_v40, %v2251_v44  ;;  %v2259_v49 = vadd.f32 %v2255_v42, %v2252_v45  ;;  %v5612_v40 = vor.u32 %v6515_v35, %v5611_v31  ;;  %v5468_v42 = vor.u32 %v6479_v39, %v5467_v38  ;;  %v5581_v44 = vld [vmem:[#allocation20 + $0x178] sm:$0xf0] }
 0x62f   : > { %v5584_v45 = vor.u32 %v6505_v41, %v5581_v44 }
 0x630   : > { %v2260_v34 = vpack.c.bf16 %v2258_v47, %v2258_v47  ;;  %v2261_v51 = vpack.c.bf16 %v2259_v49, %v2259_v49  ;;  %v6469_v47 = vld [vmem:[#allocation20 + $0x4c] sm:$0xf]  ;;  %v5437_v49 = vld [vmem:[#allocation20 + $0x58] sm:$0xf0] }
 0x632   : > { %2468 = vmatmul.bf16.vlgmr.msrb.gmra.mxu0 %v2260_v34  ;;  %2481 = vmatmul.bf16.vlgmr.msrb.gmra.mxu1 %v2261_v51 }
 0x633   : > { %2494 = vmatmul.bf16.vlgmr.msrb.gmra.mxu2 %v2260_v34  ;;  %2507 = vmatmul.bf16.vlgmr.msrb.gmra.mxu3 %v2261_v51  ;;  %v5595_v34 = vld [vmem:[#allocation20 + $0x188] sm:$0xf]  ;;  %v5440_v51 = vor.u32 %v6469_v47, %v5437_v49 }
 0x634   : > { %3002 = vmatpush.bf16.msrb.mxu2 %v5520_v58  ;;  %3016 = vmatpush.bf16.msrb.mxu3 %v5648_v61  ;;  %v5596_v53 = vor.u32 %v6511_v5, %v5595_v34  ;;  %v5565_v58 = vld [vmem:[#allocation20 + $0x158] sm:$0xf0] }
 0x635   : > { %2974 = vmatpush.bf16.msrb.mxu0 %v5516_v4  ;;  %2988 = vmatpush.bf16.msrb.mxu1 %v5644_v12  ;;  %v5568_v59 = vor.u32 %v6501_v54, %v5565_v58  ;;  %v5421_v61 = vld [vmem:[#allocation20 + $0x38] sm:$0xf0]  ;;  %v6497_v4 = vld [vmem:[#allocation20 + $0x12c] sm:$0xf]  ;;  %v6467_v12 = vld [vmem:[#allocation20 + $0x34] sm:$0xf0] }
 0x636   : > { %v5424_v63 = vor.u32 %v6465_v60, %v5421_v61  ;;  %v5420_v15 = vor.u32 %v6467_v12, %v5419_v11 }
 0x638   : > { %3003 = vmatpush.bf16.msrb.mxu2 %v5504_v0  ;;  %3017 = vmatpush.bf16.msrb.mxu3 %v5632_v43  ;;  %v6507_v0 = vld [vmem:[#allocation20 + $0x174] sm:$0xf0]  ;;  %v5549_v43 = vld [vmem:[#allocation20 + $0x138] sm:$0xf0] }
 0x639   : > { %2975 = vmatpush.bf16.msrb.mxu0 %v5500_v14  ;;  %2989 = vmatpush.bf16.msrb.mxu1 %v5628_v23  ;;  %v5580_v3 = vor.u32 %v6507_v0, %v5579_v62  ;;  %v5552_v27 = vor.u32 %v6497_v4, %v5549_v43  ;;  %v6493_v14 = vld [vmem:[#allocation20 + $0x10c] sm:$0xf]  ;;  %v5531_v23 = vld [vmem:[#allocation20 + $0x108] sm:$0xf] }
 0x63c   : > { %3004 = vmatpush.bf16.msrb.mxu2 %v5488_v8  ;;  %3018 = vmatpush.bf16.msrb.mxu3 %v5616_v16  ;;  %v5408_v8 = vor.u32 %v6461_v7, %v5405_v37  ;;  %v5533_v16 = vld [vmem:[#allocation20 + $0x118] sm:$0xf0] }
 0x63d   : > { %2976 = vmatpush.bf16.msrb.mxu0 %v5484_v24  ;;  %2990 = vmatpush.bf16.msrb.mxu1 %v5612_v40  ;;  %v5536_v17 = vor.u32 %v6493_v14, %v5533_v16  ;;  %v6495_v24 = vld [vmem:[#allocation20 + $0x114] sm:$0xf0]  ;;  %v2578_v40 = vld [vmem:[%s8183_s14] sm:$0xf]  ;;  %s8189_s14 = sld [smem:[#allocation59_spill]] }
 0x63e   : > { %v5532_v25 = vor.u32 %v6495_v24, %v5531_v23  ;;  %v2580_v41 = vperm.slane %v2578_v40, 0  ;;  %v2581_v44 = vperm.slane %v2578_v40, 1  ;;  %v2583_v14 = vperm.slane %v2578_v40, 3 }
 0x640   : > { %3005 = vmatpush.bf16.msrb.mxu2 %v5472_v20  ;;  %3019 = vmatpush.bf16.msrb.mxu3 %v5600_v28  ;;  %v5548_v20 = vor.u32 %v6499_v19, %v5547_v18 }
 0x641   : > { %2977 = vmatpush.bf16.msrb.mxu0 %v5468_v42  ;;  %2991 = vmatpush.bf16.msrb.mxu1 %v5596_v53 }
 0x642   : > { %2926 = vmatmul.bf16.vlgmr.msra.gmra.mxu0 %v7964_v55  ;;  %2940 = vmatmul.bf16.vlgmr.msra.gmra.mxu1 %v7966_v56 }
 0x643   : > { %2954 = vmatmul.bf16.vlgmr.msra.gmra.mxu2 %v7964_v55  ;;  %2968 = vmatmul.bf16.vlgmr.msra.gmra.mxu3 %v7966_v56 }
 0x644   : > { %3006 = vmatpush.bf16.msrb.mxu2 %v5456_v32  ;;  %3020 = vmatpush.bf16.msrb.mxu3 %v5584_v45 }
 0x645   : > { %2978 = vmatpush.bf16.msrb.mxu0 %v5452_v57  ;;  %2992 = vmatpush.bf16.msrb.mxu1 %v5580_v3 }
 0x648   : > { %3007 = vmatpush.bf16.msrb.mxu2 %v5440_v51  ;;  %3021 = vmatpush.bf16.msrb.mxu3 %v5568_v59 }
 0x649   : > { %2979 = vmatpush.bf16.msrb.mxu0 %v5436_v36  ;;  %2993 = vmatpush.bf16.msrb.mxu1 %v5564_v13  ;;  %v2582_v13 = vperm.slane %v2578_v40, 2 }
 0x64c   : > { %3008 = vmatpush.bf16.msrb.mxu2 %v5424_v63  ;;  %3022 = vmatpush.bf16.msrb.mxu3 %v5552_v27 }
 0x64d   : > { %2980 = vmatpush.bf16.msrb.mxu0 %v5420_v15  ;;  %2994 = vmatpush.bf16.msrb.mxu1 %v5548_v20 }
 0x650   : > { %3009 = vmatpush.bf16.msrb.mxu2 %v5408_v8  ;;  %3023 = vmatpush.bf16.msrb.mxu3 %v5536_v17 }
 0x651   : > { %2981 = vmatpush.bf16.msrb.mxu0 %v5404_v22  ;;  %2995 = vmatpush.bf16.msrb.mxu1 %v5532_v25 }
 0x653   : > { %3010 = vmatmul.bf16.vlgmr.msrb.gmra.mxu2 %v7964_v55  ;;  %3024 = vmatmul.bf16.vlgmr.msrb.gmra.mxu3 %v7966_v56 }
 0x654   : > { %2982 = vmatmul.bf16.vlgmr.msrb.gmra.mxu0 %v7964_v55  ;;  %2996 = vmatmul.bf16.vlgmr.msrb.gmra.mxu1 %v7966_v56  ;;  %v2294_v55 = vld [vmem:[%s8184_s19] sm:$0x3] }
 0x655   : > { %v2297_v45 = vperm.slane %v2294_v55, 1  ;;  %v2296_v49 = vperm.slane %v2294_v55, 0 }
 0x6af   : > { %v2469_v26 = vpop.f32.mrf.mxu0  ;;  %v2482_v28 = vpop.f32.mrf.mxu1 }
 0x6b0   : > { %v2470_v6 = vadd.f32 %v2469_v26, %v2296_v49 }
 0x6b2   : > { %v2483_v61 = vadd.f32 %v2482_v28, %v2470_v6 }
 0x6b4   : > { %v2512_v36 = vmul.f32 0.088388346, %v2483_v61 }
 0x6b6   : > { %v2495_v29 = vpop.f32.mrf.mxu2  ;;  %v2508_v30 = vpop.f32.mrf.mxu3 }
 0x6b7   : > { %v2471_v31 = vpop.f32.mrf.mxu0  ;;  %v2484_v32 = vpop.f32.mrf.mxu1  ;;  %v2496_v5 = vadd.f32 %v2495_v29, %v2297_v45 }
 0x6b9   : > { %v2509_v58 = vadd.f32 %v2508_v30, %v2496_v5 }
 0x6bb   : > { %v2513_v3 = vmul.f32 0.088388346, %v2509_v58 }
 0x6bd   : > { %v3030_v8 = vpack.c.bf16 %v2513_v3, %v2512_v36  ;;  %v6539_v3 = vld [vmem:[#allocation22 + $0x74] sm:$0xf0] }
 0x6be   : > { %v2497_v35 = vpop.f32.mrf.mxu2  ;;  %v2510_v38 = vpop.f32.mrf.mxu3 }
 0x6bf   : > { %v2927_v39 = vpop.f32.mrf.mxu0  ;;  %v2941_v42 = vpop.f32.mrf.mxu1  ;;  %v3094_v11 = vunpack.c.h.b16 %v3030_v8 }
 0x6c0   : > { %v2928_v34 = vadd.f32 %v2927_v39, %v2580_v41 }
 0x6c1   : > { %v3095_v12 = vpack.c.b16 %v3094_v11, %v3094_v11 }
 0x6c2   : > { %v2942_v53 = vadd.f32 %v2941_v42, %v2928_v34  ;;  %v1027_v42 = vld [vmem:[%s890_s13] sm:$0x1] }
 0x6c3   : > { %vm1028_vm0 = vcmp.ne.s32.totalorder %v1027_v42, 0 }
 0x6c6   : > { %v2955_v56 = vpop.f32.mrf.mxu2  ;;  %v2969_v47 = vpop.f32.mrf.mxu3 }
 0x6c7   : > { %v2956_v51 = vadd.f32 %v2955_v56, %v2581_v44  ;;  %v2929_v52 = vpop.f32.mrf.mxu0  ;;  %v2943_v62 = vpop.f32.mrf.mxu1 }
 0x6c8   : > { %v2930_v57 = vadd.f32 %v2929_v52, %v2580_v41 }
 0x6c9   : > { %v2970_v54 = vadd.f32 %v2969_v47, %v2956_v51 }
 0x6ca   : > { %v2944_v1 = vadd.f32 %v2943_v62, %v2930_v57 }
 0x6cb   : > { %v3031_v0 = vpack.c.bf16 %v2970_v54, %v2942_v53 }
 0x6cd   : > { %v3037_v43 = vunpack.c.l.b16 %v3031_v0  ;;  %v3097_v27 = vunpack.c.h.b16 %v3031_v0 }
 0x6ce   : > { %v2957_v59 = vpop.f32.mrf.mxu2  ;;  %v2971_v63 = vpop.f32.mrf.mxu3 }
 0x6cf   : > { %v2958_v60 = vadd.f32 %v2957_v59, %v2581_v44  ;;  %v7475_v44 = vmov 0  }
 0x6d0   : > { %v3054_v45 = vsel %vm1028_vm0, 1, %v7475_v44  ;;  %v5677_v44 = vld [vmem:[#allocation22 + $0x30] sm:$0xf] }
 0x6d1   : > { %v2972_v2 = vadd.f32 %v2971_v63, %v2958_v60  ;;  %v2983_v15 = vpop.f32.mrf.mxu0  ;;  %v2997_v19 = vpop.f32.mrf.mxu1  ;;  %v3055_v56 = vperm.slane %v3054_v45, 0  ;;  %v6531_v45 = vld [vmem:[#allocation22 + $0x34] sm:$0xf0] }
 0x6d2   : > { %v2984_v17 = vadd.f32 %v2983_v15, %v2582_v13  ;;  %v6534_v15 = vld [vmem:[#allocation22 + $0x54] sm:$0xf] }
 0x6d3   : > { %v3032_v4 = vpack.c.bf16 %v2972_v2, %v2944_v1  ;;  %vm3056_vm1 = vcmp.eq.s32.totalorder %v3055_v56, 1  ;;  %v5709_v2 = vld [vmem:[#allocation22 + $0x70] sm:$0xf]  ;;  %v6530_v56 = vld [vmem:[#allocation22 + $0x34] sm:$0xf] }
 0x6d4   : > { %v2998_v21 = vadd.f32 %v2997_v19, %v2984_v17  ;;  %v5710_v36 = vor.u32 %v6539_v3, %v5709_v2  ;;  %v6555_v17 = vld [vmem:[#allocation22 + $0xf4] sm:$0xf0]  ;;  %v6554_v19 = vld [vmem:[#allocation22 + $0xf4] sm:$0xf] }
 0x6d5   : > { %v3038_v7 = vunpack.c.l.b16 %v3032_v4  ;;  %v3098_v37 = vunpack.c.h.b16 %v3032_v4  ;;  %v6538_v4 = vld [vmem:[#allocation22 + $0x74] sm:$0xf] }
 0x6d6   : > { %v3011_v16 = vpop.f32.mrf.mxu2  ;;  %v3025_v20 = vpop.f32.mrf.mxu3 }
 0x6d7   : > { %v3039_v9 = vpack.c.b16 %v3038_v7, %v3037_v43  ;;  %v3099_v10 = vpack.c.b16 %v3098_v37, %v3097_v27  ;;  %v3012_v18 = vadd.f32 %v3011_v16, %v2583_v14  ;;  %v5711_v43 = vld [vmem:[#allocation22 + $0x78] sm:$0xf0]  ;;  %v5701_v27 = vld [vmem:[#allocation22 + $0x60] sm:$0xf]  ;;  %v6537_v7 = vld [vmem:[#allocation22 + $0x64] sm:$0xf0] }
 0x6d8   : > { %v5714_v37 = vor.u32 %v6538_v4, %v5711_v43  ;;  %v5695_v16 = vld [vmem:[#allocation22 + $0x58] sm:$0xf0]  ;;  %v6527_v43 = vld [vmem:[#allocation22 + $0x14] sm:$0xf0] }
 0x6d9   : > { %3048 = vmatpush.bf16.xpose.msra.mxu0 %v3039_v9  ;;  %3108 = vmatpush.bf16.xpose.msra.mxu2 %v3099_v10  ;;  %v3026_v46 = vadd.f32 %v3025_v20, %v3012_v18  ;;  %v2985_v22 = vpop.f32.mrf.mxu0  ;;  %v2999_v28 = vpop.f32.mrf.mxu1  ;;  %v5703_v9 = vld [vmem:[#allocation22 + $0x68] sm:$0xf0]  ;;  %v5702_v10 = vor.u32 %v6537_v7, %v5701_v27  ;;  %v5775_v20 = vld [vmem:[#allocation22 + $0xf8] sm:$0xf0]  ;;  %v6526_v7 = vld [vmem:[#allocation22 + $0x14] sm:$0xf] }
 0x6da   : > { %v2986_v24 = vadd.f32 %v2985_v22, %v2582_v13  ;;  %v6535_v13 = vld [vmem:[#allocation22 + $0x54] sm:$0xf0]  ;;  %v5765_v22 = vld [vmem:[#allocation22 + $0xe0] sm:$0xf] }
 0x6db   : > { %v3033_v26 = vpack.c.bf16 %v3026_v46, %v2998_v21  ;;  %v5778_v46 = vor.u32 %v6554_v19, %v5775_v20  ;;  %v6524_v19 = vld [vmem:[#allocation22 + $0x4] sm:$0xf]  ;;  %v5655_v20 = vld [vmem:[#allocation22 + $0x8] sm:$0xf0] }
 0x6dc   : > { %v3000_v30 = vadd.f32 %v2999_v28, %v2986_v24  ;;  %v5698_v24 = vor.u32 %v6534_v15, %v5695_v16  ;;  %v5653_v15 = vld [vmem:[#allocation22] sm:$0xf]  ;;  %v6525_v16 = vld [vmem:[#allocation22 + $0x4] sm:$0xf0] }
 0x6dd   : > { %v3073_v32 = vunpack.c.l.b16 %v3033_v26  ;;  %v3127_v35 = vunpack.c.h.b16 %v3033_v26  ;;  %v6533_v26 = vld [vmem:[#allocation22 + $0x44] sm:$0xf0] }
 0x6de   : > { %v3013_v23 = vpop.f32.mrf.mxu2  ;;  %v3027_v29 = vpop.f32.mrf.mxu3 }
 0x6df   : > { %v3014_v25 = vadd.f32 %v3013_v23, %v2583_v14  ;;  %v5773_v14 = vld [vmem:[#allocation22 + $0xf0] sm:$0xf]  ;;  %v6553_v23 = vld [vmem:[#allocation22 + $0xe4] sm:$0xf0] }
 0x6e0   : > { %3049 = vmatmul.bf16.vlgmr.msra.gmra.mxu0 %v3030_v8  ;;  %3109 = vmatmul.bf16.vlgmr.msra.gmra.mxu2 %v3095_v12  ;;  %v6536_v8 = vld [vmem:[#allocation22 + $0x64] sm:$0xf]  ;;  %v5693_v12 = vld [vmem:[#allocation22 + $0x50] sm:$0xf]  ;;  %v5774_v18 = vor.u32 %v6555_v17, %v5773_v14  ;;  %v5766_v28 = vor.u32 %v6553_v23, %v5765_v22  ;;  %v6546_v22 = vld [vmem:[#allocation22 + $0xb4] sm:$0xf] }
 0x6e1   : > { %v3028_v31 = vadd.f32 %v3027_v29, %v3014_v25  ;;  %3347 = vmatpush.bf16.msrb.mxu0 %v5710_v36  ;;  %3373 = vmatpush.bf16.msrb.mxu2 %v5714_v37  ;;  %v5706_v11 = vor.u32 %v6536_v8, %v5703_v9  ;;  %v5694_v21 = vor.u32 %v6535_v13, %v5693_v12  ;;  %v5685_v25 = vld [vmem:[#allocation22 + $0x40] sm:$0xf]  ;;  %v6552_v29 = vld [vmem:[#allocation22 + $0xe4] sm:$0xf]  ;;  %v5661_v36 = vld [vmem:[#allocation22 + $0x10] sm:$0xf] }
 0x6e2   : > { %v5663_v37 = vld [vmem:[#allocation22 + $0x18] sm:$0xf0]  ;;  %v5662_v9 = vor.u32 %v6527_v43, %v5661_v36  ;;  %v5741_v17 = vld [vmem:[#allocation22 + $0xb0] sm:$0xf] }
 0x6e3   : > { %v3034_v38 = vpack.c.bf16 %v3028_v31, %v3000_v30  ;;  %v6532_v30 = vld [vmem:[#allocation22 + $0x44] sm:$0xf]  ;;  %v5687_v31 = vld [vmem:[#allocation22 + $0x48] sm:$0xf0]  ;;  %v5743_v23 = vld [vmem:[#allocation22 + $0xb8] sm:$0xf0] }
 0x6e4   : > { %v5690_v42 = vor.u32 %v6532_v30, %v5687_v31  ;;  %v5725_v31 = vld [vmem:[#allocation22 + $0x90] sm:$0xf] }
 0x6e5   : > { %v3074_v39 = vunpack.c.l.b16 %v3034_v38  ;;  %v3128_v40 = vunpack.c.h.b16 %v3034_v38  ;;  %3348 = vmatpush.bf16.msrb.mxu0 %v5702_v10  ;;  %3374 = vmatpush.bf16.msrb.mxu2 %v5706_v11  ;;  %v5757_v38 = vld [vmem:[#allocation22 + $0xd0] sm:$0xf]  ;;  %v5666_v11 = vor.u32 %v6526_v7, %v5663_v37 }
 0x6e7   : > { %v3075_v55 = vpack.c.b16 %v3074_v39, %v3073_v32  ;;  %v3129_v41 = vpack.c.b16 %v3128_v40, %v3127_v35  ;;  %v5767_v32 = vld [vmem:[#allocation22 + $0xe8] sm:$0xf0]  ;;  %v6551_v39 = vld [vmem:[#allocation22 + $0xd4] sm:$0xf0]  ;;  %v5686_v40 = vor.u32 %v6533_v26, %v5685_v25  ;;  %v6545_v25 = vld [vmem:[#allocation22 + $0xa4] sm:$0xf0] }
 0x6e8   : > { %v5770_v35 = vor.u32 %v6552_v29, %v5767_v32  ;;  %v6544_v26 = vld [vmem:[#allocation22 + $0xa4] sm:$0xf]  ;;  %v5735_v29 = vld [vmem:[#allocation22 + $0xa8] sm:$0xf0]  ;;  %v6543_v32 = vld [vmem:[#allocation22 + $0x94] sm:$0xf0] }
 0x6e9   : > { %3087 = vmatpush.bf16.msra.mxu1 %v3075_v55  ;;  %3141 = vmatpush.bf16.msra.mxu3 %v3129_v41  ;;  %v6550_v55 = vld [vmem:[#allocation22 + $0xd4] sm:$0xf]  ;;  %v5759_v41 = vld [vmem:[#allocation22 + $0xd8] sm:$0xf0]  ;;  %v5738_v30 = vor.u32 %v6544_v26, %v5735_v29  ;;  %v6580_v26 = vld [vmem:[#allocation23 + $0xc4] sm:$0xf] }
 0x6ea   : > { %3349 = vmatpush.bf16.msrb.mxu0 %v5694_v21  ;;  %3375 = vmatpush.bf16.msrb.mxu2 %v5698_v24  ;;  %v5746_v24 = vor.u32 %v6546_v22, %v5743_v23  ;;  %v5877_v22 = vld [vmem:[#allocation23 + $0xc0] sm:$0xf]  ;;  %v6582_v23 = vld [vmem:[#allocation23 + $0xcc] sm:$0xf0] }
 0x6ed   : > { %3360 = vmatpush.bf16.msrb.mxu1 %v5774_v18  ;;  %3386 = vmatpush.bf16.msrb.mxu3 %v5778_v46  ;;  %v5654_v18 = vor.u32 %v6525_v16, %v5653_v15  ;;  %v5658_v46 = vor.u32 %v6524_v19, %v5655_v20  ;;  %v6021_v15 = vld [vmem:[#allocation23 + $0x1e0] sm:$0xf]  ;;  %v6616_v20 = vld [vmem:[#allocation23 + $0x1e4] sm:$0xf] }
 0x6ee   : > { %3350 = vmatpush.bf16.msrb.mxu0 %v5686_v40  ;;  %3376 = vmatpush.bf16.msrb.mxu2 %v5690_v42  ;;  %v6540_v42 = vld [vmem:[#allocation22 + $0x84] sm:$0xf] }
 0x6f1   : > { %3361 = vmatpush.bf16.msrb.mxu1 %v5766_v28  ;;  %3387 = vmatpush.bf16.msrb.mxu3 %v5770_v35  ;;  %v6542_v35 = vld [vmem:[#allocation22 + $0x94] sm:$0xf] }
 0x75d   : > { %v3050_v47 = vpop.f32.mrf.mxu0 }
 0x75e   : > { %v3057_v49 = vsel %vm3056_vm1, %v3050_v47, -1e+09  ;;  %v5758_v47 = vor.u32 %v6551_v39, %v5757_v38  ;;  %v5726_v38 = vor.u32 %v6543_v32, %v5725_v31  ;;  %v5727_v39 = vld [vmem:[#allocation22 + $0x98] sm:$0xf0]  ;;  %v6612_v31 = vld [vmem:[#allocation23 + $0x1c4] sm:$0xf] }
 0x75f   : > { %v3059_v34 = vsel %vm3058_vm2, %v3057_v49, -inf  ;;  %v5730_v40 = vor.u32 %v6542_v35, %v5727_v39  ;;  %v6007_v32 = vld [vmem:[#allocation23 + $0x1d0] sm:$0xf0]  ;;  %v6578_v39 = vld [vmem:[#allocation23 + $0xac] sm:$0xf0] }
 0x760   : > { %3060 = vmax.xlane.f32.xlu0 %v3059_v34  ;;  %v5762_v34 = vor.u32 %v6550_v55, %v5759_v41  ;;  %3362 = vmatpush.bf16.msrb.mxu1 %v5758_v47  ;;  %v5717_v55 = vld [vmem:[#allocation22 + $0x80] sm:$0xf]  ;;  %v6541_v41 = vld [vmem:[#allocation22 + $0x84] sm:$0xf0]  ;;  %v6010_v35 = vor.u32 %v6612_v31, %v6007_v32  ;;  %v5927_v32 = vld [vmem:[#allocation23 + $0x130] sm:$0xf0] }
 0x762   : > { %3388 = vmatpush.bf16.msrb.mxu3 %v5762_v34 }
 0x763   : > { %v3110_v51 = vpop.f32.mrf.mxu2 }
 0x764   : > { %v3114_v5 = vsel %vm3056_vm1, %v3110_v51, -1e+09  ;;  %v5749_v51 = vld [vmem:[#allocation22 + $0xc0] sm:$0xf] }
 0x765   : > { %v3052_v52 = vpop.f32.mrf.mxu0  ;;  %v3115_v6 = vsel %vm3058_vm2, %v3114_v5, -inf }
 0x766   : > { %3116 = vmax.xlane.f32.xlu2 %v3115_v6  ;;  %v6548_v6 = vld [vmem:[#allocation22 + $0xc4] sm:$0xf] }
 0x76b   : > { %v3112_v53 = vpop.f32.mrf.mxu2 }
 0x76c   : > { %v5751_v53 = vld [vmem:[#allocation22 + $0xc8] sm:$0xf0] }
 0x7d3   : > { %v3061_v54 = vpop.xlane.xlu0 %3060 }
 0x7d4   : > { %v3062_v57 = vsub.f32 %v3057_v49, %v3061_v54  ;;  %v5679_v49 = vld [vmem:[#allocation22 + $0x38] sm:$0xf0]  ;;  %v5678_v54 = vor.u32 %v6531_v45, %v5677_v44  ;;  %v5718_v44 = vor.u32 %v6541_v41, %v5717_v55  ;;  %v5719_v45 = vld [vmem:[#allocation22 + $0x88] sm:$0xf0]  ;;  %v6610_v41 = vld [vmem:[#allocation23 + $0x1ac] sm:$0xf0] }
 0x7d6   : > { %v3063_v58 = vmul.f32 1.442695, %v3062_v57  ;;  %v5682_v57 = vor.u32 %v6530_v56, %v5679_v49  ;;  %3351 = vmatpush.bf16.msrb.mxu0 %v5678_v54  ;;  %v5722_v56 = vor.u32 %v6540_v42, %v5719_v45  ;;  %v3181_v54 = vld [vmem:[%s8185_s30] sm:$0x3]  ;;  %v6576_v42 = vld [vmem:[#allocation23 + $0xa4] sm:$0xf]  ;;  %s4476_s30 = scalar_lea.hbm %s8190_s1, %s6684_s2 }
 0x7d7   : > { %s4480_s0 = sshll.u32 %s4476_s30, 4  ;;  %s4481_s0 = int_to_ptr.hbm [resolvable:$true] %s4480_s0 }
 0x7d8   : > { %6888 = vpow2.f32 %v3063_v58  ;;  %v5669_v58 = vld [vmem:[#allocation22 + $0x20] sm:$0xf]  ;;  %3377 = vmatpush.bf16.msrb.mxu2 %v5682_v57  ;;  %s7366_s7 = sshra.s32 %s4481_s0, 4  ;;  %s7367_s7 = int_to_ptr.hbm [resolvable:$true] %s7366_s7 }
 0x7d9   : > { %v3117_v59 = vpop.xlane.xlu2 %3116  ;;  %p7373_p7 = scmp.lt.s32.totalorder %s7367_s7, %s8190_s1 }
 0x7da   : > { %v3118_v60 = vsub.f32 %v3114_v5, %v3117_v59  ;;  %v6549_v5 = vld [vmem:[#allocation22 + $0xc4] sm:$0xf0] }
 0x7db   : > { %v6529_v59 = vld [vmem:[#allocation22 + $0x24] sm:$0xf0] }
 0x7dc   : > { %v3119_v61 = vmul.f32 1.442695, %v3118_v60  ;;  %v5750_v60 = vor.u32 %v6549_v5, %v5749_v51  ;;  %v5670_v2 = vor.u32 %v6529_v59, %v5669_v58  ;;  %v3183_v58 = vperm.slane %v3181_v54, 0 }
 0x7de   : > { %v7986_v62 = vpop.eup %6888  ;;  %6890 = vpow2.f32 %v3119_v61  ;;  %v6528_v61 = vld [vmem:[#allocation22 + $0x24] sm:$0xf]  ;;  %3363 = vmatpush.bf16.msrb.mxu1 %v5750_v60  ;;  %3352 = vmatpush.bf16.msrb.mxu0 %v5670_v2  ;;  %v3184_v60 = vperm.slane %v3181_v54, 1 }
 0x7df   : > { %v3065_v63 = vsel %vm3058_vm2, %v7986_v62, 0.0  ;;  %v6572_v54 = vld [vmem:[#allocation23 + $0x84] sm:$0xf] }
 0x7e0   : > { %3066 = vadd.xlane.f32.xlu2 %v3065_v63  ;;  %v5671_v63 = vld [vmem:[#allocation22 + $0x28] sm:$0xf0] }
 0x7e1   : > { %v5674_v4 = vor.u32 %v6528_v61, %v5671_v63 }
 0x7e2   : > { %3353 = vmatpush.bf16.msrb.mxu0 %v5662_v9 }
 0x7e3   : > { %3378 = vmatpush.bf16.msrb.mxu2 %v5674_v4 }
 0x7e4   : > { %v7990_v0 = vpop.eup %6890 }
 0x7e5   : > { %v3121_v1 = vsel %vm3058_vm2, %v7990_v0, 0.0 }
 0x7e6   : > { %3122 = vadd.xlane.f32.xlu1 %v3121_v1  ;;  %v5754_v1 = vor.u32 %v6548_v6, %v5751_v53  ;;  %3354 = vmatpush.bf16.msrb.mxu0 %v5654_v18  ;;  %v5895_v18 = vld [vmem:[#allocation23 + $0xf0] sm:$0xf0] }
 0x7e7   : > { %3379 = vmatpush.bf16.msrb.mxu2 %v5666_v11 }
 0x7e8   : > { %3389 = vmatpush.bf16.msrb.mxu3 %v5754_v1 }
 0x7eb   : > { %3380 = vmatpush.bf16.msrb.mxu2 %v5658_v46 }
 0x7ec   : > { %3390 = vmatpush.bf16.msrb.mxu3 %v5746_v24  ;;  %v6005_v24 = vld [vmem:[#allocation23 + $0x1c0] sm:$0xf] }
 0x7f0   : > { %3391 = vmatpush.bf16.msrb.mxu3 %v5738_v30 }
 0x7f4   : > { %3392 = vmatpush.bf16.msrb.mxu3 %v5730_v40  ;;  %v5989_v40 = vld [vmem:[#allocation23 + $0x1a0] sm:$0xf] }
 0x7f5   : > { %v5990_v45 = vor.u32 %v6610_v41, %v5989_v40  ;;  %v5909_v40 = vld [vmem:[#allocation23 + $0x100] sm:$0xf]  ;;  %v6556_v41 = vld [vmem:[#allocation23 + $0x4] sm:$0xf] }
 0x7f8   : > { %3393 = vmatpush.bf16.msrb.mxu3 %v5722_v56 }
 0x853   : > { %v3067_v52 = vpop.xlane.xlu2 %3066 }
 0x854   : > { %6892 = vrcp.f32 %v3067_v52 }
 0x859   : > { %v3123_v3 = vpop.xlane.xlu1 %3122 }
 0x85a   : > { %v6893_v27 = vpop.eup %6892  ;;  %6894 = vrcp.f32 %v3123_v3 }
 0x85b   : > { %v3069_v8 = vmul.f32 %v6893_v27, %v7986_v62  ;;  %v6547_v62 = vld [vmem:[#allocation22 + $0xb4] sm:$0xf0] }
 0x85c   : > { %v5742_v21 = vor.u32 %v6547_v62, %v5741_v17  ;;  %v6618_v17 = vld [vmem:[#allocation23 + $0x1ec] sm:$0xf0] }
 0x85d   : > { %v3070_v10 = vpack.c.bf16 %v3069_v8, %v3069_v8  ;;  %v6022_v62 = vor.u32 %v6618_v17, %v6021_v15  ;;  %v5941_v15 = vld [vmem:[#allocation23 + $0x140] sm:$0xf]  ;;  %v6598_v17 = vld [vmem:[#allocation23 + $0x14c] sm:$0xf0] }
 0x85e   : > { %3364 = vmatpush.bf16.msrb.mxu1 %v5742_v21  ;;  %v6023_v21 = vld [vmem:[#allocation23 + $0x1f0] sm:$0xf0] }
 0x85f   : > { %5649 = vmatmul.msk.bf16.vlgmr.msra.gmra.mxu1 %vm3058_vm2, %v3070_v10  ;;  %v6026_v46 = vor.u32 %v6616_v20, %v6023_v21  ;;  %v6596_v20 = vld [vmem:[#allocation23 + $0x144] sm:$0xf]  ;;  %v5943_v21 = vld [vmem:[#allocation23 + $0x150] sm:$0xf0] }
 0x860   : > { %v6895_v12 = vpop.eup %6894 }
 0x861   : > { %v3125_v13 = vmul.f32 %v6895_v12, %v7990_v0  ;;  %v5733_v0 = vld [vmem:[#allocation22 + $0xa0] sm:$0xf] }
 0x862   : > { %v5734_v28 = vor.u32 %v6545_v25, %v5733_v0  ;;  %v5878_v0 = vor.u32 %v6582_v23, %v5877_v22  ;;  %v6614_v25 = vld [vmem:[#allocation23 + $0x1cc] sm:$0xf0]  ;;  %v5946_v22 = vor.u32 %v6596_v20, %v5943_v21  ;;  %v5999_v20 = vld [vmem:[#allocation23 + $0x1b8] sm:$0xf0] }
 0x863   : > { %v3126_v14 = vpack.c.bf16 %v3125_v13, %v3125_v13  ;;  %v5893_v13 = vld [vmem:[#allocation23 + $0xe0] sm:$0xf]  ;;  %v6006_v29 = vor.u32 %v6614_v25, %v6005_v24  ;;  %v6562_v23 = vld [vmem:[#allocation23 + $0x2c] sm:$0xf0] }
 0x864   : > { %3365 = vmatpush.bf16.msrb.mxu1 %v5734_v28  ;;  %v5879_v28 = vld [vmem:[#allocation23 + $0xd0] sm:$0xf0]  ;;  %v5925_v24 = vld [vmem:[#allocation23 + $0x120] sm:$0xf] }
 0x865   : > { %5650 = vmatmul.msk.bf16.vlgmr.msra.gmra.mxu3 %vm3058_vm2, %v3126_v14  ;;  %v6586_v14 = vld [vmem:[#allocation23 + $0xec] sm:$0xf0]  ;;  %v5882_v30 = vor.u32 %v6580_v26, %v5879_v28  ;;  %v6560_v28 = vld [vmem:[#allocation23 + $0x24] sm:$0xf] }
 0x866   : > { %v5894_v16 = vor.u32 %v6586_v14, %v5893_v13  ;;  %3893 = vmatpush.bf16.msra.mxu3 %v6026_v46  ;;  %v5813_v13 = vld [vmem:[#allocation23 + $0x40] sm:$0xf]  ;;  %v6566_v14 = vld [vmem:[#allocation23 + $0x4c] sm:$0xf0] }
 0x867   : > { %v5797_v46 = vld [vmem:[#allocation23 + $0x20] sm:$0xf] }
 0x868   : > { %3366 = vmatpush.bf16.msrb.mxu1 %v5726_v38  ;;  %3854 = vmatpush.bf16.msra.mxu0 %v5894_v16  ;;  %v5861_v38 = vld [vmem:[#allocation23 + $0xa0] sm:$0xf]  ;;  %v5814_v16 = vor.u32 %v6566_v14, %v5813_v13  ;;  %v5798_v25 = vor.u32 %v6562_v23, %v5797_v46  ;;  %v6015_v13 = vld [vmem:[#allocation23 + $0x1d8] sm:$0xf0]  ;;  %v5869_v14 = vld [vmem:[#allocation23 + $0xa8] sm:$0xf] }
 0x869   : > { %v5862_v55 = vor.u32 %v6578_v39, %v5861_v38  ;;  %v6558_v38 = vld [vmem:[#allocation23 + $0xc] sm:$0xf0] }
 0x86a   : > { %3894 = vmatpush.bf16.msra.mxu3 %v6010_v35  ;;  %v5781_v35 = vld [vmem:[#allocation23] sm:$0xf] }
 0x86c   : > { %3367 = vmatpush.bf16.msrb.mxu1 %v5718_v44  ;;  %3855 = vmatpush.bf16.msra.mxu0 %v5878_v0  ;;  %v5863_v44 = vld [vmem:[#allocation23 + $0xb0] sm:$0xf0]  ;;  %v6594_v0 = vld [vmem:[#allocation23 + $0x12c] sm:$0xf0] }
 0x86d   : > { %v5866_v56 = vor.u32 %v6576_v42, %v5863_v44  ;;  %v5926_v26 = vor.u32 %v6594_v0, %v5925_v24  ;;  %v5782_v42 = vor.u32 %v6558_v38, %v5781_v35  ;;  %v5783_v44 = vld [vmem:[#allocation23 + $0x10] sm:$0xf0]  ;;  %v5853_v0 = vld [vmem:[#allocation23 + $0x88] sm:$0xf]  ;;  %v6605_v35 = vld [vmem:[#allocation23 + $0x18c] sm:$0xf] }
 0x86e   : > { %v5983_v38 = vld [vmem:[#allocation23 + $0x198] sm:$0xf0] }
 0x870   : > { %3867 = vmatpush.bf16.msra.mxu1 %v6022_v62  ;;  %3856 = vmatpush.bf16.msra.mxu0 %v5862_v55  ;;  %v5942_v62 = vor.u32 %v6598_v17, %v5941_v15  ;;  %v6590_v55 = vld [vmem:[#allocation23 + $0x10c] sm:$0xf0]  ;;  %v6579_v15 = vld [vmem:[#allocation23 + $0xb4] sm:$0xf0]  ;;  %v5997_v17 = vld [vmem:[#allocation23 + $0x1a8] sm:$0xf] }
 0x871   : > { %v5870_v46 = vor.u32 %v6579_v15, %v5869_v14  ;;  %v6563_v14 = vld [vmem:[#allocation23 + $0x34] sm:$0xf0] }
 0x874   : > { %3868 = vmatpush.bf16.msra.mxu1 %v6006_v29  ;;  %v5799_v29 = vld [vmem:[#allocation23 + $0x30] sm:$0xf0] }
 0x875   : > { %v5802_v31 = vor.u32 %v6560_v28, %v5799_v29  ;;  %v6607_v29 = vld [vmem:[#allocation23 + $0x194] sm:$0xf0] }
 0x878   : > { %3869 = vmatpush.bf16.msra.mxu1 %v5990_v45  ;;  %v6588_v45 = vld [vmem:[#allocation23 + $0x104] sm:$0xf] }
 0x8dc   : > { %v3089_v47 = vpop.f32.mrf.mxu1 }
 0x8dd   : > { %v3147_v49 = vpack.c.bf16 %v3089_v47, %v3089_v47  ;;  %v6608_v47 = vld [vmem:[#allocation23 + $0x1a4] sm:$0xf] }
 0x8df   : > { %3355 = vmatmul.bf16.vlgmr.msrb.gmra.mxu0 %v3147_v49  ;;  %3381 = vmatmul.bf16.vlgmr.msrb.gmra.mxu2 %v3147_v49  ;;  %v5991_v49 = vld [vmem:[#allocation23 + $0x1b0] sm:$0xf0] }
 0x8e4   : > { %v3091_v34 = vpop.f32.mrf.mxu1 }
 0x8e5   : > { %v5994_v34 = vor.u32 %v6608_v47, %v5991_v49  ;;  %v5910_v49 = vor.u32 %v6590_v55, %v5909_v40 }
 0x8e7   : > { %3895 = vmatpush.bf16.msra.mxu3 %v5994_v34  ;;  %v5786_v34 = vor.u32 %v6556_v41, %v5783_v44 }
 0x8e8   : > { %v3143_v51 = vpop.f32.mrf.mxu3 }
 0x8e9   : > { %v3148_v5 = vpack.c.bf16 %v3143_v51, %v3143_v51  ;;  %v5845_v51 = vld [vmem:[#allocation23 + $0x80] sm:$0xf] }
 0x8eb   : > { %3368 = vmatmul.bf16.vlgmr.msrb.gmra.mxu1 %v3148_v5  ;;  %3394 = vmatmul.bf16.vlgmr.msrb.gmra.mxu3 %v3148_v5  ;;  %v6574_v5 = vld [vmem:[#allocation23 + $0x8c] sm:$0xf0] }
 0x8f0   : > { %v3145_v52 = vpop.f32.mrf.mxu3 }
 0x8f1   : > { %v5973_v52 = vld [vmem:[#allocation23 + $0x180] sm:$0xf] }
 0x95c   : > { %v3356_v6 = vpop.f32.mrf.mxu0 }
 0x95d   : > { %v3357_v63 = vadd.f32 %v3356_v6, %v3183_v58  ;;  %v5846_v6 = vor.u32 %v6574_v5, %v5845_v51  ;;  %v5901_v51 = vld [vmem:[#allocation23 + $0xe8] sm:$0xf]  ;;  %v6587_v5 = vld [vmem:[#allocation23 + $0xf4] sm:$0xf0] }
 0x95f   : > { %3857 = vmatpush.bf16.msra.mxu0 %v5846_v6 }
 0x962   : > { %v3382_v53 = vpop.f32.mrf.mxu2 }
 0x963   : > { %v3383_v1 = vadd.f32 %v3382_v53, %v3184_v60  ;;  %v6606_v53 = vld [vmem:[#allocation23 + $0x18c] sm:$0xf0]  ;;  %v6604_v60 = vld [vmem:[#allocation23 + $0x184] sm:$0xf] }
 0x964   : > { %v3358_v57 = vpop.f32.mrf.mxu0  ;;  %v5974_v58 = vor.u32 %v6606_v53, %v5973_v52  ;;  %v6029_v52 = vld [vmem:[#allocation23 + $0x1e8] sm:$0xf] }
 0x965   : > { %v5847_v57 = vld [vmem:[#allocation23 + $0x90] sm:$0xf0] }
 0x966   : > { %3870 = vmatpush.bf16.msra.mxu1 %v5974_v58  ;;  %v6585_v58 = vld [vmem:[#allocation23 + $0xec] sm:$0xf] }
 0x968   : > { %v3369_v59 = vpop.f32.mrf.mxu1 }
 0x969   : > { %v3370_v2 = vadd.f32 %v3369_v59, %v3357_v63  ;;  %v5850_v59 = vor.u32 %v6572_v54, %v5847_v57  ;;  %v5902_v54 = vor.u32 %v6587_v5, %v5901_v51  ;;  %v6619_v57 = vld [vmem:[#allocation23 + $0x1f4] sm:$0xf0] }
 0x96a   : > { %v3384_v61 = vpop.f32.mrf.mxu2  ;;  %v6603_v5 = vld [vmem:[#allocation23 + $0x174] sm:$0xf0] }
 0x96b   : > { %v8002_v43 = vadd.f32 %v3370_v2, %v7921_v48  ;;  %v5975_v61 = vld [vmem:[#allocation23 + $0x190] sm:$0xf0]  ;;  %v6570_v2 = vld [vmem:[#allocation23 + $0x6c] sm:$0xf0] }
 0x96c   : > { %v5978_v63 = vor.u32 %v6604_v60, %v5975_v61  ;;  %v5903_v60 = vld [vmem:[#allocation23 + $0xf8] sm:$0xf0]  ;;  %v6617_v61 = vld [vmem:[#allocation23 + $0x1ec] sm:$0xf] }
 0x96e   : > { %v3395_v3 = vpop.f32.mrf.mxu3  ;;  %3896 = vmatpush.bf16.msra.mxu3 %v5978_v63  ;;  %v6031_v63 = vld [vmem:[#allocation23 + $0x1f8] sm:$0xf0] }
 0x96f   : > { %v3396_v4 = vadd.f32 %v3395_v3, %v3383_v1  ;;  %v5829_v1 = vld [vmem:[#allocation23 + $0x60] sm:$0xf] }
 0x970   : > { %v3371_v36 = vpop.f32.mrf.mxu1  ;;  %v5957_v3 = vld [vmem:[#allocation23 + $0x160] sm:$0xf] }
 0x971   : > { %v8005_v27 = vadd.f32 %v3396_v4, %v7924_v50  ;;  %v5830_v4 = vor.u32 %v6570_v2, %v5829_v1  ;;  %v6602_v36 = vld [vmem:[#allocation23 + $0x16c] sm:$0xf0]  ;;  %v5885_v1 = vld [vmem:[#allocation23 + $0xc8] sm:$0xf]  ;;  %v5906_v2 = vor.u32 %v6585_v58, %v5903_v60  ;;  %v5967_v60 = vld [vmem:[#allocation23 + $0x178] sm:$0xf0] }
 0x973   : > { %v3403_v7 = vadd.f32 %v8005_v27, %v8002_v43  ;;  %3858 = vmatpush.bf16.msra.mxu0 %v5830_v4  ;;  %v6583_v4 = vld [vmem:[#allocation23 + $0xd4] sm:$0xf0] }
 0x975   : > { %3404 = vadd.xlane.f32.xlu0 %v3403_v7  ;;  %v6568_v7 = vld [vmem:[#allocation23 + $0x64] sm:$0xf] }
 0x976   : > { %v3397_v37 = vpop.f32.mrf.mxu3 }
 0x977   : > { %v5831_v37 = vld [vmem:[#allocation23 + $0x70] sm:$0xf0]  ;;  %3859 = vmatpush.bf16.msra.mxu0 %v5814_v16 }
 0x97b   : > { %3860 = vmatpush.bf16.msra.mxu0 %v5798_v25  ;;  %v6575_v25 = vld [vmem:[#allocation23 + $0x94] sm:$0xf0] }
 0x97f   : > { %3861 = vmatpush.bf16.msra.mxu0 %v5782_v42  ;;  %v5986_v42 = vor.u32 %v6605_v35, %v5983_v38 }
 0x983   : > { %3906 = vmatpush.bf16.msrb.mxu0 %v5902_v54 }
 0x9e8   : > { %v3405_v8 = vpop.xlane.xlu0 %3404 }
 0x9e9   : > { %v3406_v9 = vmul.f32 %v3405_v8, %v7868_v33  ;;  %v6584_v33 = vld [vmem:[#allocation23 + $0xe4] sm:$0xf]  ;;  %v5958_v8 = vor.u32 %v6602_v36, %v5957_v3  ;;  %v6034_v3 = vor.u32 %v6617_v61, %v6031_v63  ;;  %v6013_v36 = vld [vmem:[#allocation23 + $0x1c8] sm:$0xf] }
 0x9ea   : > { %v5898_v19 = vor.u32 %v6584_v33, %v5895_v18  ;;  %v6564_v33 = vld [vmem:[#allocation23 + $0x44] sm:$0xf]  ;;  %v5815_v18 = vld [vmem:[#allocation23 + $0x50] sm:$0xf0]  ;;  %v5821_v61 = vld [vmem:[#allocation23 + $0x48] sm:$0xf] }
 0x9eb   : > { %v8011_v10 = vsub.f32 %v8002_v43, %v3406_v9  ;;  %v8014_v11 = vsub.f32 %v8005_v27, %v3406_v9  ;;  %v5834_v9 = vor.u32 %v6568_v7, %v5831_v37  ;;  %3871 = vmatpush.bf16.msra.mxu1 %v5958_v8  ;;  %v6615_v7 = vld [vmem:[#allocation23 + $0x1d4] sm:$0xf0]  ;;  %v5886_v37 = vor.u32 %v6583_v4, %v5885_v1  ;;  %v6581_v8 = vld [vmem:[#allocation23 + $0xcc] sm:$0xf] }
 0x9ec   : > { %3880 = vmatpush.bf16.msra.mxu2 %v5898_v19  ;;  %v5818_v19 = vor.u32 %v6564_v33, %v5815_v18  ;;  %v6611_v33 = vld [vmem:[#allocation23 + $0x1b4] sm:$0xf0]  ;;  %v6577_v18 = vld [vmem:[#allocation23 + $0xac] sm:$0xf] }
 0x9ed   : > { %v3409_v48 = vmul.f32 %v8011_v10, %v8011_v10  ;;  %v3410_v50 = vmul.f32 %v8014_v11, %v8014_v11  ;;  %3907 = vmatpush.bf16.msrb.mxu0 %v5886_v37  ;;  %v5998_v23 = vor.u32 %v6611_v33, %v5997_v17  ;;  %v6567_v1 = vld [vmem:[#allocation23 + $0x54] sm:$0xf0]  ;;  %v6565_v37 = vld [vmem:[#allocation23 + $0x4c] sm:$0xf]  ;;  %v5933_v17 = vld [vmem:[#allocation23 + $0x128] sm:$0xf] }
 0x9ee   : > { %v6595_v33 = vld [vmem:[#allocation23 + $0x134] sm:$0xf0] }
 0x9ef   : > { %v3411_v12 = vadd.f32 %v3410_v50, %v3409_v48  ;;  %v6600_v48 = vld [vmem:[#allocation23 + $0x164] sm:$0xf]  ;;  %v5959_v50 = vld [vmem:[#allocation23 + $0x170] sm:$0xf0]  ;;  %3872 = vmatpush.bf16.msra.mxu1 %v5942_v62  ;;  %v5871_v62 = vld [vmem:[#allocation23 + $0xb8] sm:$0xf0] }
 0x9f0   : > { %3881 = vmatpush.bf16.msra.mxu2 %v5882_v30  ;;  %v6592_v30 = vld [vmem:[#allocation23 + $0x124] sm:$0xf]  ;;  %v5874_v24 = vor.u32 %v6577_v18, %v5871_v62  ;;  %v6561_v62 = vld [vmem:[#allocation23 + $0x2c] sm:$0xf] }
 0x9f1   : > { %3412 = vadd.xlane.f32.xlu1 %v3411_v12  ;;  %v5962_v12 = vor.u32 %v6600_v48, %v5959_v50  ;;  %v5930_v39 = vor.u32 %v6592_v30, %v5927_v32  ;;  %v6613_v48 = vld [vmem:[#allocation23 + $0x1cc] sm:$0xf]  ;;  %v6014_v50 = vor.u32 %v6615_v7, %v6013_v36  ;;  %3908 = vmatpush.bf16.msrb.mxu0 %v5870_v46 }
 0x9f2   : > { %v6018_v16 = vor.u32 %v6613_v48, %v6015_v13  ;;  %v6573_v30 = vld [vmem:[#allocation23 + $0x8c] sm:$0xf]  ;;  %v5822_v36 = vor.u32 %v6567_v1, %v5821_v61  ;;  %v5805_v13 = vld [vmem:[#allocation23 + $0x28] sm:$0xf]  ;;  %v6093_v61 = vld [vmem:[#allocation25 + $0x70] sm:$0xf] }
 0x9f3   : > { %3897 = vmatpush.bf16.msra.mxu3 %v5962_v12  ;;  %3873 = vmatpush.bf16.msra.mxu1 %v5926_v26  ;;  %v5981_v26 = vld [vmem:[#allocation23 + $0x188] sm:$0xf]  ;;  %v5806_v18 = vor.u32 %v6563_v14, %v5805_v13  ;;  %v6157_v1 = vld [vmem:[#allocation25 + $0xf0] sm:$0xf]  ;;  %v6149_v13 = vld [vmem:[#allocation25 + $0xe0] sm:$0xf] }
 0x9f4   : > { %3882 = vmatpush.bf16.msra.mxu2 %v5866_v56  ;;  %v5911_v56 = vld [vmem:[#allocation23 + $0x110] sm:$0xf0]  ;;  %v5982_v55 = vor.u32 %v6607_v29, %v5981_v26  ;;  %v6557_v26 = vld [vmem:[#allocation23 + $0xc] sm:$0xf]  ;;  %v5791_v29 = vld [vmem:[#allocation23 + $0x18] sm:$0xf0] }
 0x9f5   : > { %v5914_v53 = vor.u32 %v6588_v45, %v5911_v56  ;;  %v5794_v35 = vor.u32 %v6557_v26, %v5791_v29  ;;  %v6649_v14 = vld [vmem:[#allocation25 + $0xe4] sm:$0xf0]  ;;  %v6269_v26 = vld [vmem:[#allocation25 + $0x1d0] sm:$0xf] }
 0x9f7   : > { %3898 = vmatpush.bf16.msra.mxu3 %v5946_v22  ;;  %3874 = vmatpush.bf16.msra.mxu1 %v5910_v49  ;;  %v6571_v49 = vld [vmem:[#allocation23 + $0x74] sm:$0xf0] }
 0x9f8   : > { %3883 = vmatpush.bf16.msra.mxu2 %v5850_v59  ;;  %v6030_v59 = vor.u32 %v6619_v57, %v6029_v52  ;;  %v6569_v52 = vld [vmem:[#allocation23 + $0x6c] sm:$0xf] }
 0x9fb   : > { %3899 = vmatpush.bf16.msra.mxu3 %v5930_v39  ;;  %3919 = vmatpush.bf16.msrb.mxu1 %v6030_v59  ;;  %v5854_v39 = vor.u32 %v6575_v25, %v5853_v0  ;;  %v6601_v59 = vld [vmem:[#allocation23 + $0x16c] sm:$0xf]  ;;  %v5917_v0 = vld [vmem:[#allocation23 + $0x108] sm:$0xf]  ;;  %v6591_v25 = vld [vmem:[#allocation23 + $0x114] sm:$0xf0] }
 0x9fc   : > { %3884 = vmatpush.bf16.msra.mxu2 %v5834_v9  ;;  %v5887_v9 = vld [vmem:[#allocation23 + $0xd8] sm:$0xf0]  ;;  %v5970_v63 = vor.u32 %v6601_v59, %v5967_v60 }
 0x9fd   : > { %v5890_v12 = vor.u32 %v6581_v8, %v5887_v9  ;;  %3909 = vmatpush.bf16.msrb.mxu0 %v5854_v39  ;;  %v5823_v8 = vld [vmem:[#allocation23 + $0x58] sm:$0xf0]  ;;  %v6597_v9 = vld [vmem:[#allocation23 + $0x14c] sm:$0xf] }
 0x9ff   : > { %3900 = vmatpush.bf16.msra.mxu3 %v5914_v53  ;;  %3920 = vmatpush.bf16.msrb.mxu1 %v6014_v50  ;;  %v5839_v53 = vld [vmem:[#allocation23 + $0x78] sm:$0xf0]  ;;  %v5826_v50 = vor.u32 %v6565_v37, %v5823_v8  ;;  %v6285_v37 = vld [vmem:[#allocation25 + $0x1f0] sm:$0xf]  ;;  %v6683_v8 = vld [vmem:[#allocation25 + $0x1f4] sm:$0xf0] }
 0xa00   : > { %3885 = vmatpush.bf16.msra.mxu2 %v5818_v19  ;;  %v6609_v19 = vld [vmem:[#allocation23 + $0x1ac] sm:$0xf]  ;;  %v5842_v58 = vor.u32 %v6569_v52, %v5839_v53 }
 0xa01   : > { %v6002_v28 = vor.u32 %v6609_v19, %v5999_v20  ;;  %v5807_v19 = vld [vmem:[#allocation23 + $0x38] sm:$0xf0]  ;;  %v6593_v20 = vld [vmem:[#allocation23 + $0x12c] sm:$0xf] }
 0xa02   : > { %v5810_v46 = vor.u32 %v6561_v62, %v5807_v19  ;;  %v6681_v62 = vld [vmem:[#allocation25 + $0x1e4] sm:$0xf0] }
 0xa03   : > { %3945 = vmatpush.bf16.msrb.mxu3 %v6034_v3  ;;  %3921 = vmatpush.bf16.msrb.mxu1 %v5998_v23  ;;  %v6599_v3 = vld [vmem:[#allocation23 + $0x154] sm:$0xf0]  ;;  %v5789_v23 = vld [vmem:[#allocation23 + $0x8] sm:$0xf] }
 0xa04   : > { %3886 = vmatpush.bf16.msra.mxu2 %v5802_v31  ;;  %v5855_v31 = vld [vmem:[#allocation23 + $0x98] sm:$0xf0] }
 0xa05   : > { %v5858_v41 = vor.u32 %v6573_v30, %v5855_v31  ;;  %v6589_v30 = vld [vmem:[#allocation23 + $0x10c] sm:$0xf]  ;;  %v5919_v31 = vld [vmem:[#allocation23 + $0x118] sm:$0xf0] }
 0xa06   : > { %v5922_v38 = vor.u32 %v6589_v30, %v5919_v31  ;;  %v6069_v30 = vld [vmem:[#allocation25 + $0x40] sm:$0xf]  ;;  %v6629_v31 = vld [vmem:[#allocation25 + $0x44] sm:$0xf0] }
 0xa07   : > { %3946 = vmatpush.bf16.msrb.mxu3 %v6018_v16  ;;  %3922 = vmatpush.bf16.msrb.mxu1 %v5982_v55 }
 0xa08   : > { %3887 = vmatpush.bf16.msra.mxu2 %v5786_v34  ;;  %v5965_v34 = vld [vmem:[#allocation23 + $0x168] sm:$0xf] }
 0xa09   : > { %v5966_v57 = vor.u32 %v6603_v5, %v5965_v34 }
 0xa0b   : > { %3947 = vmatpush.bf16.msrb.mxu3 %v6002_v28  ;;  %3923 = vmatpush.bf16.msrb.mxu1 %v5966_v57 }
 0xa0c   : > { %3932 = vmatpush.bf16.msrb.mxu2 %v5906_v2  ;;  %v5949_v2 = vld [vmem:[#allocation23 + $0x148] sm:$0xf] }
 0xa0d   : > { %v5950_v7 = vor.u32 %v6599_v3, %v5949_v2  ;;  %v6651_v2 = vld [vmem:[#allocation25 + $0xf4] sm:$0xf0]  ;;  %v6221_v3 = vld [vmem:[#allocation25 + $0x170] sm:$0xf] }
 0xa0f   : > { %3948 = vmatpush.bf16.msrb.mxu3 %v5986_v42  ;;  %3924 = vmatpush.bf16.msrb.mxu1 %v5950_v7  ;;  %v6667_v7 = vld [vmem:[#allocation25 + $0x174] sm:$0xf0] }
 0xa10   : > { %3933 = vmatpush.bf16.msrb.mxu2 %v5890_v12  ;;  %v5951_v12 = vld [vmem:[#allocation23 + $0x158] sm:$0xf0] }
 0xa11   : > { %v5954_v16 = vor.u32 %v6597_v9, %v5951_v12  ;;  %v6158_v12 = vor.u32 %v6651_v2, %v6157_v1 }
 0xa13   : > { %3949 = vmatpush.bf16.msrb.mxu3 %v5970_v63  ;;  %v6635_v63 = vld [vmem:[#allocation25 + $0x74] sm:$0xf0] }
 0xa14   : > { %3934 = vmatpush.bf16.msrb.mxu2 %v5874_v24  ;;  %v6559_v24 = vld [vmem:[#allocation23 + $0x14] sm:$0xf0] }
 0xa15   : > { %v5790_v28 = vor.u32 %v6559_v24, %v5789_v23  ;;  %v6205_v24 = vld [vmem:[#allocation25 + $0x150] sm:$0xf] }
 0xa17   : > { %3950 = vmatpush.bf16.msrb.mxu3 %v5954_v16  ;;  %v6213_v16 = vld [vmem:[#allocation25 + $0x160] sm:$0xf] }
 0xa18   : > { %3935 = vmatpush.bf16.msrb.mxu2 %v5858_v41 }
 0xa1c   : > { %3936 = vmatpush.bf16.msrb.mxu2 %v5842_v58 }
 0xa20   : > { %3937 = vmatpush.bf16.msrb.mxu2 %v5826_v50  ;;  %v6085_v50 = vld [vmem:[#allocation25 + $0x60] sm:$0xf] }
 0xa24   : > { %3938 = vmatpush.bf16.msrb.mxu2 %v5810_v46  ;;  %v6141_v46 = vld [vmem:[#allocation25 + $0xd0] sm:$0xf] }
 0xa28   : > { %3939 = vmatpush.bf16.msrb.mxu2 %v5794_v35  ;;  %v6133_v35 = vld [vmem:[#allocation25 + $0xc0] sm:$0xf] }
 0xa64   : > { %v3413_v47 = vpop.xlane.xlu1 %3412 }
 0xa65   : > { %v8020_v6 = vmul.f32 0.003921569, %v3413_v47  ;;  %v5837_v47 = vld [vmem:[#allocation23 + $0x68] sm:$0xf] }
 0xa66   : > { %v5838_v51 = vor.u32 %v6571_v49, %v5837_v47  ;;  %v3402_v47 = vld [vmem:[%s8187_s4] sm:$0x3]  ;;  %s7372_s4 = scalar_lea.hbm %s8190_s1, 32 }
 0xa67   : > { %6896 = vrsqrt.f32 %v8020_v6  ;;  %vm3422_vm3 = vcmp.eq.f32.partialorder %v8020_v6, inf  ;;  %vm3424_vm4 = vcmp.eq.f32.partialorder %v8020_v6, 0.0  ;;  %v3425_v45 = vand.u32 2147483648, %v8020_v6 }
 0xa68   : > { %3910 = vmatpush.bf16.msrb.mxu0 %v5838_v51  ;;  %v3453_v58 = vperm.slane %v3402_v47, 1 }
 0xa6c   : > { %3911 = vmatpush.bf16.msrb.mxu0 %v5822_v36 }
 0xa6d   : > { %v6897_v21 = vpop.eup %6896 }
 0xa6e   : > { %v3416_v22 = vmul.f32 %v6897_v21, %v8020_v6 }
 0xa70   : > { %v3417_v32 = vmul.f32 %v6897_v21, %v3416_v22  ;;  %3912 = vmatpush.bf16.msrb.mxu0 %v5806_v18  ;;  %v6277_v18 = vld [vmem:[#allocation25 + $0x1e0] sm:$0xf] }
 0xa72   : > { %v3418_v40 = vmul.f32 0.5, %v3417_v32  ;;  %v5918_v32 = vor.u32 %v6591_v25, %v5917_v0  ;;  %v6278_v0 = vor.u32 %v6681_v62, %v6277_v18  ;;  %v6663_v25 = vld [vmem:[#allocation25 + $0x154] sm:$0xf0]  ;;  %v6650_v62 = vld [vmem:[#allocation25 + $0xf4] sm:$0xf] }
 0xa74   : > { %v3419_v44 = vsub.f32 1.5, %v3418_v40  ;;  %3913 = vmatpush.bf16.msrb.mxu0 %v5790_v28  ;;  %v6679_v28 = vld [vmem:[#allocation25 + $0x1d4] sm:$0xf0] }
 0xa76   : > { %v3420_v56 = vmul.f32 %v6897_v21, %v3419_v44  ;;  %v5934_v21 = vor.u32 %v6595_v33, %v5933_v17  ;;  %v6286_v17 = vor.u32 %v6683_v8, %v6285_v37  ;;  %v6665_v33 = vld [vmem:[#allocation25 + $0x164] sm:$0xf0]  ;;  %v6639_v37 = vld [vmem:[#allocation25 + $0x94] sm:$0xf0] }
 0xa77   : > { %v6214_v23 = vor.u32 %v6665_v33, %v6213_v16  ;;  %v6087_v33 = vld [vmem:[#allocation25 + $0x68] sm:$0xf0] }
 0xa78   : > { %v3421_v54 = vmul.f32 %v3420_v56, %v8020_v6  ;;  %3925 = vmatpush.bf16.msrb.mxu1 %v5934_v21  ;;  %v6631_v21 = vld [vmem:[#allocation25 + $0x54] sm:$0xf0] }
 0xa7a   : > { %v3423_v4 = vsel %vm3422_vm3, %v8020_v6, %v3421_v54  ;;  %v5935_v6 = vld [vmem:[#allocation23 + $0x138] sm:$0xf0]  ;;  %v3452_v54 = vperm.slane %v3402_v47, 0 }
 0xa7b   : > { %v3426_v48 = vsel %vm3424_vm4, %v3425_v45, %v3423_v4  ;;  %v5938_v22 = vor.u32 %v6593_v20, %v5935_v6  ;;  %v3401_v45 = vld [vmem:[%s8186_s15] sm:$0x3]  ;;  %v6077_v20 = vld [vmem:[#allocation25 + $0x50] sm:$0xf]  ;;  %v6150_v6 = vor.u32 %v6649_v14, %v6149_v13  ;;  %v6095_v14 = vld [vmem:[#allocation25 + $0x78] sm:$0xf0] }
 0xa7c   : > { %v3427_v15 = vadd.f32 1e-06, %v3426_v48  ;;  %3926 = vmatpush.bf16.msrb.mxu1 %v5918_v32  ;;  %v3445_v51 = vperm.slane %v3401_v45, 0  ;;  %v3446_v5 = vperm.slane %v3401_v45, 1  ;;  %v6078_v29 = vor.u32 %v6631_v21, %v6077_v20  ;;  %v6637_v13 = vld [vmem:[#allocation25 + $0x84] sm:$0xf0] }
 0xa7d   : > { %3951 = vmatpush.bf16.msrb.mxu3 %v5938_v22  ;;  %v6647_v22 = vld [vmem:[#allocation25 + $0xd4] sm:$0xf0]  ;;  %v6070_v45 = vor.u32 %v6629_v31, %v6069_v30  ;;  %v6181_v21 = vld [vmem:[#allocation25 + $0x120] sm:$0xf]  ;;  %v6173_v31 = vld [vmem:[#allocation25 + $0x110] sm:$0xf] }
 0xa7e   : > { %6898 = vrcp.f32 %v3427_v15  ;;  %v3439_v41 = vand.u32 2147483648, %v3427_v15  ;;  %v3437_v44 = vand.u32 2147483647, %v3427_v15  ;;  %vm3433_vm6 = vweird.f32 %v3427_v15  ;;  %s7368_s15 = scalar_lea.hbm %s7367_s7, 16 }
 0xa7f   : > { %v6142_v32 = vor.u32 %v6647_v22, %v6141_v46  ;;  %v6630_v22 = vld [vmem:[#allocation25 + $0x54] sm:$0xf]  ;;  %p7369_p1 = scmp.ne.s32.totalorder %s7367_s7, %s7368_s15  ;;  %p7374_p9 = scmp.lt.s32.totalorder %s7372_s4, %s7368_s15 }
 0xa80   : > { %v3440_v49 = vor.u32 1.1754944e-38, %v3439_v41  ;;  %vm3438_vm8 = vcmp.eq.f32.partialorder %v3437_v44, 8.507059e+37  ;;  %v6661_v41 = vld [vmem:[#allocation25 + $0x144] sm:$0xf0] }
 0xa81   : > { %3952 = vmatpush.bf16.msrb.mxu3 %v5922_v38  ;;  %v6645_v38 = vld [vmem:[#allocation25 + $0xc4] sm:$0xf0]  ;;  %p7370_p3 = pnand %p7369_p1, %p7742_p5  ;;  %p7375_p8 = por %p7374_p9, %p7373_p7 }
 0xa82   : > { %v6677_v44 = vld [vmem:[#allocation25 + $0x1c4] sm:$0xf0]  ;;  %v6134_v47 = vor.u32 %v6645_v38, %v6133_v35  ;;  %v6628_v38 = vld [vmem:[#allocation25 + $0x44] sm:$0xf] }
 0xa83   : > { %p7371_p12 = pneg %p7370_p3 }
 0xa84   : > { %v6899_v39 = vpop.eup %6898 }
 0xa85   : > { %v3429_v40 = vmul.f32 %v6899_v39, %v3427_v15  ;;  %vm3434_vm5 = vweird.f32 %v6899_v39  ;;  %v6222_v15 = vor.u32 %v6667_v7, %v6221_v3  ;;  %v6045_v3 = vld [vmem:[#allocation25 + $0x10] sm:$0xf]  ;;  %p7376_p10 = pnand %p7375_p8, %p7371_p12 }
 0xa86   : > { %vm3435_vm7 = vmor %vm3433_vm6, %vm3434_vm5  ;;  %v6109_v7 = vld [vmem:[#allocation25 + $0x90] sm:$0xf] }
 0xa87   : > { %v3430_v55 = vsub.f32 1.0, %v3429_v40  ;;  %v6197_v40 = vld [vmem:[#allocation25 + $0x140] sm:$0xf] }
 0xa89   : > { %v3431_v42 = vmul.f32 %v6899_v39, %v3430_v55  ;;  %v6270_v55 = vor.u32 %v6679_v28, %v6269_v26  ;;  %v6648_v28 = vld [vmem:[#allocation25 + $0xe4] sm:$0xf] }
 0xa8b   : > { %v3432_v56 = vadd.f32 %v6899_v39, %v3431_v42  ;;  %v6261_v42 = vld [vmem:[#allocation25 + $0x1c0] sm:$0xf] }
 0xa8d   : > { %v3436_v34 = vsel %vm3435_vm7, %v6899_v39, %v3432_v56  ;;  %v6206_v39 = vor.u32 %v6663_v25, %v6205_v24  ;;  %v6061_v56 = vld [vmem:[#allocation25 + $0x30] sm:$0xf]  ;;  %v6675_v25 = vld [vmem:[#allocation25 + $0x1b4] sm:$0xf0] }
 0xa8e   : > { %v3441_v52 = vsel %vm3438_vm8, %v3440_v49, %v3436_v34  ;;  %v6627_v49 = vld [vmem:[#allocation25 + $0x34] sm:$0xf0]  ;;  %v6125_v34 = vld [vmem:[#allocation25 + $0xb0] sm:$0xf] }
 0xa8f   : > { %v3442_v53 = vmul.f32 %v3441_v52, %v8011_v10  ;;  %v3443_v57 = vmul.f32 %v3441_v52, %v8014_v11  ;;  %v6094_v10 = vor.u32 %v6635_v63, %v6093_v61  ;;  %v6633_v11 = vld [vmem:[#allocation25 + $0x64] sm:$0xf0]  ;;  %v6262_v52 = vor.u32 %v6677_v44, %v6261_v42  ;;  %v6117_v61 = vld [vmem:[#allocation25 + $0xa0] sm:$0xf]  ;;  %v6646_v44 = vld [vmem:[#allocation25 + $0xd4] sm:$0xf] }
 0xa90   : > { %v6086_v19 = vor.u32 %v6633_v11, %v6085_v50  ;;  %v6641_v63 = vld [vmem:[#allocation25 + $0xa4] sm:$0xf0]  ;;  %v6110_v50 = vor.u32 %v6639_v37, %v6109_v7  ;;  %v6215_v7 = vld [vmem:[#allocation25 + $0x168] sm:$0xf0]  ;;  %v6229_v37 = vld [vmem:[#allocation25 + $0x180] sm:$0xf] }
 0xa91   : > { %v3449_v59 = vmul.f32 %v3445_v51, %v3442_v53  ;;  %v3450_v60 = vmul.f32 %v3446_v5, %v3443_v57  ;;  %v6643_v51 = vld [vmem:[#allocation25 + $0xb4] sm:$0xf0]  ;;  %v6198_v5 = vor.u32 %v6661_v41, %v6197_v40  ;;  %v6189_v53 = vld [vmem:[#allocation25 + $0x130] sm:$0xf]  ;;  %v6062_v57 = vor.u32 %v6627_v49, %v6061_v56  ;;  %v6621_v11 = vld [vmem:[#allocation25 + $0x4] sm:$0xf0] }
 0xa92   : > { %v6673_v41 = vld [vmem:[#allocation25 + $0x1a4] sm:$0xf0] }
 0xa93   : > { %v3456_v4 = vadd.f32 %v3452_v54, %v3449_v59  ;;  %v3457_v36 = vadd.f32 %v3453_v58, %v3450_v60  ;;  %v6659_v54 = vld [vmem:[#allocation25 + $0x134] sm:$0xf0]  ;;  %v6053_v58 = vld [vmem:[#allocation25 + $0x20] sm:$0xf]  ;;  %v6126_v59 = vor.u32 %v6643_v51, %v6125_v34  ;;  %v6625_v60 = vld [vmem:[#allocation25 + $0x24] sm:$0xf0] }
 0xa94   : > { %v6190_v1 = vor.u32 %v6659_v54, %v6189_v53  ;;  %v6054_v2 = vor.u32 %v6625_v60, %v6053_v58  ;;  %v6653_v49 = vld [vmem:[#allocation25 + $0x104] sm:$0xf0]  ;;  %v6626_v51 = vld [vmem:[#allocation25 + $0x34] sm:$0xf]  ;;  %v6223_v54 = vld [vmem:[#allocation25 + $0x178] sm:$0xf0] }
 0xa95   : > { %v8041_v9 = vpack.c.bf16 %v3456_v4, %v3456_v4  ;;  %v8043_v48 = vpack.c.bf16 %v3457_v36, %v3457_v36  ;;  %v6118_v4 = vor.u32 %v6641_v63, %v6117_v61  ;;  %v6623_v36 = vld [vmem:[#allocation25 + $0x14] sm:$0xf0]  ;;  %v6644_v61 = vld [vmem:[#allocation25 + $0xc4] sm:$0xf]  ;;  %v6135_v63 = vld [vmem:[#allocation25 + $0xc8] sm:$0xf0] }
 0xa96   : > { %v6046_v8 = vor.u32 %v6623_v36, %v6045_v3  ;;  %v6671_v58 = vld [vmem:[#allocation25 + $0x194] sm:$0xf0]  ;;  %v6055_v3 = vld [vmem:[#allocation25 + $0x28] sm:$0xf0] }
 0xa97   : > { %3862 = vmatmul.bf16.vlgmr.msra.gmra.mxu0 %v8041_v9  ;;  %3875 = vmatmul.bf16.vlgmr.msra.gmra.mxu1 %v8043_v48 }
 0xa98   : > { %3888 = vmatmul.bf16.vlgmr.msra.gmra.mxu2 %v8041_v9  ;;  %3901 = vmatmul.bf16.vlgmr.msra.gmra.mxu3 %v8043_v48 }
 0xa99   : > { %4356 = vmatpush.bf16.msra.mxu0 %v6094_v10  ;;  %4369 = vmatpush.bf16.msra.mxu1 %v6158_v12  ;;  %v6037_v10 = vld [vmem:[#allocation25] sm:$0xf] }
 0xa9a   : > { %4382 = vmatpush.bf16.msra.mxu2 %v6222_v15  ;;  %4395 = vmatpush.bf16.msra.mxu3 %v6286_v17  ;;  %v6101_v12 = vld [vmem:[#allocation25 + $0x80] sm:$0xf]  ;;  %v6632_v17 = vld [vmem:[#allocation25 + $0x64] sm:$0xf] }
 0xa9b   : > { %v6102_v15 = vor.u32 %v6637_v13, %v6101_v12  ;;  %v6090_v18 = vor.u32 %v6632_v17, %v6087_v33  ;;  %v6127_v12 = vld [vmem:[#allocation25 + $0xb8] sm:$0xf0]  ;;  %v6682_v13 = vld [vmem:[#allocation25 + $0x1f4] sm:$0xf] }
 0xa9c   : > { %v6662_v33 = vld [vmem:[#allocation25 + $0x154] sm:$0xf] }
 0xa9d   : > { %4357 = vmatpush.bf16.msra.mxu0 %v6086_v19  ;;  %4370 = vmatpush.bf16.msra.mxu1 %v6150_v6  ;;  %v6159_v19 = vld [vmem:[#allocation25 + $0xf8] sm:$0xf0]  ;;  %v6657_v6 = vld [vmem:[#allocation25 + $0x124] sm:$0xf0] }
 0xa9e   : > { %4383 = vmatpush.bf16.msra.mxu2 %v6214_v23  ;;  %4396 = vmatpush.bf16.msra.mxu3 %v6278_v0  ;;  %v6162_v20 = vor.u32 %v6650_v62, %v6159_v19  ;;  %v6182_v46 = vor.u32 %v6657_v6, %v6181_v21  ;;  %v6079_v23 = vld [vmem:[#allocation25 + $0x58] sm:$0xf0]  ;;  %v6253_v0 = vld [vmem:[#allocation25 + $0x1b0] sm:$0xf]  ;;  %v6640_v19 = vld [vmem:[#allocation25 + $0xa4] sm:$0xf] }
 0xa9f   : > { %v6082_v24 = vor.u32 %v6630_v22, %v6079_v23  ;;  %v6254_v26 = vor.u32 %v6675_v25, %v6253_v0  ;;  %v6680_v21 = vld [vmem:[#allocation25 + $0x1e4] sm:$0xf] }
 0xaa0   : > { %v6620_v23 = vld [vmem:[#allocation25 + $0x4] sm:$0xf] }
 0xaa1   : > { %4358 = vmatpush.bf16.msra.mxu0 %v6078_v29  ;;  %4371 = vmatpush.bf16.msra.mxu1 %v6142_v32  ;;  %v6151_v29 = vld [vmem:[#allocation25 + $0xe8] sm:$0xf0]  ;;  %v6655_v32 = vld [vmem:[#allocation25 + $0x114] sm:$0xf0]  ;;  %v6660_v0 = vld [vmem:[#allocation25 + $0x144] sm:$0xf] }
 0xaa2   : > { %4384 = vmatpush.bf16.msra.mxu2 %v6206_v39  ;;  %4397 = vmatpush.bf16.msra.mxu3 %v6270_v55  ;;  %v6154_v30 = vor.u32 %v6648_v28, %v6151_v29  ;;  %v6174_v35 = vor.u32 %v6655_v32, %v6173_v31  ;;  %v6071_v39 = vld [vmem:[#allocation25 + $0x48] sm:$0xf0]  ;;  %v6245_v55 = vld [vmem:[#allocation25 + $0x1a0] sm:$0xf]  ;;  %v6638_v29 = vld [vmem:[#allocation25 + $0x94] sm:$0xf] }
 0xaa3   : > { %v6074_v40 = vor.u32 %v6628_v38, %v6071_v39  ;;  %v6246_v42 = vor.u32 %v6673_v41, %v6245_v55  ;;  %v6678_v32 = vld [vmem:[#allocation25 + $0x1d4] sm:$0xf]  ;;  %v8056_v55 = vld [vmem:[%s8188_s21] sm:$0xf] }
 0xaa4   : > { %v6658_v39 = vld [vmem:[#allocation25 + $0x134] sm:$0xf] }
 0xaa5   : > { %4359 = vmatpush.bf16.msra.mxu0 %v6070_v45  ;;  %4372 = vmatpush.bf16.msra.mxu1 %v6134_v47  ;;  %v6143_v45 = vld [vmem:[#allocation25 + $0xd8] sm:$0xf0]  ;;  %v6165_v47 = vld [vmem:[#allocation25 + $0x100] sm:$0xf] }
 0xaa6   : > { %4385 = vmatpush.bf16.msra.mxu2 %v6198_v5  ;;  %4398 = vmatpush.bf16.msra.mxu3 %v6262_v52  ;;  %v6146_v56 = vor.u32 %v6646_v44, %v6143_v45  ;;  %v6166_v34 = vor.u32 %v6653_v49, %v6165_v47  ;;  %v6063_v5 = vld [vmem:[#allocation25 + $0x38] sm:$0xf0]  ;;  %v6666_v52 = vld [vmem:[#allocation25 + $0x174] sm:$0xf]  ;;  %v6103_v44 = vld [vmem:[#allocation25 + $0x88] sm:$0xf0] }
 0xaa7   : > { %3914 = vmatmul.bf16.vlgmr.msrb.gmra.mxu0 %v8041_v9  ;;  %3927 = vmatmul.bf16.vlgmr.msrb.gmra.mxu1 %v8043_v48  ;;  %v6066_v53 = vor.u32 %v6626_v51, %v6063_v5  ;;  %v6676_v45 = vld [vmem:[#allocation25 + $0x1c4] sm:$0xf]  ;;  %v6263_v47 = vld [vmem:[#allocation25 + $0x1c8] sm:$0xf0]  ;;  %v3526_v5 = vperm.slane %v8056_v55, 0 }
 0xaa8   : > { %3940 = vmatmul.bf16.vlgmr.msrb.gmra.mxu2 %v8041_v9  ;;  %3953 = vmatmul.bf16.vlgmr.msrb.gmra.mxu3 %v8043_v48  ;;  %v6634_v9 = vld [vmem:[#allocation25 + $0x74] sm:$0xf]  ;;  %v6038_v48 = vor.u32 %v6621_v11, %v6037_v10  ;;  %v6266_v49 = vor.u32 %v6676_v45, %v6263_v47  ;;  %v6183_v51 = vld [vmem:[#allocation25 + $0x128] sm:$0xf0] }
 0xaa9   : > { %4360 = vmatpush.bf16.msra.mxu0 %v6062_v57  ;;  %4373 = vmatpush.bf16.msra.mxu1 %v6126_v59  ;;  %v6098_v16 = vor.u32 %v6634_v9, %v6095_v14  ;;  %v6237_v57 = vld [vmem:[#allocation25 + $0x190] sm:$0xf]  ;;  %v6226_v59 = vor.u32 %v6666_v52, %v6223_v54  ;;  %v6642_v11 = vld [vmem:[#allocation25 + $0xb4] sm:$0xf]  ;;  %v6287_v14 = vld [vmem:[#allocation25 + $0x1f8] sm:$0xf0] }
 0xaaa   : > { %4386 = vmatpush.bf16.msra.mxu2 %v6190_v1  ;;  %4399 = vmatpush.bf16.msra.mxu3 %v6254_v26  ;;  %v6238_v60 = vor.u32 %v6671_v58, %v6237_v57  ;;  %v6138_v1 = vor.u32 %v6644_v61, %v6135_v63  ;;  %v6130_v9 = vor.u32 %v6642_v11, %v6127_v12  ;;  %v6199_v26 = vld [vmem:[#allocation25 + $0x148] sm:$0xf0]  ;;  %v6255_v54 = vld [vmem:[#allocation25 + $0x1b8] sm:$0xf0]  ;;  %v6672_v63 = vld [vmem:[#allocation25 + $0x1a4] sm:$0xf] }
 0xaab   : > { %v6202_v28 = vor.u32 %v6660_v0, %v6199_v26  ;;  %v6175_v61 = vld [vmem:[#allocation25 + $0x118] sm:$0xf0]  ;;  %v3529_v26 = vperm.slane %v8056_v55, 3 }
 0xaad   : > { %4361 = vmatpush.bf16.msra.mxu0 %v6054_v2  ;;  %4374 = vmatpush.bf16.msra.mxu1 %v6118_v4  ;;  %v6624_v2 = vld [vmem:[#allocation25 + $0x24] sm:$0xf] }
 0xaae   : > { %4387 = vmatpush.bf16.msra.mxu2 %v6182_v46  ;;  %4400 = vmatpush.bf16.msra.mxu3 %v6246_v42  ;;  %v6664_v4 = vld [vmem:[#allocation25 + $0x164] sm:$0xf]  ;;  %v6058_v36 = vor.u32 %v6624_v2, %v6055_v3  ;;  %v6279_v46 = vld [vmem:[#allocation25 + $0x1e8] sm:$0xf0] }
 0xaaf   : > { %v6218_v10 = vor.u32 %v6664_v4, %v6215_v7  ;;  %v6282_v22 = vor.u32 %v6680_v21, %v6279_v46  ;;  %v6636_v42 = vld [vmem:[#allocation25 + $0x84] sm:$0xf]  ;;  %v6247_v3 = vld [vmem:[#allocation25 + $0x1a8] sm:$0xf0]  ;;  %v3528_v21 = vperm.slane %v8056_v55, 2 }
 0xab0   : > { %v6652_v4 = vld [vmem:[#allocation25 + $0x104] sm:$0xf]  ;;  %v6250_v7 = vor.u32 %v6672_v63, %v6247_v3 }
 0xab1   : > { %4362 = vmatpush.bf16.msra.mxu0 %v6046_v8  ;;  %4375 = vmatpush.bf16.msra.mxu1 %v6110_v50  ;;  %v6669_v8 = vld [vmem:[#allocation25 + $0x184] sm:$0xf0] }
 0xab2   : > { %4388 = vmatpush.bf16.msra.mxu2 %v6174_v35  ;;  %4401 = vmatpush.bf16.msra.mxu3 %v6238_v60  ;;  %v6230_v50 = vor.u32 %v6669_v8, %v6229_v37  ;;  %v6271_v35 = vld [vmem:[#allocation25 + $0x1d8] sm:$0xf0]  ;;  %v6654_v60 = vld [vmem:[#allocation25 + $0x114] sm:$0xf] }
 0xab3   : > { %v6274_v38 = vor.u32 %v6678_v32, %v6271_v35  ;;  %v6178_v2 = vor.u32 %v6654_v60, %v6175_v61  ;;  %v6670_v8 = vld [vmem:[#allocation25 + $0x194] sm:$0xf] }
 0xab5   : > { %4363 = vmatpush.bf16.msra.mxu0 %v6038_v48  ;;  %4376 = vmatpush.bf16.msra.mxu1 %v6102_v15  ;;  %v6290_v48 = vor.u32 %v6682_v13, %v6287_v14  ;;  %v6622_v15 = vld [vmem:[#allocation25 + $0x14] sm:$0xf] }
 0xab6   : > { %4389 = vmatpush.bf16.msra.mxu2 %v6166_v34  ;;  %4402 = vmatpush.bf16.msra.mxu3 %v6230_v50  ;;  %v6656_v34 = vld [vmem:[#allocation25 + $0x124] sm:$0xf]  ;;  %v3527_v50 = vperm.slane %v8056_v55, 1 }
 0xab7   : > { %v6186_v52 = vor.u32 %v6656_v34, %v6183_v51  ;;  %v4030_v34 = vld [vmem:[%s8189_s14] sm:$0x3] }
 0xab8   : > { %v4032_v51 = vperm.slane %v4030_v34, 0 }
 0xab9   : > { %4408 = vmatpush.bf16.msrb.mxu0 %v6098_v16  ;;  %4421 = vmatpush.bf16.msrb.mxu1 %v6162_v20  ;;  %v6047_v16 = vld [vmem:[#allocation25 + $0x18] sm:$0xf0]  ;;  %v6119_v20 = vld [vmem:[#allocation25 + $0xa8] sm:$0xf0] }
 0xaba   : > { %4434 = vmatpush.bf16.msrb.mxu2 %v6226_v59  ;;  %v6050_v17 = vor.u32 %v6622_v15, %v6047_v16  ;;  %4447 = vmatpush.bf16.msrb.mxu3 %v6290_v48  ;;  %v6122_v6 = vor.u32 %v6640_v19, %v6119_v20 }
 0xabd   : > { %4409 = vmatpush.bf16.msrb.mxu0 %v6090_v18  ;;  %4422 = vmatpush.bf16.msrb.mxu1 %v6154_v30  ;;  %v6207_v18 = vld [vmem:[#allocation25 + $0x158] sm:$0xf0] }
 0xabe   : > { %4435 = vmatpush.bf16.msrb.mxu2 %v6218_v10  ;;  %v6210_v62 = vor.u32 %v6662_v33, %v6207_v18  ;;  %4448 = vmatpush.bf16.msrb.mxu3 %v6282_v22  ;;  %v6111_v30 = vld [vmem:[#allocation25 + $0x98] sm:$0xf0]  ;;  %v6668_v33 = vld [vmem:[#allocation25 + $0x184] sm:$0xf]  ;;  %v6231_v18 = vld [vmem:[#allocation25 + $0x188] sm:$0xf0] }
 0xabf   : > { %v6114_v31 = vor.u32 %v6638_v29, %v6111_v30  ;;  %v6239_v10 = vld [vmem:[#allocation25 + $0x198] sm:$0xf0]  ;;  %v6234_v19 = vor.u32 %v6668_v33, %v6231_v18 }
 0xac0   : > { %v6242_v13 = vor.u32 %v6670_v8, %v6239_v10 }
 0xac1   : > { %4410 = vmatpush.bf16.msrb.mxu0 %v6082_v24  ;;  %4423 = vmatpush.bf16.msrb.mxu1 %v6146_v56  ;;  %v6039_v24 = vld [vmem:[#allocation25 + $0x8] sm:$0xf0]  ;;  %v6106_v56 = vor.u32 %v6636_v42, %v6103_v44 }
 0xac2   : > { %4436 = vmatpush.bf16.msrb.mxu2 %v6210_v62  ;;  %v6042_v25 = vor.u32 %v6620_v23, %v6039_v24  ;;  %4449 = vmatpush.bf16.msrb.mxu3 %v6274_v38 }
 0xac5   : > { %4411 = vmatpush.bf16.msrb.mxu0 %v6074_v40  ;;  %4424 = vmatpush.bf16.msrb.mxu1 %v6138_v1  ;;  %v6191_v40 = vld [vmem:[#allocation25 + $0x138] sm:$0xf0] }
 0xac6   : > { %4437 = vmatpush.bf16.msrb.mxu2 %v6202_v28  ;;  %v6194_v41 = vor.u32 %v6658_v39, %v6191_v40  ;;  %4450 = vmatpush.bf16.msrb.mxu3 %v6266_v49 }
 0xac9   : > { %4412 = vmatpush.bf16.msrb.mxu0 %v6066_v53  ;;  %4425 = vmatpush.bf16.msrb.mxu1 %v6130_v9  ;;  %v6674_v53 = vld [vmem:[#allocation25 + $0x1b4] sm:$0xf] }
 0xaca   : > { %4438 = vmatpush.bf16.msrb.mxu2 %v6194_v41  ;;  %v6258_v57 = vor.u32 %v6674_v53, %v6255_v54 }
 0xacc   : > { %4451 = vmatpush.bf16.msrb.mxu3 %v6258_v57 }
 0xacd   : > { %4413 = vmatpush.bf16.msrb.mxu0 %v6058_v36  ;;  %4426 = vmatpush.bf16.msrb.mxu1 %v6122_v6  ;;  %v6167_v36 = vld [vmem:[#allocation25 + $0x108] sm:$0xf0] }
 0xace   : > { %4439 = vmatpush.bf16.msrb.mxu2 %v6186_v52  ;;  %v6170_v11 = vor.u32 %v6652_v4, %v6167_v36 }
 0xad0   : > { %4452 = vmatpush.bf16.msrb.mxu3 %v6250_v7 }
 0xad1   : > { %4414 = vmatpush.bf16.msrb.mxu0 %v6050_v17  ;;  %4427 = vmatpush.bf16.msrb.mxu1 %v6114_v31 }
 0xad2   : > { %4440 = vmatpush.bf16.msrb.mxu2 %v6178_v2  ;;  %v4033_v2 = vperm.slane %v4030_v34, 1 }
 0xad4   : > { %4453 = vmatpush.bf16.msrb.mxu3 %v6242_v13 }
 0xad5   : > { %4415 = vmatpush.bf16.msrb.mxu0 %v6042_v25  ;;  %4428 = vmatpush.bf16.msrb.mxu1 %v6106_v56 }
 0xad6   : > { %4441 = vmatpush.bf16.msrb.mxu2 %v6170_v11 }
 0xad8   : > { %4454 = vmatpush.bf16.msrb.mxu3 %v6234_v19 }
 0xb14   : > { %v3863_v58 = vpop.f32.mrf.mxu0  ;;  %v3876_v59 = vpop.f32.mrf.mxu1 }
 0xb15   : > { %v3864_v1 = vadd.f32 %v3863_v58, %v3526_v5 }
 0xb17   : > { %v3877_v37 = vadd.f32 %v3876_v59, %v3864_v1 }
 0xb19   : > { %v3958_v12 = vmax.f32 %v3877_v37, 0.0 }
 0xb1b   : > { %v3962_v9 = vpack.c.bf16 %v3958_v12, %v3958_v12  ;;  %v3889_v14 = vpop.f32.mrf.mxu2  ;;  %v3902_v48 = vpop.f32.mrf.mxu3 }
 0xb1c   : > { %v3890_v15 = vadd.f32 %v3889_v14, %v3527_v50  ;;  %v3865_v16 = vpop.f32.mrf.mxu0  ;;  %v3878_v17 = vpop.f32.mrf.mxu1 }
 0xb1d   : > { %4364 = vmatmul.bf16.vlgmr.msra.gmra.mxu0 %v3962_v9 }
 0xb1e   : > { %v3903_v62 = vadd.f32 %v3902_v48, %v3890_v15 }
 0xb20   : > { %v3959_v20 = vmax.f32 %v3903_v62, 0.0 }
 0xb22   : > { %v3963_v6 = vpack.c.bf16 %v3959_v20, %v3959_v20 }
 0xb23   : > { %v3891_v46 = vpop.f32.mrf.mxu2  ;;  %v3904_v22 = vpop.f32.mrf.mxu3 }
 0xb24   : > { %4377 = vmatmul.bf16.vlgmr.msra.gmra.mxu1 %v3963_v6  ;;  %v3915_v23 = vpop.f32.mrf.mxu0  ;;  %v3928_v24 = vpop.f32.mrf.mxu1 }
 0xb25   : > { %v3916_v0 = vadd.f32 %v3915_v23, %v3528_v21 }
 0xb27   : > { %v3929_v25 = vadd.f32 %v3928_v24, %v3916_v0 }
 0xb29   : > { %v3960_v28 = vmax.f32 %v3929_v25, 0.0 }
 0xb2b   : > { %v3964_v29 = vpack.c.bf16 %v3960_v28, %v3960_v28  ;;  %v3941_v30 = vpop.f32.mrf.mxu2  ;;  %v3954_v31 = vpop.f32.mrf.mxu3 }
 0xb2c   : > { %v3942_v32 = vadd.f32 %v3941_v30, %v3529_v26  ;;  %v3917_v35 = vpop.f32.mrf.mxu0  ;;  %v3930_v38 = vpop.f32.mrf.mxu1 }
 0xb2d   : > { %4390 = vmatmul.bf16.vlgmr.msra.gmra.mxu2 %v3964_v29  ;;  %4416 = vmatmul.bf16.vlgmr.msrb.gmra.mxu0 %v3962_v9 }
 0xb2e   : > { %v3955_v39 = vadd.f32 %v3954_v31, %v3942_v32 }
 0xb30   : > { %v3961_v40 = vmax.f32 %v3955_v39, 0.0 }
 0xb32   : > { %v3965_v41 = vpack.c.bf16 %v3961_v40, %v3961_v40 }
 0xb33   : > { %v3943_v42 = vpop.f32.mrf.mxu2  ;;  %v3956_v44 = vpop.f32.mrf.mxu3 }
 0xb34   : > { %4403 = vmatmul.bf16.vlgmr.msra.gmra.mxu3 %v3965_v41  ;;  %4429 = vmatmul.bf16.vlgmr.msrb.gmra.mxu1 %v3963_v6 }
 0xb3d   : > { %4442 = vmatmul.bf16.vlgmr.msrb.gmra.mxu2 %v3964_v29 }
 0xb44   : > { %4455 = vmatmul.bf16.vlgmr.msrb.gmra.mxu3 %v3965_v41 }
 0xb9a   : > { %v4365_v45 = vpop.f32.mrf.mxu0 }
 0xb9b   : > { %v4366_v53 = vadd.f32 %v4365_v45, %v4032_v51 }
 0xba1   : > { %v4378_v55 = vpop.f32.mrf.mxu1 }
 0xba2   : > { %v4367_v56 = vpop.f32.mrf.mxu0  ;;  %v4379_v57 = vadd.f32 %v4378_v55, %v4366_v53 }
 0xba9   : > { %v4380_v47 = vpop.f32.mrf.mxu1 }
 0xbaa   : > { %v4417_v49 = vpop.f32.mrf.mxu0 }
 0xbab   : > { %v4418_v36 = vadd.f32 %v4417_v49, %v4033_v2 }
 0xbb0   : > { %v4391_v5 = vpop.f32.mrf.mxu2 }
 0xbb1   : > { %v4430_v52 = vpop.f32.mrf.mxu1  ;;  %v4392_v58 = vadd.f32 %v4391_v5, %v4379_v57 }
 0xbb2   : > { %v4419_v54 = vpop.f32.mrf.mxu0  ;;  %v4431_v7 = vadd.f32 %v4430_v52, %v4418_v36 }
 0xbb7   : > { %v4404_v59 = vpop.f32.mrf.mxu3 }
 0xbb8   : > { %v4405_v60 = vadd.f32 %v4404_v59, %v4392_v58  ;;  %v4393_v61 = vpop.f32.mrf.mxu2 }
 0xbb9   : > { %v4432_v63 = vpop.f32.mrf.mxu1 }
 0xbba   : > { %v4460_v1 = vadd.f32 %v4405_v60, %v8002_v43 }
 0xbbc   : > { %4462 = vst [vmem:[%s1019_s22] sm:$0xff] %v4460_v1 }
 0xbbf   : > { %v4406_v3 = vpop.f32.mrf.mxu3 }
 0xbc0   : > { %v4443_v4 = vpop.f32.mrf.mxu2 }
 0xbc1   : > { %v4444_v37 = vadd.f32 %v4443_v4, %v4431_v7 }
 0xbc7   : > { %v4456_v8 = vpop.f32.mrf.mxu3 }
 0xbc8   : > { %v4457_v10 = vadd.f32 %v4456_v8, %v4444_v37  ;;  %v4445_v43 = vpop.f32.mrf.mxu2 }
 0xbca   : > { %v4461_v50 = vadd.f32 %v4457_v10, %v8005_v27 }
 0xbcc   : > { %4463 = vst [vmem:[%s1019_s22 + $0x8] sm:$0xff] %v4461_v50 }
 0xbcd   : > { %7379 = shalt.err (!%p7376_p10)
}
 0xbce   : > { %6739 = dma.vmem_to_hbm [thread:$0]  (%p7742_p5), %s4479_s3, 256, %s4481_s0, %s4465_s10  }
 0xbcf   : > { %v4458_v27 = vpop.f32.mrf.mxu3 }
 0xbd0 PF: > { %s4492_s20 = sand.u32 1, %s7442_s5   ;;  %p8191_p11 = scmp.ge.s32.totalorder %s7454_s28, 2 }
 0xbd1   : > { %s4493_s21 = scalar_lea.sflag [#allocation4], %s4492_s20 }
 0xbd2   : > { %p6789_p4 = pnand %p8191_p11, %p7746_p6 }
 0xbd4   : > { %p6790_p13 = pneg %p6789_p4 }
 0xbd6   : > { %7437 = dma.done.wait (%p6790_p13), %s4493_s21, 256  }
 0xbd7   : > { %7439 = vsyncadd (%p6790_p13), %s4493_s21, 4294967040  ;;  %s8192_s17 = sld [smem:[#allocation38_spill]]  ;;  %p48_p0 = scmp.ge.s32.totalorder %s7714_s8, 4  }
 0xbd8   : > { %s8193_s5 = smov %s7446_s26  ;;  %s8194_s26 = smov %s7450_s27 }
 0xbd9   : > { %s8196_s28 = smov %s7714_s8  ;;  %50 = sbr.rel (!%p48_p0) target bundleno = 39 (0x27), region = 235 }
 0xbdd   : > { %s8195_s27 = smov %s8192_s17 }
 0xbde   :  { %4499 = vsyncpa [#allocation3], 1 }
 0xbdf   :  { %4501 = vsyncpa [#allocation3 + $0x1], 1 }
 0xbe0   :  { %4502 = vsyncpa [#allocation6], 1 }
 0xbe1   :  { %4504 = vsyncpa [#allocation6 + $0x1], 1 }
 0xbe2   :  { %4505 = vsyncpa [#allocation9], 1 }
 0xbe3   :  { %4507 = vsyncpa [#allocation9 + $0x1], 1 }
 0xbe4   :  { %4508 = vsyncpa [#allocation12], 1 }
 0xbe5   :  { %4509 = vsyncpa [#allocation15], 1 }
 0xbe6   :  { %4510 = vsyncpa [#allocation18], 1 }
 0xbe7   :  { %4511 = vsyncpa [#allocation21], 1 }
 0xbe8   :  { %4512 = vsyncpa [#allocation24], 1 }
 0xbe9   :  { %4513 = vsyncpa [#allocation4], 1 }
 0xbea   :  { %4515 = vsyncpa [#allocation4 + $0x1], 1 }

</bundles_post_ra>
